<compile_context>
chip_gen: v6e
topology: v6e:2x2x1
jax: 0.10.0
libtpu: 0.0.40
codegen_flags: <defaults>
</compile_context>

<pallas_src>
import jax
import jax.numpy as jnp
from jax.experimental import pallas as pl
from jax.experimental.pallas import tpu as pltpu

IN_FEATURES = 6400
HIDDEN = 1000
HIDDEN_PAD = 1024                  # pad hidden to a multiple of 128 lanes (bit-exact)
OUT_FEATURES = 4
TK = 3200                          # K tile for the fc1 reduction (6400 / 3200 = 2 steps)
N_SPLIT = 2                        # hidden-dim split (leading "parallel" axis)
HID_HALF = HIDDEN_PAD // N_SPLIT   # 512


def mlp_kernel(x_ref, w1_ref, b1_ref, w2_ref, o_ref, acc_ref):
    """Fused fc1 (K-tiled accumulation) + bias + ReLU + partial fc2.

    Grid: (h, k) with h = hidden-half index ("parallel") and k = fc1 reduction
    chunk ("arbitrary", innermost). acc_ref holds the running fc1 partial sums
    for this hidden half, (B, HID_HALF) in f32. The epilogue adds b1, applies
    ReLU and writes this half's partial fc2 product; halves are summed (and b2
    added) in the wrapper.
    """
    k = pl.program_id(1)

    @pl.when(k == 0)
    def _():
        acc_ref[...] = jnp.zeros_like(acc_ref)

    # bf16 x bf16 -> f32 accumulate on the MXU.
    acc_ref[...] += jnp.dot(
        x_ref[...], w1_ref[...], preferred_element_type=jnp.float32
    )

    @pl.when(k == pl.num_programs(1) - 1)
    def _():
        h_act = jnp.maximum(acc_ref[...] + b1_ref[...], 0.0)  # bias + ReLU
        partial = jnp.dot(
            h_act, w2_ref[...], preferred_element_type=jnp.float32
        )
        o_ref[0] = partial.astype(o_ref.dtype)


def prepare_params(w1, b1, w2, b2):
    """One-time weight prep (NOT on the per-forward path).

    - Zero-pads the hidden dim 1000 -> 1024 (bit-exact: zero W1 columns give
      acc=0, ReLU(0)=0, and the matching zero W2 rows contribute 0).
    - Re-lays W1 as (N_SPLIT, IN_FEATURES, HID_HALF) so each (TK, HID_HALF)
      tile is a single contiguous DMA.
    - Casts W1 to bfloat16 (the only large HBM stream).
    """
    pad_h = HIDDEN_PAD - HIDDEN
    w1p = jnp.pad(w1, ((0, 0), (0, pad_h)))
    b1p = jnp.pad(b1, ((0, 0), (0, pad_h)))
    w2p = jnp.pad(w2, ((0, pad_h), (0, 0)))
    w1p = (
        w1p.reshape(IN_FEATURES, N_SPLIT, HID_HALF)
        .transpose(1, 0, 2)
        .astype(jnp.bfloat16)
    )
    return w1p, b1p, w2p, b2


def network_forward(x, w1p, b1p, w2p, b2):
    """Forward pass. Expects params already processed by `prepare_params`."""
    B = x.shape[0]
    n_k = IN_FEATURES // TK
    x_bf = x.astype(jnp.bfloat16)  # tiny (B x 6400), cheap per-call cast

    partials = pl.pallas_call(
        mlp_kernel,
        out_shape=jax.ShapeDtypeStruct((N_SPLIT, B, OUT_FEATURES), jnp.float32),
        grid_spec=pltpu.PrefetchScalarGridSpec(
            num_scalar_prefetch=0,
            grid=(N_SPLIT, n_k),
            in_specs=[
                # x chunk: same for both hidden halves.
                pl.BlockSpec((B, TK), lambda h, k: (0, k)),
                # W1 chunk: contiguous (TK, HID_HALF) tile of half h (leading
                # half dim squeezed out of the kernel view).
                pl.BlockSpec((None, TK, HID_HALF), lambda h, k: (h, k, 0)),
                # b1 slice for this hidden half.
                pl.BlockSpec((1, HID_HALF), lambda h, k: (0, h)),
                # W2 rows for this hidden half.
                pl.BlockSpec((HID_HALF, OUT_FEATURES), lambda h, k: (h, 0)),
            ],
            out_specs=pl.BlockSpec(
                (1, B, OUT_FEATURES), lambda h, k: (h, 0, 0)
            ),
            scratch_shapes=[pltpu.VMEM((B, HID_HALF), jnp.float32)],
        ),
        compiler_params=pltpu.CompilerParams(
            dimension_semantics=("parallel", "arbitrary"),
            # Steady state is ~7 MiB with bf16 W1 tiles; 28 MiB gives ample
            # headroom on v5e's 16 MiB scoped default and is safe on v6e/v7x.
            vmem_limit_bytes=28 * 1024 * 1024,
        ),
    )(x_bf, w1p, b1p, w2p)

    # Reduce the two hidden-half partials and add the fc2 bias once.
    return partials.sum(axis=0) + b2


def init_params(key):
    """Deterministic synthetic parameters with PyTorch-Linear-like init ranges."""
    k1, k2, k3, k4 = jax.random.split(key, 4)
    bound1 = 1.0 / jnp.sqrt(IN_FEATURES)
    bound2 = 1.0 / jnp.sqrt(HIDDEN)
    w1 = jax.random.uniform(k1, (IN_FEATURES, HIDDEN), jnp.float32, -bound1, bound1)
    b1 = jax.random.uniform(k2, (1, HIDDEN), jnp.float32, -bound1, bound1)
    w2 = jax.random.uniform(k3, (HIDDEN, OUT_FEATURES), jnp.float32, -bound2, bound2)
    b2 = jax.random.uniform(k4, (1, OUT_FEATURES), jnp.float32, -bound2, bound2)
    return w1, b1, w2, b2


if __name__ == "__main__":
    key = jax.random.PRNGKey(0)
    k_x, k_p = jax.random.split(key)

    B = 2  # small batch; add a batch grid axis if B grows large
    x = jax.random.normal(k_x, (B, IN_FEATURES), jnp.float32)
    w1, b1, w2, b2 = init_params(k_p)

    # One-time weight prep (padding / per-half layout / bf16 cast) at init.
    w1p, b1p, w2p, b2p = prepare_params(w1, b1, w2, b2)

    fwd = jax.jit(network_forward)
    out = fwd(x, w1p, b1p, w2p, b2p)
    jax.block_until_ready(out)

    # Reference check in plain JAX (same math as the PyTorch forward).
    # Tolerance loosened since W1/x are streamed in bf16 (f32 accumulation).
    ref = jnp.maximum(x @ w1 + b1, 0.0) @ w2 + b2
    assert out.shape == (B, OUT_FEATURES)
    assert jnp.allclose(out, ref, atol=2e-2, rtol=2e-2)

    print("KERNEL_OK")
</pallas_src>

<mosaic_0001>
module attributes {stable_mosaic.version = 11 : i64} {
  func.func @mlp_kernel(%arg0: i32, %arg1: i32, %arg2: memref<2x3200xbf16, #tpu.memory_space<vmem>>, %arg3: memref<1x3200x512xbf16, #tpu.memory_space<vmem>>, %arg4: memref<1x512xf32, #tpu.memory_space<vmem>>, %arg5: memref<512x4xf32, #tpu.memory_space<vmem>>, %arg6: memref<1x2x4xf32, #tpu.memory_space<vmem>>, %arg7: memref<2x512xf32, #tpu.memory_space<vmem>>) attributes {dimension_semantics = [#tpu.dimension_semantics<parallel>, #tpu.dimension_semantics<arbitrary>], iteration_bounds = array<i64: 2, 2>, scalar_prefetch = 0 : i64, scratch_operands = 1 : i64, tpu.core_type = #tpu.core_type<tc>, window_params = [{transform_indices = @transform_0, window_bounds = array<i64: 2, 3200>}, {transform_indices = @transform_1, window_bounds = array<i64: 1, 3200, 512>}, {transform_indices = @transform_2, window_bounds = array<i64: 1, 512>}, {transform_indices = @transform_3, window_bounds = array<i64: 512, 4>}, {transform_indices = @transform_4, window_bounds = array<i64: 1, 2, 4>}]} {
    %c0_i32 = arith.constant 0 : i32
    %0 = arith.cmpi eq, %arg1, %c0_i32 : i32
    %1 = arith.extui %0 : i1 to i32
    %c0_i32_0 = arith.constant 0 : i32
    %2 = arith.cmpi ne, %1, %c0_i32_0 : i32
    scf.if %2 {
      %cst_10 = arith.constant 0.000000e+00 : f32
      %13 = vector.broadcast %cst_10 : f32 to vector<2x512xf32>
      %c0_11 = arith.constant 0 : index
      %c0_12 = arith.constant 0 : index
      %14 = vector.load %arg7[%c0_11, %c0_12] : memref<2x512xf32, #tpu.memory_space<vmem>>, vector<2x512xf32>
      tpu.vector_store %arg7[%c0_11, %c0_12], %13 {strides = array<i32>} : memref<2x512xf32, #tpu.memory_space<vmem>>, vector<2x512xf32>,
    } else {
    }
    %c0 = arith.constant 0 : index
    %c0_1 = arith.constant 0 : index
    %3 = vector.load %arg7[%c0, %c0_1] : memref<2x512xf32, #tpu.memory_space<vmem>>, vector<2x512xf32>
    %c0_2 = arith.constant 0 : index
    %c0_3 = arith.constant 0 : index
    %4 = vector.load %arg2[%c0_2, %c0_3] : memref<2x3200xbf16, #tpu.memory_space<vmem>>, vector<2x3200xbf16>
    %c0_4 = arith.constant 0 : index
    %c0_5 = arith.constant 0 : index
    %c0_6 = arith.constant 0 : index
    %5 = vector.load %arg3[%c0_4, %c0_5, %c0_6] : memref<1x3200x512xbf16, #tpu.memory_space<vmem>>, vector<1x3200x512xbf16>
    %6 = vector.shape_cast %5 : vector<1x3200x512xbf16> to vector<3200x512xbf16>
    %cst = arith.constant dense<0.000000e+00> : vector<2x512xf32>
    %7 = tpu.matmul %4, %6, %cst {dimension_numbers = #tpu.dot_dimension_numbers<[1], [0], [0], [1], [0, 0, 1, 1], [], []>} : vector<2x3200xbf16>, vector<3200x512xbf16>, vector<2x512xf32> -> vector<2x512xf32>
    %8 = arith.addf %3, %7 : vector<2x512xf32>
    %c0_7 = arith.constant 0 : index
    %c0_8 = arith.constant 0 : index
    %9 = vector.load %arg7[%c0_7, %c0_8] : memref<2x512xf32, #tpu.memory_space<vmem>>, vector<2x512xf32>
    tpu.vector_store %arg7[%c0_7, %c0_8], %8 {strides = array<i32>} : memref<2x512xf32, #tpu.memory_space<vmem>>, vector<2x512xf32>,
    %c1_i32 = arith.constant 1 : i32
    %10 = arith.cmpi eq, %arg1, %c1_i32 : i32
    %11 = arith.extui %10 : i1 to i32
    %c0_i32_9 = arith.constant 0 : i32
    %12 = arith.cmpi ne, %11, %c0_i32_9 : i32
    scf.if %12 {
      %c0_10 = arith.constant 0 : index
      %c0_11 = arith.constant 0 : index
      %13 = vector.load %arg7[%c0_10, %c0_11] : memref<2x512xf32, #tpu.memory_space<vmem>>, vector<2x512xf32>
      %c0_12 = arith.constant 0 : index
      %c0_13 = arith.constant 0 : index
      %14 = vector.load %arg4[%c0_12, %c0_13] : memref<1x512xf32, #tpu.memory_space<vmem>>, vector<1x512xf32>
      %15 = vector.broadcast %14 : vector<1x512xf32> to vector<2x512xf32>
      %16 = arith.addf %13, %15 : vector<2x512xf32>
      %cst_14 = arith.constant 0.000000e+00 : f32
      %17 = vector.broadcast %cst_14 : f32 to vector<2x512xf32>
      %18 = arith.maximumf %16, %17 : vector<2x512xf32>
      %c0_15 = arith.constant 0 : index
      %c0_16 = arith.constant 0 : index
      %19 = vector.load %arg5[%c0_15, %c0_16] : memref<512x4xf32, #tpu.memory_space<vmem>>, vector<512x4xf32>
      %cst_17 = arith.constant dense<0.000000e+00> : vector<2x4xf32>
      %20 = tpu.matmul %18, %19, %cst_17 {dimension_numbers = #tpu.dot_dimension_numbers<[1], [0], [0], [1], [0, 0, 1, 1], [], []>} : vector<2x512xf32>, vector<512x4xf32>, vector<2x4xf32> -> vector<2x4xf32>
      %c0_18 = arith.constant 0 : index
      %c0_19 = arith.constant 0 : index
      %c0_20 = arith.constant 0 : index
      %21 = vector.load %arg6[%c0_18, %c0_19, %c0_20] : memref<1x2x4xf32, #tpu.memory_space<vmem>>, vector<1x2x4xf32>
      %22 = vector.shape_cast %21 : vector<1x2x4xf32> to vector<2x4xf32>
      %23 = vector.shape_cast %20 : vector<2x4xf32> to vector<1x2x4xf32>
      tpu.vector_store %arg6[%c0_18, %c0_19, %c0_20], %23 {strides = array<i32>} : memref<1x2x4xf32, #tpu.memory_space<vmem>>, vector<1x2x4xf32>,
    } else {
    }
    return
  }
  func.func @transform_0(%arg0: i32, %arg1: i32) -> (i32, i32) {
    %c0_i32 = arith.constant 0 : i32
    %c0_i32_0 = arith.constant 0 : i32
    return %c0_i32, %arg1 : i32, i32
  }
  func.func @transform_1(%arg0: i32, %arg1: i32) -> (i32, i32, i32) {
    %c0_i32 = arith.constant 0 : i32
    %c0_i32_0 = arith.constant 0 : i32
    return %arg0, %arg1, %c0_i32 : i32, i32, i32
  }
  func.func @transform_2(%arg0: i32, %arg1: i32) -> (i32, i32) {
    %c0_i32 = arith.constant 0 : i32
    %c0_i32_0 = arith.constant 0 : i32
    return %c0_i32, %arg0 : i32, i32
  }
  func.func @transform_3(%arg0: i32, %arg1: i32) -> (i32, i32) {
    %c0_i32 = arith.constant 0 : i32
    %c0_i32_0 = arith.constant 0 : i32
    return %arg0, %c0_i32 : i32, i32
  }
  func.func @transform_4(%arg0: i32, %arg1: i32) -> (i32, i32, i32) {
    %c0_i32 = arith.constant 0 : i32
    %c0_i32_0 = arith.constant 0 : i32
    %c0_i32_1 = arith.constant 0 : i32
    return %arg0, %c0_i32, %c0_i32_0 : i32, i32, i32
  }
}

</mosaic_0001>

<bundles_post_ra>
// kernel: network_forward.1
= control target key start
LH: loop header
LB: loop body
LE: loop exit
PB: predicated region body
PF: predicated region fallthrough
CT: control target
= control target key end

     0   :  { %s10540_s0 = inlined_call_operand.vmem [shape: bf16[2,6400], index: 0, kind: input, shape index: {}]   ;;  %s10541_s1 = inlined_call_operand.hbm [shape: bf16[2,6400,512], index: 1, kind: input, shape index: {}]   ;;  %s10542_s2 = inlined_call_operand.hbm [shape: f32[1,1024], index: 2, kind: input, shape index: {}]   ;;  %s10543_s3 = inlined_call_operand.vmem [shape: f32[1024,4], index: 3, kind: input, shape index: {}]   ;;  %s10544_s4 = inlined_call_operand.vmem [shape: f32[2,2,4], index: 4, kind: output, shape index: {}]  }
   0x1   :  { %10548 = sst [smem:[#allocation12_spill]] %s10540_s0 }
   0x2   :  { %10549 = sst [smem:[#allocation13_spill]] %s10543_s3 }
   0x3   :  { %10550 = sst [smem:[#allocation14_spill]] %s10544_s4 }
   0x4   :  { %9 = vsyncpa [#allocation4], 0 }
   0x5   :  { %11 = vsyncpa [#allocation4 + $0x1], 0 }
   0x6   :  { %12 = vsyncpa [#allocation6], 0 }
   0x7   :  { %14 = vsyncpa [#allocation6 + $0x1], 0  ;;  %s9187_s15 = smov 0   ;;  %s9189_s16 = smov 0  }
   0x8   :  { %s9191_s17 = smov 0   ;;  %s9193_s18 = smov 0  }
   0x9   :  { %s9195_s19 = smov 0   ;;  %s9197_s20 = smov 0  }
   0xa   :  { %s9199_s21 = smov 0   ;;  %s9201_s22 = smov 0  }
   0xb   :  { %s9203_s23 = smov 0   ;;  %s9205_s24 = smov 0  }
   0xc   :  { %s9207_s25 = smov 0  }
   0xd LB: > { %10551 = sst [smem:[#allocation9_spill]] %s9144_s23  ;;  %s29_s26 = sadd.s32 1, %s9144_s23  ;;  %s9152_s25 = sphi %s9207_s25, %s20_s25   ;;  %s9148_s24 = sphi %s9205_s24, %s10572_s24   ;;  %s9144_s23 = sphi %s9203_s23, %s10563_s23   ;;  %s9140_s22 = sphi %s9201_s22, %s10571_s22   ;;  %s9136_s21 = sphi %s9199_s21, %s10562_s21   ;;  %s9132_s20 = sphi %s9197_s20, %s10570_s20   ;;  %s9128_s19 = sphi %s9195_s19, %s10569_s19   ;;  %s9124_s18 = sphi %s9193_s18, %s10568_s18   ;;  %s9120_s17 = sphi %s9191_s17, %s10567_s17   ;;  %s9116_s16 = sphi %s9189_s16, %s10566_s16   ;;  %s9112_s15 = sphi %s9187_s15, %s10565_s15  }
   0xe   : > { %s32_s27 = sadd.s32 1, %s9148_s24  ;;  %p30_p0 = scmp.ge.s32.totalorder %s29_s26, 2 }
   0xf   : > { %s67_s28 = sadd.s32 1, %s9132_s20  ;;  %p74_p1 = scmp.ne.s32.totalorder %s9132_s20, %s9128_s19 }
  0x10   : > { %p75_p2 = scmp.eq.s32.totalorder %s9152_s25, 0  ;;  %s10574_s26 = smov (%p30_p0, %s29_s26), 0 }
  0x11   : > { %10552 = sst [smem:[#allocation10_spill]] %s10574_s26  ;;  %s10576_s27 = smov (!%p30_p0, %s32_s27), %s9148_s24 }
  0x12   : > { %s63_s29 = ssub.s32 %s9144_s23, %s10574_s26  ;;  %p76_p3 = por %p75_p2, %p74_p1 }
  0x13   : > { %p34_p4 = scmp.ge.s32.totalorder %s10576_s27, 2  ;;  %p80_p5 = scmp.ne.s32.totalorder %s9128_s19, %s9124_s18 }
  0x14   : > { %p7704_p6 = scmp.lt.s32.totalorder %s9152_s25, 4  ;;  %s190_s30 = sand.u32 1, %s9132_s20  }
  0x15   : > { %s10578_s27 = smov (%p34_p4, %s10576_s27), 0  ;;  %s7618_s5 = smul.u32 1600, %s9144_s23 }
  0x16   : > { %10553 = sst [smem:[#allocation11_spill]] %s10578_s27  ;;  %s9264_s6 = ssub.s32 %s9148_s24, %s10578_s27 }
  0x17   : > { %s64_s7 = sor.u32 %s63_s29, %s9264_s6  ;;  %s7690_s8 = smul.u32 6400, %s190_s30 }
  0x18   : > { %p65_p7 = scmp.eq.s32.totalorder %s64_s7, 0  ;;  %s7691_s9 = smul.u32 3200, %s9148_s24 }
  0x19   : > { %p9270_p8 = pnand %p7704_p6, %p76_p3  ;;  %s194_s13 = scalar_lea.vmem [#allocation3], %s7690_s8 }
  0x1a   : > { %s9275_s11 = scalar_select %p65_p7, %s9132_s20, %s67_s28  }
  0x1b   : > { %s201_s12 = sadd.s32 %s7691_s9, %s7618_s5  ;;  %s204_s14 = sshll.u32 %s194_s13, 4  ;;  %s205_s14 = int_to_ptr.vmem [resolvable:$true] %s204_s14 }
  0x1c   : > { %s6804_s26 = sshll.u32 %s201_s12, 6  ;;  %s191_s4 = scalar_lea.sflag [#allocation4], %s190_s30 }
  0x1d   : > { %s203_s29 = scalar_lea.hbm %s10541_s1, %s6804_s26  ;;  %p9004_p9 = pneg %p9270_p8 }
  0x1e   : > { %s9015_s7 = scalar_lea.vmem %s205_s14, 102400  ;;  %s9154_s3 = smov [#allocation3]  }
  0x1f   : > { %p9016_p10 = scmp.ne.s32.totalorder %s205_s14, %s9015_s7  ;;  %s9020_s0 = sshll.u32 %s9154_s3, 4  ;;  %s9021_s0 = int_to_ptr.vmem [resolvable:$false] %s9020_s0 }
  0x20   : > { %s9022_s28 = scalar_lea.vmem %s9021_s0, 204800  ;;  %p9023_p13 = scmp.lt.s32.totalorder %s205_s14, %s9021_s0 }
  0x21   : > { %p9018_p11 = pnand %p9016_p10, %p9004_p9  ;;  %p9024_p0 = scmp.lt.s32.totalorder %s9022_s28, %s9015_s7 }
  0x23   : > { %p9019_p12 = pneg %p9018_p11  ;;  %p9025_p1 = por %p9024_p0, %p9023_p13 }
  0x25   : > { %p9026_p3 = pnand %p9025_p1, %p9019_p12 }
  0x27   : > { %9029 = shalt.err (!%p9026_p3)
}
  0x28   : > { %s9155_s5 = smov 256   ;;  %s9156_s0 = smov 16  }
  0x29   : > { %7700 = dma.hbm_to_vmem [thread:$0]  (!%p9270_p8), %s203_s29, 102400, %s205_s14, %s191_s4, %s9155_s5, %s9155_s5, %s9156_s0  }
  0x2a   : > { %p6808_p4 = scmp.ge.s32.totalorder %s9152_s25, 1  ;;  %p240_p7 = scmp.lt.s32.totalorder %s9152_s25, 5 }
  0x2b   : > { %s6799_s23 = sadd.s32 4294967295, %s9152_s25   ;;  %p91_p11 = scmp.eq.s32.totalorder %s9264_s6, 0 }
  0x2c   : > { %p9286_p9 = pnand %p6808_p4, %p240_p7  ;;  %p81_p10 = scmp.eq.s32.totalorder %s6799_s23, 0 }
  0x2d   : > { %s93_s26 = sadd.s32 1, %s9120_s17  ;;  %p100_p12 = scmp.ne.s32.totalorder %s9120_s17, %s9116_s16 }
  0x2e   : > { %p9298_p13 = por %p81_p10, %p80_p5  ;;  %p106_p0 = scmp.ne.s32.totalorder %s9116_s16, %s9112_s15 }
  0x2f   : > { %s9305_s30 = scalar_select %p91_p11, %s9120_s17, %s93_s26  }
  0x30   : > { %p102_p8 = por %p100_p12, %p75_p2  ;;  %p9309_p1 = por %p106_p0, %p81_p10 }
  0x31   : > { %s214_s8 = sand.u32 1, %s9120_s17   ;;  %s7619_s9 = sshll.u32 %s9148_s24, 6 }
  0x32   : > { %s6805_s10 = sshll.u32 %s214_s8, 2  ;;  %s224_s18 = scalar_lea.hbm %s10542_s2, %s7619_s9 }
  0x33   : > { %s218_s13 = scalar_lea.vmem [#allocation5], %s6805_s10  ;;  %p9320_p5 = pnand %p7704_p6, %p102_p8 }
  0x34   : > { %s226_s14 = sshll.u32 %s218_s13, 4  ;;  %s215_s29 = scalar_lea.sflag [#allocation6], %s214_s8  ;;  %s227_s14 = int_to_ptr.vmem [resolvable:$true] %s226_s14 }
  0x35   : > { %p9032_p2 = pneg %p9320_p5  ;;  %s9043_s7 = scalar_lea.vmem %s227_s14, 64 }
  0x36   : > { %p9044_p3 = scmp.ne.s32.totalorder %s227_s14, %s9043_s7  ;;  %s9157_s28 = smov [#allocation5]  }
  0x37   : > { %s9048_s5 = sshll.u32 %s9157_s28, 4  ;;  %s9049_s5 = int_to_ptr.vmem [resolvable:$false] %s9048_s5 }
  0x38   : > { %p9046_p4 = pnand %p9044_p3, %p9032_p2  ;;  %s9050_s0 = scalar_lea.vmem %s9049_s5, 128 }
  0x39   : > { %p9051_p10 = scmp.lt.s32.totalorder %s227_s14, %s9049_s5  ;;  %p9052_p11 = scmp.lt.s32.totalorder %s9050_s0, %s9043_s7 }
  0x3a   : > { %p9047_p7 = pneg %p9046_p4 }
  0x3b   : > { %p9053_p12 = por %p9052_p11, %p9051_p10 }
  0x3d   : > { %p9054_p6 = pnand %p9053_p12, %p9047_p7 }
  0x3f   : > { %9057 = shalt.err (!%p9054_p6)
}
  0x40   : > { %7703 = dma.hbm_to_vmem [thread:$0]  (!%p9320_p5), %s224_s18, 64, %s227_s14, %s215_s29  }
  0x41   : > { %244 = sbr.rel (%p9286_p9) target bundleno = 1336 (0x538), region = 36  ;;  %s246_s23 = sand.u32 (!%p9286_p9), 1, %s9128_s19  }
  0x42   : > { %s7692_s26 = smul.u32 (!%p9286_p9), 6400, %s246_s23  ;;  %s247_s8 = scalar_lea.sflag (!%p9286_p9), [#allocation4], %s246_s23 }
  0x44   : > { %s9331_s9 = scalar_lea.vmem (!%p9286_p9), [#allocation3], %s7692_s26 }
  0x46   : > { %9103 = dma.done.wait (%p9298_p13), %s247_s8, 102400  }
  0x47   : > { %9105 = vsyncadd (%p9298_p13), %s247_s8, 4294864896  ;;  %s255_s10 = sand.u32 1, %s9116_s16  }
  0x48   : > { %s9338_s6 = sshll.u32 %s255_s10, 2  ;;  %s256_s3 = scalar_lea.sflag [#allocation6], %s255_s10 }
  0x49   : > { %s259_s12 = scalar_lea.vmem [#allocation5], %s9338_s6 }
  0x4a   : > { %9107 = dma.done.wait (%p9309_p1), %s256_s3, 64  }
  0x4b   : > { %9109 = vsyncadd (%p9309_p1), %s256_s3, 4294967232  ;;  %s297_s18 = smul.u32 25, %s9136_s21  ;;  %s6810_s27 = sshll.u32 %s9140_s22, 6 }
  0x4c   : > { %p305_p9 = scmp.lt.s32.totalorder %s6810_s27, 127  ;;  %p310_p0 = scmp.lt.s32.totalorder %s9140_s22, 1 }
  0x4d   : > { %p298_p13 = scmp.lt.s32.totalorder %s297_s18, 49  ;;  %s10559_s29 = sld [smem:[#allocation12_spill]] }
  0x4e   : > { %s10580_s27 = smov (!%p305_p9, %s6810_s27), 127  ;;  %s10560_s5 = sld [smem:[#allocation13_spill]] }
  0x4f   : > { %s10582_s18 = smov (!%p298_p13, %s297_s18), 49  ;;  %s6811_s13 = sshll.u32 %s10580_s27, 3 }
  0x50   : > { %s10584_s22 = smov (!%p310_p0, %s9140_s22), 1  ;;  %s10561_s10 = sld [smem:[#allocation14_spill]] }
  0x51   : > { %s6812_s23 = sshll.u32 %s10584_s22, 1  ;;  %p6813_p8 = scmp.ne.s32.totalorder %s9136_s21, 0 }
  0x53   : > { %s9351_s7 = scalar_lea.vmem %s10559_s29, %s10582_s18  ;;  %318 = sbr.rel (%p6813_p8) target bundleno = 90 (0x5a), region = 48 }
  0x54   : > { %s9356_s0 = scalar_lea.vmem %s10560_s5, %s6811_s13 }
  0x56   : > { %s9362_s3 = scalar_lea.vmem %s10561_s10, %s6812_s23 }
  0x58   : > { %v9158_v0 = vmov 0.0  }
  0x59   : > { %319 = vst [vmem:[#allocation2] sm:$0xff] %v9158_v0 }
  0x5a PF: > { %v7799_v1 = vld [vmem:[%s9331_s9 + $0xe4] ss:$16 sps:$4 sm:$0xff]   ;;  %v7803_v3 = vld [vmem:[%s9331_s9 + $0xe0] ss:$16 sps:$4 sm:$0xff]   ;;  %v9159_v37 = vmov 1966171168   ;;  %v1133_v39 = vlaneseq }
  0x5b   : > { %v7801_v2 = vld [vmem:[%s9331_s9 + $0x2e4] ss:$16 sps:$4 sm:$0xff]   ;;  %5315 = vmatprep.subr.bf16.mxu0 %v7799_v1  ;;  %v7804_v4 = vld [vmem:[%s9331_s9 + $0x2e0] ss:$16 sps:$4 sm:$0xff]   ;;  %v1131_v38 = vunpack.c.l.s4 %v9159_v37  ;;  %v321_v53 = vld [vmem:[%s9351_s7] sm:$0xff]  ;;  %p7615_p1 = scmp.ne.s32.totalorder %s9136_s21, 1 }
  0x5c   : > { %5356 = vmatprep.subr.bf16.mxu1 %v7801_v2  ;;  %v7805_v5 = vld [vmem:[%s9331_s9 + $0xc4] ss:$16 sps:$4 sm:$0xff]   ;;  %5316 = vmatpush1.bf16.msra.mxu0 %v7803_v3  ;;  %v7809_v7 = vld [vmem:[%s9331_s9 + $0xc0] ss:$16 sps:$4 sm:$0xff]   ;;  %v9404_v44 = vshrl.u32 %v1133_v39, 7  ;;  %v1129_v2 = vcombine.high %v321_v53, %v321_v53 }
  0x5d   : > { %5357 = vmatpush1.bf16.msra.mxu1 %v7804_v4  ;;  %v7807_v6 = vld [vmem:[%s9331_s9 + $0x2c4] ss:$16 sps:$4 sm:$0xff]   ;;  %5317 = vmatprep.subr.bf16.mxu0 %v7805_v5  ;;  %v7810_v8 = vld [vmem:[%s9331_s9 + $0x2c0] ss:$16 sps:$4 sm:$0xff]   ;;  %v1132_v43 = vunpack.c.0.s8 %v1131_v38 }
  0x5e   : > { %5358 = vmatprep.subr.bf16.mxu1 %v7807_v6  ;;  %v7811_v9 = vld [vmem:[%s9331_s9 + $0xa4] ss:$16 sps:$4 sm:$0xff]   ;;  %v7815_v11 = vld [vmem:[%s9331_s9 + $0xa0] ss:$16 sps:$4 sm:$0xff]  }
  0x5f   : > { %v7813_v10 = vld [vmem:[%s9331_s9 + $0x2a4] ss:$16 sps:$4 sm:$0xff]   ;;  %v7816_v12 = vld [vmem:[%s9331_s9 + $0x2a0] ss:$16 sps:$4 sm:$0xff]   ;;  %v9412_v50 = vsub.s32 %v1132_v43, %v9404_v44 }
  0x60   : > { %5318 = vmatpush1.bf16.msra.mxu0 %v7809_v7  ;;  %v7817_v13 = vld [vmem:[%s9331_s9 + $0x84] ss:$16 sps:$4 sm:$0xff]   ;;  %v7821_v15 = vld [vmem:[%s9331_s9 + $0x80] ss:$16 sps:$4 sm:$0xff]  }
  0x61   : > { %5359 = vmatpush1.bf16.msra.mxu1 %v7810_v8  ;;  %5319 = vmatprep.subr.bf16.mxu0 %v7811_v9  ;;  %v7819_v14 = vld [vmem:[%s9331_s9 + $0x284] ss:$16 sps:$4 sm:$0xff]   ;;  %v7822_v16 = vld [vmem:[%s9331_s9 + $0x280] ss:$16 sps:$4 sm:$0xff]   ;;  %v1136_v55 = vrot.slane %v321_v53, %v9412_v50  ;;  %v9440_v7 = vrot.slane %v1129_v2, %v9412_v50 }
  0x62   : > { %5360 = vmatprep.subr.bf16.mxu1 %v7813_v10  ;;  %v7823_v17 = vld [vmem:[%s9331_s9 + $0x64] ss:$16 sps:$4 sm:$0xff]   ;;  %v7827_v19 = vld [vmem:[%s9331_s9 + $0x60] ss:$16 sps:$4 sm:$0xff]  }
  0x63   : > { %v7825_v18 = vld [vmem:[%s9331_s9 + $0x264] ss:$16 sps:$4 sm:$0xff]   ;;  %v7828_v20 = vld [vmem:[%s9331_s9 + $0x260] ss:$16 sps:$4 sm:$0xff]   ;;  %v1144_v59 = vcombine.high %v1136_v55, %v1136_v55 }
  0x64   : > { %5320 = vmatpush1.bf16.msra.mxu0 %v7815_v11  ;;  %v7829_v21 = vld [vmem:[%s9331_s9 + $0x44] ss:$16 sps:$4 sm:$0xff]   ;;  %v7833_v23 = vld [vmem:[%s9331_s9 + $0x40] ss:$16 sps:$4 sm:$0xff]  }
  0x65   : > { %5361 = vmatpush1.bf16.msra.mxu1 %v7816_v12  ;;  %5321 = vmatprep.subr.bf16.mxu0 %v7817_v13  ;;  %v7831_v22 = vld [vmem:[%s9331_s9 + $0x244] ss:$16 sps:$4 sm:$0xff]   ;;  %v7834_v24 = vld [vmem:[%s9331_s9 + $0x240] ss:$16 sps:$4 sm:$0xff]   ;;  %v9424_v61 = vrot.slane %v1144_v59, %v9412_v50  ;;  %v1145_v12 = vcombine.high %v9440_v7, %v9440_v7 }
  0x66   : > { %5362 = vmatprep.subr.bf16.mxu1 %v7819_v14  ;;  %v7835_v25 = vld [vmem:[%s9331_s9 + $0x24] ss:$16 sps:$4 sm:$0xff]   ;;  %v7839_v27 = vld [vmem:[%s9331_s9 + $0x20] ss:$16 sps:$4 sm:$0xff]   ;;  %v9450_v14 = vrot.slane %v1136_v55, %v9412_v50 }
  0x67   : > { %v7837_v26 = vld [vmem:[%s9331_s9 + $0x224] ss:$16 sps:$4 sm:$0xff]   ;;  %v7840_v28 = vld [vmem:[%s9331_s9 + $0x220] ss:$16 sps:$4 sm:$0xff]   ;;  %v9431_v1 = vcombine.high %v9424_v61, %v9424_v61  ;;  %5347 = vmatprep.mubr.bf16.mxu0 %v9424_v61 }
  0x68   : > { %5322 = vmatpush1.bf16.msra.mxu0 %v7821_v15  ;;  %v7841_v29 = vld [vmem:[%s9331_s9 + $0x4] ss:$16 sps:$4 sm:$0xff]   ;;  %v7845_v31 = vld [vmem:[%s9331_s9] ss:$16 sps:$4 sm:$0xff]  }
  0x69   : > { %5363 = vmatpush1.bf16.msra.mxu1 %v7822_v16  ;;  %5323 = vmatprep.subr.bf16.mxu0 %v7823_v17  ;;  %v7843_v30 = vld [vmem:[%s9331_s9 + $0x204] ss:$16 sps:$4 sm:$0xff]   ;;  %v7846_v32 = vld [vmem:[%s9331_s9 + $0x200] ss:$16 sps:$4 sm:$0xff]  }
  0x6a   : > { %5364 = vmatprep.subr.bf16.mxu1 %v7825_v18  ;;  %v7847_v33 = vld [vmem:[%s9331_s9 + $0x1e4] ss:$16 sps:$4 sm:$0xff]   ;;  %v7851_v35 = vld [vmem:[%s9331_s9 + $0x1e0] ss:$16 sps:$4 sm:$0xff]   ;;  %5388 = vmatprep.mubr.bf16.mxu1 %v9431_v1  ;;  %v9456_v18 = vrot.slane %v1145_v12, %v9412_v50 }
  0x6b   : > { %v7849_v34 = vld [vmem:[%s9331_s9 + $0x3e4] ss:$16 sps:$4 sm:$0xff]   ;;  %v7852_v36 = vld [vmem:[%s9331_s9 + $0x3e0] ss:$16 sps:$4 sm:$0xff]  }
  0x6c   : > { %5324 = vmatpush1.bf16.msra.mxu0 %v7827_v19  ;;  %v7853_v40 = vld [vmem:[%s9331_s9 + $0x1c4] ss:$16 sps:$4 sm:$0xff]   ;;  %v7857_v42 = vld [vmem:[%s9331_s9 + $0x1c0] ss:$16 sps:$4 sm:$0xff]   ;;  %v9460_v19 = vcombine.high %v9450_v14, %v9450_v14 }
  0x6d   : > { %5365 = vmatpush1.bf16.msra.mxu1 %v7828_v20  ;;  %5325 = vmatprep.subr.bf16.mxu0 %v7829_v21  ;;  %v7855_v41 = vld [vmem:[%s9331_s9 + $0x3c4] ss:$16 sps:$4 sm:$0xff]   ;;  %v7858_v45 = vld [vmem:[%s9331_s9 + $0x3c0] ss:$16 sps:$4 sm:$0xff]  }
  0x6e   : > { %5366 = vmatprep.subr.bf16.mxu1 %v7831_v22  ;;  %v7859_v46 = vld [vmem:[%s9331_s9 + $0x1a4] ss:$16 sps:$4 sm:$0xff]   ;;  %v7863_v48 = vld [vmem:[%s9331_s9 + $0x1a0] ss:$16 sps:$4 sm:$0xff]  }
  0x6f   : > { %v7861_v47 = vld [vmem:[%s9331_s9 + $0x3a4] ss:$16 sps:$4 sm:$0xff]   ;;  %v7864_v49 = vld [vmem:[%s9331_s9 + $0x3a0] ss:$16 sps:$4 sm:$0xff]  }
  0x70   : > { %5326 = vmatpush1.bf16.msra.mxu0 %v7833_v23  ;;  %v7865_v51 = vld [vmem:[%s9331_s9 + $0x184] ss:$16 sps:$4 sm:$0xff]   ;;  %v7869_v54 = vld [vmem:[%s9331_s9 + $0x180] ss:$16 sps:$4 sm:$0xff]  }
  0x71   : > { %5367 = vmatpush1.bf16.msra.mxu1 %v7834_v24  ;;  %5327 = vmatprep.subr.bf16.mxu0 %v7835_v25  ;;  %v7867_v52 = vld [vmem:[%s9331_s9 + $0x384] ss:$16 sps:$4 sm:$0xff]   ;;  %v7870_v56 = vld [vmem:[%s9331_s9 + $0x380] ss:$16 sps:$4 sm:$0xff]   ;;  %v9468_v24 = vcombine.high %v9456_v18, %v9456_v18 }
  0x72   : > { %5368 = vmatprep.subr.bf16.mxu1 %v7837_v26  ;;  %v7871_v57 = vld [vmem:[%s9331_s9 + $0x164] ss:$16 sps:$4 sm:$0xff]   ;;  %v7875_v60 = vld [vmem:[%s9331_s9 + $0x160] ss:$16 sps:$4 sm:$0xff]  }
  0x73   : > { %v7873_v58 = vld [vmem:[%s9331_s9 + $0x364] ss:$16 sps:$4 sm:$0xff]   ;;  %v7876_v62 = vld [vmem:[%s9331_s9 + $0x360] ss:$16 sps:$4 sm:$0xff]  }
  0x74   : > { %5328 = vmatpush1.bf16.msra.mxu0 %v7839_v27  ;;  %v7877_v63 = vld [vmem:[%s9331_s9 + $0x144] ss:$16 sps:$4 sm:$0xff]   ;;  %v7881_v3 = vld [vmem:[%s9331_s9 + $0x140] ss:$16 sps:$4 sm:$0xff]  }
  0x75   : > { %5369 = vmatpush1.bf16.msra.mxu1 %v7840_v28  ;;  %5329 = vmatprep.subr.bf16.mxu0 %v7841_v29  ;;  %v7879_v0 = vld [vmem:[%s9331_s9 + $0x344] ss:$16 sps:$4 sm:$0xff]   ;;  %v7882_v4 = vld [vmem:[%s9331_s9 + $0x340] ss:$16 sps:$4 sm:$0xff]  }
  0x76   : > { %5370 = vmatprep.subr.bf16.mxu1 %v7843_v30  ;;  %v7883_v5 = vld [vmem:[%s9331_s9 + $0x124] ss:$16 sps:$4 sm:$0xff]   ;;  %v7887_v8 = vld [vmem:[%s9331_s9 + $0x120] ss:$16 sps:$4 sm:$0xff]  }
  0x77   : > { %v7885_v6 = vld [vmem:[%s9331_s9 + $0x324] ss:$16 sps:$4 sm:$0xff]   ;;  %v7888_v9 = vld [vmem:[%s9331_s9 + $0x320] ss:$16 sps:$4 sm:$0xff]  }
  0x78   : > { %5330 = vmatpush1.bf16.msra.mxu0 %v7845_v31  ;;  %v7889_v10 = vld [vmem:[%s9331_s9 + $0x104] ss:$16 sps:$4 sm:$0xff]   ;;  %v7893_v13 = vld [vmem:[%s9331_s9 + $0x100] ss:$16 sps:$4 sm:$0xff]  }
  0x79   : > { %5371 = vmatpush1.bf16.msra.mxu1 %v7846_v32  ;;  %5331 = vmatprep.subr.bf16.mxu0 %v7847_v33  ;;  %v7891_v11 = vld [vmem:[%s9331_s9 + $0x304] ss:$16 sps:$4 sm:$0xff]   ;;  %v7894_v15 = vld [vmem:[%s9331_s9 + $0x300] ss:$16 sps:$4 sm:$0xff]  }
  0x7a   : > { %5372 = vmatprep.subr.bf16.mxu1 %v7849_v34  ;;  %v7897_v16 = vld [vmem:[%s9331_s9 + $0x4e4] ss:$16 sps:$4 sm:$0xff]   ;;  %v7895_v20 = vld [vmem:[%s9331_s9 + $0x4e0] ss:$16 sps:$4 sm:$0xff]  }
  0x7b   : > { %v7900_v17 = vld [vmem:[%s9331_s9 + $0x6e4] ss:$16 sps:$4 sm:$0xff]   ;;  %v7898_v21 = vld [vmem:[%s9331_s9 + $0x6e0] ss:$16 sps:$4 sm:$0xff]  }
  0x7c   : > { %5332 = vmatpush2.bf16.msra.mxu0 %v7851_v35  ;;  %v7903_v22 = vld [vmem:[%s9331_s9 + $0x4c4] ss:$16 sps:$4 sm:$0xff]   ;;  %v7901_v25 = vld [vmem:[%s9331_s9 + $0x4c0] ss:$16 sps:$4 sm:$0xff]  }
  0x7d   : > { %5373 = vmatpush2.bf16.msra.mxu1 %v7852_v36  ;;  %5333 = vmatprep.subr.bf16.mxu0 %v7853_v40  ;;  %v7906_v23 = vld [vmem:[%s9331_s9 + $0x6c4] ss:$16 sps:$4 sm:$0xff]   ;;  %v7904_v26 = vld [vmem:[%s9331_s9 + $0x6c0] ss:$16 sps:$4 sm:$0xff]  }
  0x7e   : > { %5374 = vmatprep.subr.bf16.mxu1 %v7855_v41  ;;  %v7909_v27 = vld [vmem:[%s9331_s9 + $0x4a4] ss:$16 sps:$4 sm:$0xff]   ;;  %v7907_v29 = vld [vmem:[%s9331_s9 + $0x4a0] ss:$16 sps:$4 sm:$0xff]  }
  0x7f   : > { %v7912_v28 = vld [vmem:[%s9331_s9 + $0x6a4] ss:$16 sps:$4 sm:$0xff]   ;;  %v7910_v30 = vld [vmem:[%s9331_s9 + $0x6a0] ss:$16 sps:$4 sm:$0xff]  }
  0x80   : > { %5334 = vmatpush2.bf16.msra.mxu0 %v7857_v42  ;;  %v7915_v31 = vld [vmem:[%s9331_s9 + $0x484] ss:$16 sps:$4 sm:$0xff]   ;;  %v7913_v33 = vld [vmem:[%s9331_s9 + $0x480] ss:$16 sps:$4 sm:$0xff]  }
  0x81   : > { %5375 = vmatpush2.bf16.msra.mxu1 %v7858_v45  ;;  %5335 = vmatprep.subr.bf16.mxu0 %v7859_v46  ;;  %v7918_v32 = vld [vmem:[%s9331_s9 + $0x684] ss:$16 sps:$4 sm:$0xff]   ;;  %v7916_v34 = vld [vmem:[%s9331_s9 + $0x680] ss:$16 sps:$4 sm:$0xff]  }
  0x82   : > { %5376 = vmatprep.subr.bf16.mxu1 %v7861_v47  ;;  %v7921_v35 = vld [vmem:[%s9331_s9 + $0x464] ss:$16 sps:$4 sm:$0xff]   ;;  %v7919_v37 = vld [vmem:[%s9331_s9 + $0x460] ss:$16 sps:$4 sm:$0xff]  }
  0x83   : > { %v7924_v36 = vld [vmem:[%s9331_s9 + $0x664] ss:$16 sps:$4 sm:$0xff]   ;;  %v7922_v38 = vld [vmem:[%s9331_s9 + $0x660] ss:$16 sps:$4 sm:$0xff]  }
  0x84   : > { %5336 = vmatpush2.bf16.msra.mxu0 %v7863_v48  ;;  %v7927_v39 = vld [vmem:[%s9331_s9 + $0x444] ss:$16 sps:$4 sm:$0xff]   ;;  %v7925_v41 = vld [vmem:[%s9331_s9 + $0x440] ss:$16 sps:$4 sm:$0xff]  }
  0x85   : > { %5377 = vmatpush2.bf16.msra.mxu1 %v7864_v49  ;;  %5337 = vmatprep.subr.bf16.mxu0 %v7865_v51  ;;  %v7930_v40 = vld [vmem:[%s9331_s9 + $0x644] ss:$16 sps:$4 sm:$0xff]   ;;  %v7928_v42 = vld [vmem:[%s9331_s9 + $0x640] ss:$16 sps:$4 sm:$0xff]  }
  0x86   : > { %5378 = vmatprep.subr.bf16.mxu1 %v7867_v52  ;;  %v7933_v43 = vld [vmem:[%s9331_s9 + $0x424] ss:$16 sps:$4 sm:$0xff]   ;;  %v7931_v46 = vld [vmem:[%s9331_s9 + $0x420] ss:$16 sps:$4 sm:$0xff]  }
  0x87   : > { %v7936_v45 = vld [vmem:[%s9331_s9 + $0x624] ss:$16 sps:$4 sm:$0xff]   ;;  %v7934_v47 = vld [vmem:[%s9331_s9 + $0x620] ss:$16 sps:$4 sm:$0xff]  }
  0x88   : > { %5338 = vmatpush2.bf16.msra.mxu0 %v7869_v54  ;;  %v7939_v48 = vld [vmem:[%s9331_s9 + $0x404] ss:$16 sps:$4 sm:$0xff]   ;;  %v7937_v51 = vld [vmem:[%s9331_s9 + $0x400] ss:$16 sps:$4 sm:$0xff]  }
  0x89   : > { %5379 = vmatpush2.bf16.msra.mxu1 %v7870_v56  ;;  %5339 = vmatprep.subr.bf16.mxu0 %v7871_v57  ;;  %v7942_v49 = vld [vmem:[%s9331_s9 + $0x604] ss:$16 sps:$4 sm:$0xff]   ;;  %v7940_v52 = vld [vmem:[%s9331_s9 + $0x600] ss:$16 sps:$4 sm:$0xff]  }
  0x8a   : > { %5380 = vmatprep.subr.bf16.mxu1 %v7873_v58  ;;  %v7945_v53 = vld [vmem:[%s9331_s9 + $0x5e4] ss:$16 sps:$4 sm:$0xff]   ;;  %v7943_v55 = vld [vmem:[%s9331_s9 + $0x5e0] ss:$16 sps:$4 sm:$0xff]  }
  0x8b   : > { %v7948_v54 = vld [vmem:[%s9331_s9 + $0x7e4] ss:$16 sps:$4 sm:$0xff]   ;;  %v7946_v56 = vld [vmem:[%s9331_s9 + $0x7e0] ss:$16 sps:$4 sm:$0xff]  }
  0x8c   : > { %5340 = vmatpush2.bf16.msra.mxu0 %v7875_v60  ;;  %v7951_v57 = vld [vmem:[%s9331_s9 + $0x5c4] ss:$16 sps:$4 sm:$0xff]   ;;  %v7949_v59 = vld [vmem:[%s9331_s9 + $0x5c0] ss:$16 sps:$4 sm:$0xff]  }
  0x8d   : > { %5381 = vmatpush2.bf16.msra.mxu1 %v7876_v62  ;;  %5341 = vmatprep.subr.bf16.mxu0 %v7877_v63  ;;  %v7954_v58 = vld [vmem:[%s9331_s9 + $0x7c4] ss:$16 sps:$4 sm:$0xff]   ;;  %v7952_v60 = vld [vmem:[%s9331_s9 + $0x7c0] ss:$16 sps:$4 sm:$0xff]  }
  0x8e   : > { %5382 = vmatprep.subr.bf16.mxu1 %v7879_v0  ;;  %v7957_v62 = vld [vmem:[%s9331_s9 + $0x5a4] ss:$16 sps:$4 sm:$0xff]   ;;  %v7955_v0 = vld [vmem:[%s9331_s9 + $0x5a0] ss:$16 sps:$4 sm:$0xff]  }
  0x8f   : > { %v7960_v63 = vld [vmem:[%s9331_s9 + $0x7a4] ss:$16 sps:$4 sm:$0xff]   ;;  %v7958_v2 = vld [vmem:[%s9331_s9 + $0x7a0] ss:$16 sps:$4 sm:$0xff]  }
  0x90   : > { %5342 = vmatpush2.bf16.msra.mxu0 %v7881_v3  ;;  %v7963_v3 = vld [vmem:[%s9331_s9 + $0x584] ss:$16 sps:$4 sm:$0xff]  }
  0x91   : > { %5383 = vmatpush2.bf16.msra.mxu1 %v7882_v4  ;;  %5343 = vmatprep.subr.bf16.mxu0 %v7883_v5  ;;  %v7966_v4 = vld [vmem:[%s9331_s9 + $0x784] ss:$16 sps:$4 sm:$0xff]   ;;  %v7961_v5 = vld [vmem:[%s9331_s9 + $0x580] ss:$16 sps:$4 sm:$0xff]  }
  0x92   : > { %5384 = vmatprep.subr.bf16.mxu1 %v7885_v6  ;;  %v7964_v6 = vld [vmem:[%s9331_s9 + $0x780] ss:$16 sps:$4 sm:$0xff]   ;;  %v7975_v12 = vld [vmem:[%s9331_s9 + $0x544] ss:$16 sps:$4 sm:$0xff]  }
  0x94   : > { %5344 = vmatpush2.bf16.msra.mxu0 %v7887_v8  ;;  %v7969_v8 = vld [vmem:[%s9331_s9 + $0x564] ss:$16 sps:$4 sm:$0xff]  }
  0x95   : > { %5385 = vmatpush2.bf16.msra.mxu1 %v7888_v9  ;;  %5345 = vmatprep.subr.bf16.mxu0 %v7889_v10  ;;  %v7972_v9 = vld [vmem:[%s9331_s9 + $0x764] ss:$16 sps:$4 sm:$0xff]   ;;  %v7967_v10 = vld [vmem:[%s9331_s9 + $0x560] ss:$16 sps:$4 sm:$0xff]  }
  0x96   : > { %5386 = vmatprep.subr.bf16.mxu1 %v7891_v11  ;;  %v7970_v11 = vld [vmem:[%s9331_s9 + $0x760] ss:$16 sps:$4 sm:$0xff]  }
  0x98   : > { %5346 = vmatpush2.bf16.msra.mxu0 %v7893_v13  ;;  %v7978_v13 = vld [vmem:[%s9331_s9 + $0x744] ss:$16 sps:$4 sm:$0xff]  }
  0x99   : > { %5387 = vmatpush2.bf16.msra.mxu1 %v7894_v15  ;;  %5397 = vmatprep.subr.bf16.mxu0 %v7897_v16  ;;  %v7973_v15 = vld [vmem:[%s9331_s9 + $0x540] ss:$16 sps:$4 sm:$0xff]  }
  0x9a   : > { %5438 = vmatprep.subr.bf16.mxu1 %v7900_v17  ;;  %v7976_v16 = vld [vmem:[%s9331_s9 + $0x740] ss:$16 sps:$4 sm:$0xff]   ;;  %v7981_v17 = vld [vmem:[%s9331_s9 + $0x524] ss:$16 sps:$4 sm:$0xff]  }
  0x9b   : > { %5348 = vmatmul.mubr.bf16.vlgmr.msra.gmra.mxu0 %v9450_v14 }
  0x9c   : > { %5389 = vmatmul.mubr.bf16.vlgmr.msra.gmra.mxu1 %v9460_v19  ;;  %5398 = vmatpush1.bf16.msra.mxu0 %v7895_v20  ;;  %v7984_v20 = vld [vmem:[%s9331_s9 + $0x724] ss:$16 sps:$4 sm:$0xff]  }
  0x9d   : > { %5439 = vmatpush1.bf16.msra.mxu1 %v7898_v21  ;;  %5399 = vmatprep.subr.bf16.mxu0 %v7903_v22  ;;  %v7979_v21 = vld [vmem:[%s9331_s9 + $0x520] ss:$16 sps:$4 sm:$0xff]  }
  0x9e   : > { %5440 = vmatprep.subr.bf16.mxu1 %v7906_v23  ;;  %5429 = vmatprep.mubr.bf16.mxu0 %v9456_v18  ;;  %v7982_v22 = vld [vmem:[%s9331_s9 + $0x720] ss:$16 sps:$4 sm:$0xff]   ;;  %v7987_v23 = vld [vmem:[%s9331_s9 + $0x504] ss:$16 sps:$4 sm:$0xff]  }
  0x9f   : > { %5470 = vmatprep.mubr.bf16.mxu1 %v9468_v24 }
  0xa0   : > { %5400 = vmatpush1.bf16.msra.mxu0 %v7901_v25  ;;  %v7990_v25 = vld [vmem:[%s9331_s9 + $0x704] ss:$16 sps:$4 sm:$0xff]  }
  0xa1   : > { %5441 = vmatpush1.bf16.msra.mxu1 %v7904_v26  ;;  %5401 = vmatprep.subr.bf16.mxu0 %v7909_v27  ;;  %v7985_v26 = vld [vmem:[%s9331_s9 + $0x500] ss:$16 sps:$4 sm:$0xff]   ;;  %v9533_v27 = vrot.slane %v9440_v7, %v9412_v50 }
  0xa2   : > { %5442 = vmatprep.subr.bf16.mxu1 %v7912_v28  ;;  %v7988_v28 = vld [vmem:[%s9331_s9 + $0x700] ss:$16 sps:$4 sm:$0xff]  }
  0xa3   : > { %v7995_v7 = vld [vmem:[%s9331_s9 + $0xae0] ss:$16 sps:$4 sm:$0xff]  }
  0xa4   : > { %5402 = vmatpush1.bf16.msra.mxu0 %v7907_v29  ;;  %v7994_v29 = vld [vmem:[%s9331_s9 + $0x8e4] ss:$16 sps:$4 sm:$0xff]  }
  0xa5   : > { %5443 = vmatpush1.bf16.msra.mxu1 %v7910_v30  ;;  %5403 = vmatprep.subr.bf16.mxu0 %v7915_v31  ;;  %v7997_v30 = vld [vmem:[%s9331_s9 + $0xae4] ss:$16 sps:$4 sm:$0xff]   ;;  %v9540_v31 = vcombine.high %v9533_v27, %v9533_v27 }
  0xa6   : > { %5444 = vmatprep.subr.bf16.mxu1 %v7918_v32  ;;  %v7992_v32 = vld [vmem:[%s9331_s9 + $0x8e0] ss:$16 sps:$4 sm:$0xff]  }
  0xa8   : > { %5404 = vmatpush1.bf16.msra.mxu0 %v7913_v33  ;;  %v9545_v33 = vld [vmem:[%s9351_s7 + $0x8] sm:$0xff] }
  0xa9   : > { %5445 = vmatpush1.bf16.msra.mxu1 %v7916_v34  ;;  %5405 = vmatprep.subr.bf16.mxu0 %v7921_v35  ;;  %v8000_v34 = vld [vmem:[%s9331_s9 + $0x8c4] ss:$16 sps:$4 sm:$0xff]  }
  0xaa   : > { %5446 = vmatprep.subr.bf16.mxu1 %v7924_v36  ;;  %v8003_v35 = vld [vmem:[%s9331_s9 + $0xac4] ss:$16 sps:$4 sm:$0xff]   ;;  %v9551_v36 = vrot.slane %v9545_v33, %v9412_v50 }
  0xac   : > { %5406 = vmatpush1.bf16.msra.mxu0 %v7919_v37  ;;  %v1193_v37 = vcombine.high %v9551_v36, %v9551_v36 }
  0xad   : > { %5447 = vmatpush1.bf16.msra.mxu1 %v7922_v38  ;;  %5407 = vmatprep.subr.bf16.mxu0 %v7927_v39  ;;  %v7998_v38 = vld [vmem:[%s9331_s9 + $0x8c0] ss:$16 sps:$4 sm:$0xff]  }
  0xae   : > { %5448 = vmatprep.subr.bf16.mxu1 %v7930_v40  ;;  %v8001_v39 = vld [vmem:[%s9331_s9 + $0xac0] ss:$16 sps:$4 sm:$0xff]   ;;  %v8006_v40 = vld [vmem:[%s9331_s9 + $0x8a4] ss:$16 sps:$4 sm:$0xff]  }
  0xb0   : > { %5408 = vmatpush1.bf16.msra.mxu0 %v7925_v41  ;;  %v8009_v41 = vld [vmem:[%s9331_s9 + $0xaa4] ss:$16 sps:$4 sm:$0xff]  }
  0xb1   : > { %5449 = vmatpush1.bf16.msra.mxu1 %v7928_v42  ;;  %5409 = vmatprep.subr.bf16.mxu0 %v7933_v43  ;;  %v9562_v42 = vrot.slane %v1193_v37, %v9412_v50  ;;  %v8070_v37 = vld [vmem:[%s9331_s9 + $0x940] ss:$16 sps:$4 sm:$0xff]  }
  0xb2   : > { %5450 = vmatprep.subr.bf16.mxu1 %v7936_v45  ;;  %v8004_v45 = vld [vmem:[%s9331_s9 + $0x8a0] ss:$16 sps:$4 sm:$0xff]  }
  0xb3   : > { %v9567_v43 = vcombine.high %v9562_v42, %v9562_v42 }
  0xb4   : > { %5410 = vmatpush1.bf16.msra.mxu0 %v7931_v46  ;;  %v8007_v46 = vld [vmem:[%s9331_s9 + $0xaa0] ss:$16 sps:$4 sm:$0xff]  }
  0xb5   : > { %5451 = vmatpush1.bf16.msra.mxu1 %v7934_v47  ;;  %5411 = vmatprep.subr.bf16.mxu0 %v7939_v48  ;;  %v8012_v47 = vld [vmem:[%s9331_s9 + $0x884] ss:$16 sps:$4 sm:$0xff]  }
  0xb6   : > { %5452 = vmatprep.subr.bf16.mxu1 %v7942_v49  ;;  %v8015_v48 = vld [vmem:[%s9331_s9 + $0xa84] ss:$16 sps:$4 sm:$0xff]   ;;  %v8010_v49 = vld [vmem:[%s9331_s9 + $0x880] ss:$16 sps:$4 sm:$0xff]  }
  0xb8   : > { %5412 = vmatpush1.bf16.msra.mxu0 %v7937_v51  ;;  %v8013_v51 = vld [vmem:[%s9331_s9 + $0xa80] ss:$16 sps:$4 sm:$0xff]  }
  0xb9   : > { %5453 = vmatpush1.bf16.msra.mxu1 %v7940_v52  ;;  %5413 = vmatprep.subr.bf16.mxu0 %v7945_v53  ;;  %v8018_v52 = vld [vmem:[%s9331_s9 + $0x864] ss:$16 sps:$4 sm:$0xff]  }
  0xba   : > { %5454 = vmatprep.subr.bf16.mxu1 %v7948_v54  ;;  %v8021_v53 = vld [vmem:[%s9331_s9 + $0xa64] ss:$16 sps:$4 sm:$0xff]   ;;  %v8016_v54 = vld [vmem:[%s9331_s9 + $0x860] ss:$16 sps:$4 sm:$0xff]  }
  0xbc   : > { %5414 = vmatpush2.bf16.msra.mxu0 %v7943_v55  ;;  %v8019_v55 = vld [vmem:[%s9331_s9 + $0xa60] ss:$16 sps:$4 sm:$0xff]  }
  0xbd   : > { %5455 = vmatpush2.bf16.msra.mxu1 %v7946_v56  ;;  %5415 = vmatprep.subr.bf16.mxu0 %v7951_v57  ;;  %v8024_v56 = vld [vmem:[%s9331_s9 + $0x844] ss:$16 sps:$4 sm:$0xff]  }
  0xbe   : > { %5456 = vmatprep.subr.bf16.mxu1 %v7954_v58  ;;  %v8027_v57 = vld [vmem:[%s9331_s9 + $0xa44] ss:$16 sps:$4 sm:$0xff]   ;;  %v8022_v58 = vld [vmem:[%s9331_s9 + $0x840] ss:$16 sps:$4 sm:$0xff]  }
  0xc0   : > { %5416 = vmatpush2.bf16.msra.mxu0 %v7949_v59  ;;  %v8025_v59 = vld [vmem:[%s9331_s9 + $0xa40] ss:$16 sps:$4 sm:$0xff]  }
  0xc1   : > { %5457 = vmatpush2.bf16.msra.mxu1 %v7952_v60  ;;  %5417 = vmatprep.subr.bf16.mxu0 %v7957_v62  ;;  %v8030_v60 = vld [vmem:[%s9331_s9 + $0x824] ss:$16 sps:$4 sm:$0xff]  }
  0xc2   : > { %5458 = vmatprep.subr.bf16.mxu1 %v7960_v63  ;;  %v8033_v62 = vld [vmem:[%s9331_s9 + $0xa24] ss:$16 sps:$4 sm:$0xff]   ;;  %v8028_v63 = vld [vmem:[%s9331_s9 + $0x820] ss:$16 sps:$4 sm:$0xff]  }
  0xc4   : > { %5418 = vmatpush2.bf16.msra.mxu0 %v7955_v0  ;;  %v8031_v0 = vld [vmem:[%s9331_s9 + $0xa20] ss:$16 sps:$4 sm:$0xff]  }
  0xc5   : > { %5459 = vmatpush2.bf16.msra.mxu1 %v7958_v2  ;;  %5419 = vmatprep.subr.bf16.mxu0 %v7963_v3  ;;  %v8036_v2 = vld [vmem:[%s9331_s9 + $0x804] ss:$16 sps:$4 sm:$0xff]  }
  0xc6   : > { %5460 = vmatprep.subr.bf16.mxu1 %v7966_v4  ;;  %v8039_v3 = vld [vmem:[%s9331_s9 + $0xa04] ss:$16 sps:$4 sm:$0xff]   ;;  %v8034_v4 = vld [vmem:[%s9331_s9 + $0x800] ss:$16 sps:$4 sm:$0xff]  }
  0xc8   : > { %5420 = vmatpush2.bf16.msra.mxu0 %v7961_v5  ;;  %v8037_v5 = vld [vmem:[%s9331_s9 + $0xa00] ss:$16 sps:$4 sm:$0xff]  }
  0xc9   : > { %5461 = vmatpush2.bf16.msra.mxu1 %v7964_v6  ;;  %5421 = vmatprep.subr.bf16.mxu0 %v7969_v8  ;;  %v8042_v6 = vld [vmem:[%s9331_s9 + $0x9e4] ss:$16 sps:$4 sm:$0xff]  }
  0xca   : > { %5462 = vmatprep.subr.bf16.mxu1 %v7972_v9  ;;  %v8045_v8 = vld [vmem:[%s9331_s9 + $0xbe4] ss:$16 sps:$4 sm:$0xff]   ;;  %v8040_v9 = vld [vmem:[%s9331_s9 + $0x9e0] ss:$16 sps:$4 sm:$0xff]  }
  0xcc   : > { %5422 = vmatpush2.bf16.msra.mxu0 %v7967_v10  ;;  %v8043_v10 = vld [vmem:[%s9331_s9 + $0xbe0] ss:$16 sps:$4 sm:$0xff]  }
  0xcd   : > { %5463 = vmatpush2.bf16.msra.mxu1 %v7970_v11  ;;  %5423 = vmatprep.subr.bf16.mxu0 %v7975_v12  ;;  %v8048_v11 = vld [vmem:[%s9331_s9 + $0x9c4] ss:$16 sps:$4 sm:$0xff]  }
  0xce   : > { %5464 = vmatprep.subr.bf16.mxu1 %v7978_v13  ;;  %v8051_v12 = vld [vmem:[%s9331_s9 + $0xbc4] ss:$16 sps:$4 sm:$0xff]   ;;  %v8046_v13 = vld [vmem:[%s9331_s9 + $0x9c0] ss:$16 sps:$4 sm:$0xff]  }
  0xd0   : > { %5424 = vmatpush2.bf16.msra.mxu0 %v7973_v15  ;;  %v8049_v15 = vld [vmem:[%s9331_s9 + $0xbc0] ss:$16 sps:$4 sm:$0xff]  }
  0xd1   : > { %5465 = vmatpush2.bf16.msra.mxu1 %v7976_v16  ;;  %5425 = vmatprep.subr.bf16.mxu0 %v7981_v17  ;;  %v8054_v16 = vld [vmem:[%s9331_s9 + $0x9a4] ss:$16 sps:$4 sm:$0xff]  }
  0xd2   : > { %5466 = vmatprep.subr.bf16.mxu1 %v7984_v20  ;;  %v8057_v17 = vld [vmem:[%s9331_s9 + $0xba4] ss:$16 sps:$4 sm:$0xff]   ;;  %v8052_v20 = vld [vmem:[%s9331_s9 + $0x9a0] ss:$16 sps:$4 sm:$0xff]  }
  0xd4   : > { %5426 = vmatpush2.bf16.msra.mxu0 %v7979_v21  ;;  %v8055_v21 = vld [vmem:[%s9331_s9 + $0xba0] ss:$16 sps:$4 sm:$0xff]  }
  0xd5   : > { %5467 = vmatpush2.bf16.msra.mxu1 %v7982_v22  ;;  %5427 = vmatprep.subr.bf16.mxu0 %v7987_v23  ;;  %v8060_v22 = vld [vmem:[%s9331_s9 + $0x984] ss:$16 sps:$4 sm:$0xff]  }
  0xd6   : > { %5468 = vmatprep.subr.bf16.mxu1 %v7990_v25  ;;  %v8063_v23 = vld [vmem:[%s9331_s9 + $0xb84] ss:$16 sps:$4 sm:$0xff]   ;;  %v8058_v25 = vld [vmem:[%s9331_s9 + $0x980] ss:$16 sps:$4 sm:$0xff]  }
  0xd8   : > { %5428 = vmatpush2.bf16.msra.mxu0 %v7985_v26  ;;  %v8061_v26 = vld [vmem:[%s9331_s9 + $0xb80] ss:$16 sps:$4 sm:$0xff]  }
  0xd9   : > { %5469 = vmatpush2.bf16.msra.mxu1 %v7988_v28  ;;  %5479 = vmatprep.subr.bf16.mxu0 %v7994_v29  ;;  %v8066_v28 = vld [vmem:[%s9331_s9 + $0x964] ss:$16 sps:$4 sm:$0xff]  }
  0xda   : > { %5520 = vmatprep.subr.bf16.mxu1 %v7997_v30  ;;  %v8069_v29 = vld [vmem:[%s9331_s9 + $0xb64] ss:$16 sps:$4 sm:$0xff]   ;;  %v8064_v30 = vld [vmem:[%s9331_s9 + $0x960] ss:$16 sps:$4 sm:$0xff]  }
  0xdb   : > { %5430 = vmatmul.mubr.bf16.vlgmr.msra.gmra.mxu0 %v9533_v27 }
  0xdc   : > { %5471 = vmatmul.mubr.bf16.vlgmr.msra.gmra.mxu1 %v9540_v31  ;;  %5480 = vmatpush1.bf16.msra.mxu0 %v7992_v32  ;;  %v8067_v32 = vld [vmem:[%s9331_s9 + $0xb60] ss:$16 sps:$4 sm:$0xff]  }
  0xdd   : > { %5521 = vmatpush1.bf16.msra.mxu1 %v7995_v7  ;;  %5481 = vmatprep.subr.bf16.mxu0 %v8000_v34  ;;  %v8072_v7 = vld [vmem:[%s9331_s9 + $0x944] ss:$16 sps:$4 sm:$0xff]  }
  0xde   : > { %5522 = vmatprep.subr.bf16.mxu1 %v8003_v35  ;;  %5511 = vmatprep.mubr.bf16.mxu0 %v9562_v42  ;;  %v8075_v34 = vld [vmem:[%s9331_s9 + $0xb44] ss:$16 sps:$4 sm:$0xff]   ;;  %v1178_v35 = vcombine.high %v9545_v33, %v9545_v33  ;;  %v8076_v33 = vld [vmem:[%s9331_s9 + $0x920] ss:$16 sps:$4 sm:$0xff]  }
  0xdf   : > { %5552 = vmatprep.mubr.bf16.mxu1 %v9567_v43 }
  0xe0   : > { %5482 = vmatpush1.bf16.msra.mxu0 %v7998_v38  ;;  %v8073_v38 = vld [vmem:[%s9331_s9 + $0xb40] ss:$16 sps:$4 sm:$0xff]  }
  0xe1   : > { %5523 = vmatpush1.bf16.msra.mxu1 %v8001_v39  ;;  %5483 = vmatprep.subr.bf16.mxu0 %v8006_v40  ;;  %v8078_v39 = vld [vmem:[%s9331_s9 + $0x924] ss:$16 sps:$4 sm:$0xff]  }
  0xe2   : > { %5524 = vmatprep.subr.bf16.mxu1 %v8009_v41  ;;  %v8081_v40 = vld [vmem:[%s9331_s9 + $0xb24] ss:$16 sps:$4 sm:$0xff]   ;;  %v9621_v41 = vrot.slane %v1178_v35, %v9412_v50  ;;  %v8139_v35 = vld [vmem:[%s9331_s9 + $0xfe0] ss:$16 sps:$4 sm:$0xff]  }
  0xe4   : > { %5484 = vmatpush1.bf16.msra.mxu0 %v8004_v45  ;;  %v8079_v45 = vld [vmem:[%s9331_s9 + $0xb20] ss:$16 sps:$4 sm:$0xff]  }
  0xe5   : > { %5525 = vmatpush1.bf16.msra.mxu1 %v8007_v46  ;;  %5485 = vmatprep.subr.bf16.mxu0 %v8012_v47  ;;  %v8084_v46 = vld [vmem:[%s9331_s9 + $0x904] ss:$16 sps:$4 sm:$0xff]  }
  0xe6   : > { %5526 = vmatprep.subr.bf16.mxu1 %v8015_v48  ;;  %v8087_v47 = vld [vmem:[%s9331_s9 + $0xb04] ss:$16 sps:$4 sm:$0xff]   ;;  %v1194_v48 = vcombine.high %v9621_v41, %v9621_v41 }
  0xe8   : > { %5486 = vmatpush1.bf16.msra.mxu0 %v8010_v49  ;;  %v9631_v49 = vrot.slane %v9551_v36, %v9412_v50  ;;  %v8088_v36 = vld [vmem:[%s9331_s9 + $0xce0] ss:$16 sps:$4 sm:$0xff]  }
  0xe9   : > { %5527 = vmatpush1.bf16.msra.mxu1 %v8013_v51  ;;  %5487 = vmatprep.subr.bf16.mxu0 %v8018_v52  ;;  %v8082_v51 = vld [vmem:[%s9331_s9 + $0x900] ss:$16 sps:$4 sm:$0xff]  }
  0xea   : > { %5528 = vmatprep.subr.bf16.mxu1 %v8021_v53  ;;  %v8085_v52 = vld [vmem:[%s9331_s9 + $0xb00] ss:$16 sps:$4 sm:$0xff]   ;;  %v8090_v53 = vld [vmem:[%s9331_s9 + $0xce4] ss:$16 sps:$4 sm:$0xff]  }
  0xec   : > { %5488 = vmatpush1.bf16.msra.mxu0 %v8016_v54  ;;  %v8093_v54 = vld [vmem:[%s9331_s9 + $0xee4] ss:$16 sps:$4 sm:$0xff]  }
  0xed   : > { %5529 = vmatpush1.bf16.msra.mxu1 %v8019_v55  ;;  %5489 = vmatprep.subr.bf16.mxu0 %v8024_v56  ;;  %v9638_v55 = vrot.slane %v1194_v48, %v9412_v50  ;;  %v9642_v56 = vcombine.high %v9631_v49, %v9631_v49  ;;  %v8156_v48 = vld [vmem:[%s9331_s9 + $0xd84] ss:$16 sps:$4 sm:$0xff]  }
  0xee   : > { %5530 = vmatprep.subr.bf16.mxu1 %v8027_v57  ;;  %v8091_v57 = vld [vmem:[%s9331_s9 + $0xee0] ss:$16 sps:$4 sm:$0xff]  }
  0xf0   : > { %5490 = vmatpush1.bf16.msra.mxu0 %v8022_v58  ;;  %v8096_v58 = vld [vmem:[%s9331_s9 + $0xcc4] ss:$16 sps:$4 sm:$0xff]  }
  0xf1   : > { %5531 = vmatpush1.bf16.msra.mxu1 %v8025_v59  ;;  %5491 = vmatprep.subr.bf16.mxu0 %v8030_v60  ;;  %v8099_v59 = vld [vmem:[%s9331_s9 + $0xec4] ss:$16 sps:$4 sm:$0xff]   ;;  %v9650_v60 = vcombine.high %v9638_v55, %v9638_v55 }
  0xf2   : > { %5532 = vmatprep.subr.bf16.mxu1 %v8033_v62  ;;  %v8094_v62 = vld [vmem:[%s9331_s9 + $0xcc0] ss:$16 sps:$4 sm:$0xff]  }
  0xf4   : > { %5492 = vmatpush1.bf16.msra.mxu0 %v8028_v63  ;;  %v8097_v63 = vld [vmem:[%s9331_s9 + $0xec0] ss:$16 sps:$4 sm:$0xff]  }
  0xf5   : > { %5533 = vmatpush1.bf16.msra.mxu1 %v8031_v0  ;;  %5493 = vmatprep.subr.bf16.mxu0 %v8036_v2  ;;  %v8102_v0 = vld [vmem:[%s9331_s9 + $0xca4] ss:$16 sps:$4 sm:$0xff]  }
  0xf6   : > { %5534 = vmatprep.subr.bf16.mxu1 %v8039_v3  ;;  %v8105_v2 = vld [vmem:[%s9331_s9 + $0xea4] ss:$16 sps:$4 sm:$0xff]   ;;  %v8100_v3 = vld [vmem:[%s9331_s9 + $0xca0] ss:$16 sps:$4 sm:$0xff]  }
  0xf8   : > { %5494 = vmatpush1.bf16.msra.mxu0 %v8034_v4  ;;  %v8103_v4 = vld [vmem:[%s9331_s9 + $0xea0] ss:$16 sps:$4 sm:$0xff]  }
  0xf9   : > { %5535 = vmatpush1.bf16.msra.mxu1 %v8037_v5  ;;  %5495 = vmatprep.subr.bf16.mxu0 %v8042_v6  ;;  %v8108_v5 = vld [vmem:[%s9331_s9 + $0xc84] ss:$16 sps:$4 sm:$0xff]  }
  0xfa   : > { %5536 = vmatprep.subr.bf16.mxu1 %v8045_v8  ;;  %v8111_v6 = vld [vmem:[%s9331_s9 + $0xe84] ss:$16 sps:$4 sm:$0xff]   ;;  %v8106_v8 = vld [vmem:[%s9331_s9 + $0xc80] ss:$16 sps:$4 sm:$0xff]  }
  0xfc   : > { %5496 = vmatpush2.bf16.msra.mxu0 %v8040_v9  ;;  %v8109_v9 = vld [vmem:[%s9331_s9 + $0xe80] ss:$16 sps:$4 sm:$0xff]  }
  0xfd   : > { %5537 = vmatpush2.bf16.msra.mxu1 %v8043_v10  ;;  %5497 = vmatprep.subr.bf16.mxu0 %v8048_v11  ;;  %v8114_v10 = vld [vmem:[%s9331_s9 + $0xc64] ss:$16 sps:$4 sm:$0xff]  }
  0xfe   : > { %5538 = vmatprep.subr.bf16.mxu1 %v8051_v12  ;;  %v8117_v11 = vld [vmem:[%s9331_s9 + $0xe64] ss:$16 sps:$4 sm:$0xff]   ;;  %v8112_v12 = vld [vmem:[%s9331_s9 + $0xc60] ss:$16 sps:$4 sm:$0xff]  }
 0x100   : > { %5498 = vmatpush2.bf16.msra.mxu0 %v8046_v13  ;;  %v8115_v13 = vld [vmem:[%s9331_s9 + $0xe60] ss:$16 sps:$4 sm:$0xff]  }
 0x101   : > { %5539 = vmatpush2.bf16.msra.mxu1 %v8049_v15  ;;  %5499 = vmatprep.subr.bf16.mxu0 %v8054_v16  ;;  %v8120_v15 = vld [vmem:[%s9331_s9 + $0xc44] ss:$16 sps:$4 sm:$0xff]  }
 0x102   : > { %5540 = vmatprep.subr.bf16.mxu1 %v8057_v17  ;;  %v8123_v16 = vld [vmem:[%s9331_s9 + $0xe44] ss:$16 sps:$4 sm:$0xff]   ;;  %v8118_v17 = vld [vmem:[%s9331_s9 + $0xc40] ss:$16 sps:$4 sm:$0xff]  }
 0x104   : > { %5500 = vmatpush2.bf16.msra.mxu0 %v8052_v20  ;;  %v8121_v20 = vld [vmem:[%s9331_s9 + $0xe40] ss:$16 sps:$4 sm:$0xff]  }
 0x105   : > { %5541 = vmatpush2.bf16.msra.mxu1 %v8055_v21  ;;  %5501 = vmatprep.subr.bf16.mxu0 %v8060_v22  ;;  %v8126_v21 = vld [vmem:[%s9331_s9 + $0xc24] ss:$16 sps:$4 sm:$0xff]  }
 0x106   : > { %5542 = vmatprep.subr.bf16.mxu1 %v8063_v23  ;;  %v8129_v22 = vld [vmem:[%s9331_s9 + $0xe24] ss:$16 sps:$4 sm:$0xff]   ;;  %v8124_v23 = vld [vmem:[%s9331_s9 + $0xc20] ss:$16 sps:$4 sm:$0xff]  }
 0x108   : > { %5502 = vmatpush2.bf16.msra.mxu0 %v8058_v25  ;;  %v8127_v25 = vld [vmem:[%s9331_s9 + $0xe20] ss:$16 sps:$4 sm:$0xff]  }
 0x109   : > { %5543 = vmatpush2.bf16.msra.mxu1 %v8061_v26  ;;  %5503 = vmatprep.subr.bf16.mxu0 %v8066_v28  ;;  %v8132_v26 = vld [vmem:[%s9331_s9 + $0xc04] ss:$16 sps:$4 sm:$0xff]  }
 0x10a   : > { %5544 = vmatprep.subr.bf16.mxu1 %v8069_v29  ;;  %v8135_v28 = vld [vmem:[%s9331_s9 + $0xe04] ss:$16 sps:$4 sm:$0xff]   ;;  %v8130_v29 = vld [vmem:[%s9331_s9 + $0xc00] ss:$16 sps:$4 sm:$0xff]  }
 0x10c   : > { %5504 = vmatpush2.bf16.msra.mxu0 %v8064_v30  ;;  %v8133_v30 = vld [vmem:[%s9331_s9 + $0xe00] ss:$16 sps:$4 sm:$0xff]  }
 0x10d   : > { %5545 = vmatpush2.bf16.msra.mxu1 %v8067_v32  ;;  %5505 = vmatprep.subr.bf16.mxu0 %v8072_v7  ;;  %v8138_v32 = vld [vmem:[%s9331_s9 + $0xde4] ss:$16 sps:$4 sm:$0xff]  }
 0x10e   : > { %5546 = vmatprep.subr.bf16.mxu1 %v8075_v34  ;;  %v8141_v7 = vld [vmem:[%s9331_s9 + $0xfe4] ss:$16 sps:$4 sm:$0xff]   ;;  %v8136_v34 = vld [vmem:[%s9331_s9 + $0xde0] ss:$16 sps:$4 sm:$0xff]  }
 0x110   : > { %5506 = vmatpush2.bf16.msra.mxu0 %v8070_v37  ;;  %v8144_v37 = vld [vmem:[%s9331_s9 + $0xdc4] ss:$16 sps:$4 sm:$0xff]  }
 0x111   : > { %5547 = vmatpush2.bf16.msra.mxu1 %v8073_v38  ;;  %5507 = vmatprep.subr.bf16.mxu0 %v8078_v39  ;;  %v8147_v38 = vld [vmem:[%s9331_s9 + $0xfc4] ss:$16 sps:$4 sm:$0xff]   ;;  %v8142_v39 = vld [vmem:[%s9331_s9 + $0xdc0] ss:$16 sps:$4 sm:$0xff]  }
 0x112   : > { %5548 = vmatprep.subr.bf16.mxu1 %v8081_v40  ;;  %v8145_v40 = vld [vmem:[%s9331_s9 + $0xfc0] ss:$16 sps:$4 sm:$0xff]  }
 0x114   : > { %5508 = vmatpush2.bf16.msra.mxu0 %v8076_v33  ;;  %v8150_v33 = vld [vmem:[%s9331_s9 + $0xda4] ss:$16 sps:$4 sm:$0xff]  }
 0x115   : > { %5549 = vmatpush2.bf16.msra.mxu1 %v8079_v45  ;;  %5509 = vmatprep.subr.bf16.mxu0 %v8084_v46  ;;  %v8153_v45 = vld [vmem:[%s9331_s9 + $0xfa4] ss:$16 sps:$4 sm:$0xff]   ;;  %v8148_v46 = vld [vmem:[%s9331_s9 + $0xda0] ss:$16 sps:$4 sm:$0xff]  }
 0x116   : > { %5550 = vmatprep.subr.bf16.mxu1 %v8087_v47  ;;  %v8151_v47 = vld [vmem:[%s9331_s9 + $0xfa0] ss:$16 sps:$4 sm:$0xff]  }
 0x118   : > { %5510 = vmatpush2.bf16.msra.mxu0 %v8082_v51  ;;  %v8159_v51 = vld [vmem:[%s9331_s9 + $0xf84] ss:$16 sps:$4 sm:$0xff]  }
 0x119   : > { %5551 = vmatpush2.bf16.msra.mxu1 %v8085_v52  ;;  %5561 = vmatprep.subr.bf16.mxu0 %v8090_v53  ;;  %v8154_v52 = vld [vmem:[%s9331_s9 + $0xd80] ss:$16 sps:$4 sm:$0xff]  }
 0x11a   : > { %5602 = vmatprep.subr.bf16.mxu1 %v8093_v54  ;;  %v8157_v53 = vld [vmem:[%s9331_s9 + $0xf80] ss:$16 sps:$4 sm:$0xff]   ;;  %v8162_v54 = vld [vmem:[%s9331_s9 + $0xd64] ss:$16 sps:$4 sm:$0xff]  }
 0x11b   : > { %5512 = vmatmul.mubr.bf16.vlgmr.msra.gmra.mxu0 %v9631_v49 }
 0x11c   : > { %5553 = vmatmul.mubr.bf16.vlgmr.msra.gmra.mxu1 %v9642_v56  ;;  %5562 = vmatpush1.bf16.msra.mxu0 %v8088_v36  ;;  %v8165_v36 = vld [vmem:[%s9331_s9 + $0xf64] ss:$16 sps:$4 sm:$0xff]  }
 0x11d   : > { %5603 = vmatpush1.bf16.msra.mxu1 %v8091_v57  ;;  %5563 = vmatprep.subr.bf16.mxu0 %v8096_v58  ;;  %v8160_v57 = vld [vmem:[%s9331_s9 + $0xd60] ss:$16 sps:$4 sm:$0xff]  }
 0x11e   : > { %5604 = vmatprep.subr.bf16.mxu1 %v8099_v59  ;;  %5593 = vmatprep.mubr.bf16.mxu0 %v9638_v55  ;;  %v8163_v58 = vld [vmem:[%s9331_s9 + $0xf60] ss:$16 sps:$4 sm:$0xff]   ;;  %v8168_v59 = vld [vmem:[%s9331_s9 + $0xd44] ss:$16 sps:$4 sm:$0xff]  }
 0x11f   : > { %5634 = vmatprep.mubr.bf16.mxu1 %v9650_v60 }
 0x120   : > { %5564 = vmatpush1.bf16.msra.mxu0 %v8094_v62  ;;  %v8171_v62 = vld [vmem:[%s9331_s9 + $0xf44] ss:$16 sps:$4 sm:$0xff]  }
 0x121   : > { %5605 = vmatpush1.bf16.msra.mxu1 %v8097_v63  ;;  %5565 = vmatprep.subr.bf16.mxu0 %v8102_v0  ;;  %v8166_v63 = vld [vmem:[%s9331_s9 + $0xd40] ss:$16 sps:$4 sm:$0xff]   ;;  %v9706_v0 = vld [vmem:[%s9351_s7 + $0x10] sm:$0xff] }
 0x122   : > { %5606 = vmatprep.subr.bf16.mxu1 %v8105_v2  ;;  %v8169_v2 = vld [vmem:[%s9331_s9 + $0xf40] ss:$16 sps:$4 sm:$0xff]  }
 0x124   : > { %5566 = vmatpush1.bf16.msra.mxu0 %v8100_v3  ;;  %v8174_v3 = vld [vmem:[%s9331_s9 + $0xd24] ss:$16 sps:$4 sm:$0xff]  }
 0x125   : > { %5607 = vmatpush1.bf16.msra.mxu1 %v8103_v4  ;;  %5567 = vmatprep.subr.bf16.mxu0 %v8108_v5  ;;  %v8177_v4 = vld [vmem:[%s9331_s9 + $0xf24] ss:$16 sps:$4 sm:$0xff]   ;;  %v9713_v5 = vrot.slane %v9706_v0, %v9412_v50 }
 0x126   : > { %5608 = vmatprep.subr.bf16.mxu1 %v8111_v6  ;;  %v8172_v6 = vld [vmem:[%s9331_s9 + $0xd20] ss:$16 sps:$4 sm:$0xff]  }
 0x128   : > { %5568 = vmatpush1.bf16.msra.mxu0 %v8106_v8  ;;  %v8175_v8 = vld [vmem:[%s9331_s9 + $0xf20] ss:$16 sps:$4 sm:$0xff]  }
 0x129   : > { %5609 = vmatpush1.bf16.msra.mxu1 %v8109_v9  ;;  %5569 = vmatprep.subr.bf16.mxu0 %v8114_v10  ;;  %v8180_v9 = vld [vmem:[%s9331_s9 + $0xd04] ss:$16 sps:$4 sm:$0xff]  }
 0x12a   : > { %5610 = vmatprep.subr.bf16.mxu1 %v8117_v11  ;;  %v8183_v10 = vld [vmem:[%s9331_s9 + $0xf04] ss:$16 sps:$4 sm:$0xff]   ;;  %v1242_v11 = vcombine.high %v9713_v5, %v9713_v5 }
 0x12c   : > { %5570 = vmatpush1.bf16.msra.mxu0 %v8112_v12  ;;  %v8178_v12 = vld [vmem:[%s9331_s9 + $0xd00] ss:$16 sps:$4 sm:$0xff]  }
 0x12d   : > { %5611 = vmatpush1.bf16.msra.mxu1 %v8115_v13  ;;  %5571 = vmatprep.subr.bf16.mxu0 %v8120_v15  ;;  %v9724_v13 = vrot.slane %v9621_v41, %v9412_v50  ;;  %v8181_v15 = vld [vmem:[%s9331_s9 + $0xf00] ss:$16 sps:$4 sm:$0xff]  }
 0x12e   : > { %5612 = vmatprep.subr.bf16.mxu1 %v8123_v16  ;;  %v8187_v16 = vld [vmem:[%s9331_s9 + $0x10e4] ss:$16 sps:$4 sm:$0xff]   ;;  %v8188_v41 = vld [vmem:[%s9331_s9 + $0x12e0] ss:$16 sps:$4 sm:$0xff]  }
 0x130   : > { %5572 = vmatpush1.bf16.msra.mxu0 %v8118_v17  ;;  %v8190_v17 = vld [vmem:[%s9331_s9 + $0x12e4] ss:$16 sps:$4 sm:$0xff]  }
 0x131   : > { %5613 = vmatpush1.bf16.msra.mxu1 %v8121_v20  ;;  %5573 = vmatprep.subr.bf16.mxu0 %v8126_v21  ;;  %v9730_v20 = vrot.slane %v1242_v11, %v9412_v50  ;;  %v9734_v21 = vcombine.high %v9724_v13, %v9724_v13  ;;  %v8232_v11 = vld [vmem:[%s9331_s9 + $0x1204] ss:$16 sps:$4 sm:$0xff]  }
 0x132   : > { %5614 = vmatprep.subr.bf16.mxu1 %v8129_v22  ;;  %v8185_v22 = vld [vmem:[%s9331_s9 + $0x10e0] ss:$16 sps:$4 sm:$0xff]  }
 0x134   : > { %5574 = vmatpush1.bf16.msra.mxu0 %v8124_v23  ;;  %v8193_v23 = vld [vmem:[%s9331_s9 + $0x10c4] ss:$16 sps:$4 sm:$0xff]  }
 0x135   : > { %5615 = vmatpush1.bf16.msra.mxu1 %v8127_v25  ;;  %5575 = vmatprep.subr.bf16.mxu0 %v8132_v26  ;;  %v8196_v25 = vld [vmem:[%s9331_s9 + $0x12c4] ss:$16 sps:$4 sm:$0xff]   ;;  %v9742_v26 = vcombine.high %v9730_v20, %v9730_v20 }
 0x136   : > { %5616 = vmatprep.subr.bf16.mxu1 %v8135_v28 }
 0x138   : > { %5576 = vmatpush1.bf16.msra.mxu0 %v8130_v29 }
 0x139   : > { %5617 = vmatpush1.bf16.msra.mxu1 %v8133_v30  ;;  %5577 = vmatprep.subr.bf16.mxu0 %v8138_v32  ;;  %v8191_v30 = vld [vmem:[%s9331_s9 + $0x10c0] ss:$16 sps:$4 sm:$0xff]  }
 0x13a   : > { %5618 = vmatprep.subr.bf16.mxu1 %v8141_v7  ;;  %v8194_v32 = vld [vmem:[%s9331_s9 + $0x12c0] ss:$16 sps:$4 sm:$0xff]  }
 0x13c   : > { %5578 = vmatpush2.bf16.msra.mxu0 %v8136_v34 }
 0x13d   : > { %5619 = vmatpush2.bf16.msra.mxu1 %v8139_v35  ;;  %5579 = vmatprep.subr.bf16.mxu0 %v8144_v37  ;;  %v8199_v37 = vld [vmem:[%s9331_s9 + $0x10a4] ss:$16 sps:$4 sm:$0xff]  }
 0x13e   : > { %5620 = vmatprep.subr.bf16.mxu1 %v8147_v38  ;;  %v8202_v38 = vld [vmem:[%s9331_s9 + $0x12a4] ss:$16 sps:$4 sm:$0xff]  }
 0x140   : > { %5580 = vmatpush2.bf16.msra.mxu0 %v8142_v39 }
 0x141   : > { %5621 = vmatpush2.bf16.msra.mxu1 %v8145_v40  ;;  %5581 = vmatprep.subr.bf16.mxu0 %v8150_v33  ;;  %v8197_v40 = vld [vmem:[%s9331_s9 + $0x10a0] ss:$16 sps:$4 sm:$0xff]  }
 0x142   : > { %5622 = vmatprep.subr.bf16.mxu1 %v8153_v45  ;;  %v8200_v33 = vld [vmem:[%s9331_s9 + $0x12a0] ss:$16 sps:$4 sm:$0xff]  }
 0x144   : > { %5582 = vmatpush2.bf16.msra.mxu0 %v8148_v46 }
 0x145   : > { %5623 = vmatpush2.bf16.msra.mxu1 %v8151_v47  ;;  %5583 = vmatprep.subr.bf16.mxu0 %v8156_v48 }
 0x146   : > { %5624 = vmatprep.subr.bf16.mxu1 %v8159_v51  ;;  %v8205_v51 = vld [vmem:[%s9331_s9 + $0x1084] ss:$16 sps:$4 sm:$0xff]  }
 0x148   : > { %5584 = vmatpush2.bf16.msra.mxu0 %v8154_v52  ;;  %v8208_v52 = vld [vmem:[%s9331_s9 + $0x1284] ss:$16 sps:$4 sm:$0xff]  }
 0x149   : > { %5625 = vmatpush2.bf16.msra.mxu1 %v8157_v53  ;;  %5585 = vmatprep.subr.bf16.mxu0 %v8162_v54  ;;  %v8203_v53 = vld [vmem:[%s9331_s9 + $0x1080] ss:$16 sps:$4 sm:$0xff]  }
 0x14a   : > { %5626 = vmatprep.subr.bf16.mxu1 %v8165_v36  ;;  %v8206_v54 = vld [vmem:[%s9331_s9 + $0x1280] ss:$16 sps:$4 sm:$0xff]   ;;  %v8211_v36 = vld [vmem:[%s9331_s9 + $0x1064] ss:$16 sps:$4 sm:$0xff]  }
 0x14c   : > { %5586 = vmatpush2.bf16.msra.mxu0 %v8160_v57  ;;  %v8214_v57 = vld [vmem:[%s9331_s9 + $0x1264] ss:$16 sps:$4 sm:$0xff]  }
 0x14d   : > { %5627 = vmatpush2.bf16.msra.mxu1 %v8163_v58  ;;  %5587 = vmatprep.subr.bf16.mxu0 %v8168_v59  ;;  %v8209_v58 = vld [vmem:[%s9331_s9 + $0x1060] ss:$16 sps:$4 sm:$0xff]  }
 0x14e   : > { %5628 = vmatprep.subr.bf16.mxu1 %v8171_v62  ;;  %v8212_v59 = vld [vmem:[%s9331_s9 + $0x1260] ss:$16 sps:$4 sm:$0xff]   ;;  %v8217_v62 = vld [vmem:[%s9331_s9 + $0x1044] ss:$16 sps:$4 sm:$0xff]  }
 0x150   : > { %5588 = vmatpush2.bf16.msra.mxu0 %v8166_v63  ;;  %v8220_v63 = vld [vmem:[%s9331_s9 + $0x1244] ss:$16 sps:$4 sm:$0xff]  }
 0x151   : > { %5629 = vmatpush2.bf16.msra.mxu1 %v8169_v2  ;;  %5589 = vmatprep.subr.bf16.mxu0 %v8174_v3  ;;  %v8215_v2 = vld [vmem:[%s9331_s9 + $0x1040] ss:$16 sps:$4 sm:$0xff]  }
 0x152   : > { %5630 = vmatprep.subr.bf16.mxu1 %v8177_v4  ;;  %v8218_v3 = vld [vmem:[%s9331_s9 + $0x1240] ss:$16 sps:$4 sm:$0xff]   ;;  %v8223_v4 = vld [vmem:[%s9331_s9 + $0x1024] ss:$16 sps:$4 sm:$0xff]  }
 0x154   : > { %5590 = vmatpush2.bf16.msra.mxu0 %v8172_v6  ;;  %v8226_v6 = vld [vmem:[%s9331_s9 + $0x1224] ss:$16 sps:$4 sm:$0xff]  }
 0x155   : > { %5631 = vmatpush2.bf16.msra.mxu1 %v8175_v8  ;;  %5591 = vmatprep.subr.bf16.mxu0 %v8180_v9  ;;  %v8221_v8 = vld [vmem:[%s9331_s9 + $0x1020] ss:$16 sps:$4 sm:$0xff]  }
 0x156   : > { %5632 = vmatprep.subr.bf16.mxu1 %v8183_v10  ;;  %v8224_v9 = vld [vmem:[%s9331_s9 + $0x1220] ss:$16 sps:$4 sm:$0xff]   ;;  %v8229_v10 = vld [vmem:[%s9331_s9 + $0x1004] ss:$16 sps:$4 sm:$0xff]  }
 0x158   : > { %5592 = vmatpush2.bf16.msra.mxu0 %v8178_v12  ;;  %v8227_v12 = vld [vmem:[%s9331_s9 + $0x1000] ss:$16 sps:$4 sm:$0xff]  }
 0x159   : > { %5633 = vmatpush2.bf16.msra.mxu1 %v8181_v15  ;;  %5643 = vmatprep.subr.bf16.mxu0 %v8187_v16  ;;  %v8230_v15 = vld [vmem:[%s9331_s9 + $0x1200] ss:$16 sps:$4 sm:$0xff]   ;;  %v8235_v16 = vld [vmem:[%s9331_s9 + $0x11e4] ss:$16 sps:$4 sm:$0xff]  }
 0x15a   : > { %5684 = vmatprep.subr.bf16.mxu1 %v8190_v17  ;;  %v8238_v17 = vld [vmem:[%s9331_s9 + $0x13e4] ss:$16 sps:$4 sm:$0xff]  }
 0x15b   : > { %v5349_v28 = vpop.f32.mrf.mxu0  ;;  %5594 = vmatmul.mubr.bf16.vlgmr.msra.gmra.mxu0 %v9724_v13 }
 0x15c   : > { %v5390_v29 = vpop.f32.mrf.mxu1  ;;  %5635 = vmatmul.mubr.bf16.vlgmr.msra.gmra.mxu1 %v9734_v21  ;;  %5644 = vmatpush1.bf16.msra.mxu0 %v8185_v22  ;;  %v8233_v22 = vld [vmem:[%s9331_s9 + $0x11e0] ss:$16 sps:$4 sm:$0xff]  }
 0x15d   : > { %v9748_v7 = vadd.f32 %v5390_v29, %v5349_v28  ;;  %5685 = vmatpush1.bf16.msra.mxu1 %v8188_v41  ;;  %v5351_v34 = vpop.f32.mrf.mxu0  ;;  %5645 = vmatprep.subr.bf16.mxu0 %v8193_v23  ;;  %v8236_v41 = vld [vmem:[%s9331_s9 + $0x13e0] ss:$16 sps:$4 sm:$0xff]   ;;  %v8241_v23 = vld [vmem:[%s9331_s9 + $0x11c4] ss:$16 sps:$4 sm:$0xff]  }
 0x15e   : > { %v5392_v35 = vpop.f32.mrf.mxu1  ;;  %5686 = vmatprep.subr.bf16.mxu1 %v8196_v25  ;;  %5675 = vmatprep.mubr.bf16.mxu0 %v9730_v20  ;;  %v8244_v25 = vld [vmem:[%s9331_s9 + $0x13c4] ss:$16 sps:$4 sm:$0xff]   ;;  %v8239_v28 = vld [vmem:[%s9331_s9 + $0x11c0] ss:$16 sps:$4 sm:$0xff]  }
 0x15f   : > { %v9752_v39 = vadd.f32 %v5392_v35, %v5351_v34  ;;  %5716 = vmatprep.mubr.bf16.mxu1 %v9742_v26  ;;  %v5353_v45 = vpop.f32.mrf.mxu0  ;;  %v8242_v29 = vld [vmem:[%s9331_s9 + $0x13c0] ss:$16 sps:$4 sm:$0xff]  }
 0x160   : > { %v5394_v46 = vpop.f32.mrf.mxu1  ;;  %5646 = vmatpush1.bf16.msra.mxu0 %v8191_v30  ;;  %v8247_v30 = vld [vmem:[%s9331_s9 + $0x11a4] ss:$16 sps:$4 sm:$0xff]   ;;  %v8245_v34 = vld [vmem:[%s9331_s9 + $0x11a0] ss:$16 sps:$4 sm:$0xff]  }
 0x161   : > { %5687 = vmatpush1.bf16.msra.mxu1 %v8194_v32  ;;  %v5354_v47 = vpop.f32.mrf.mxu0  ;;  %5647 = vmatprep.subr.bf16.mxu0 %v8199_v37  ;;  %v8250_v32 = vld [vmem:[%s9331_s9 + $0x13a4] ss:$16 sps:$4 sm:$0xff]   ;;  %v8248_v35 = vld [vmem:[%s9331_s9 + $0x13a0] ss:$16 sps:$4 sm:$0xff]  }
 0x162   : > { %v5395_v48 = vpop.f32.mrf.mxu1  ;;  %5688 = vmatprep.subr.bf16.mxu1 %v8202_v38  ;;  %v8253_v37 = vld [vmem:[%s9331_s9 + $0x1184] ss:$16 sps:$4 sm:$0xff]   ;;  %v8257_v47 = vld [vmem:[%s9331_s9 + $0x1160] ss:$16 sps:$4 sm:$0xff]  }
 0x163   : > { %v8256_v38 = vld [vmem:[%s9331_s9 + $0x1384] ss:$16 sps:$4 sm:$0xff]   ;;  %v8260_v48 = vld [vmem:[%s9331_s9 + $0x1360] ss:$16 sps:$4 sm:$0xff]  }
 0x164   : > { %5648 = vmatpush1.bf16.msra.mxu0 %v8197_v40  ;;  %v8251_v40 = vld [vmem:[%s9331_s9 + $0x1180] ss:$16 sps:$4 sm:$0xff]   ;;  %v8259_v45 = vld [vmem:[%s9331_s9 + $0x1164] ss:$16 sps:$4 sm:$0xff]  }
 0x165   : > { %5689 = vmatpush1.bf16.msra.mxu1 %v8200_v33  ;;  %5649 = vmatprep.subr.bf16.mxu0 %v8205_v51  ;;  %v8254_v33 = vld [vmem:[%s9331_s9 + $0x1380] ss:$16 sps:$4 sm:$0xff]   ;;  %v8262_v46 = vld [vmem:[%s9331_s9 + $0x1364] ss:$16 sps:$4 sm:$0xff]  }
 0x166   : > { %5690 = vmatprep.subr.bf16.mxu1 %v8208_v52  ;;  %v8265_v51 = vld [vmem:[%s9331_s9 + $0x1144] ss:$16 sps:$4 sm:$0xff]  }
 0x167   : > { %v8268_v52 = vld [vmem:[%s9331_s9 + $0x1344] ss:$16 sps:$4 sm:$0xff]  }
 0x168   : > { %5650 = vmatpush1.bf16.msra.mxu0 %v8203_v53  ;;  %v1227_v53 = vcombine.high %v9706_v0, %v9706_v0  ;;  %v8269_v0 = vld [vmem:[%s9331_s9 + $0x1120] ss:$16 sps:$4 sm:$0xff]  }
 0x169   : > { %5691 = vmatpush1.bf16.msra.mxu1 %v8206_v54  ;;  %5651 = vmatprep.subr.bf16.mxu0 %v8211_v36  ;;  %v8263_v54 = vld [vmem:[%s9331_s9 + $0x1140] ss:$16 sps:$4 sm:$0xff]  }
 0x16a   : > { %5692 = vmatprep.subr.bf16.mxu1 %v8214_v57  ;;  %v8266_v36 = vld [vmem:[%s9331_s9 + $0x1340] ss:$16 sps:$4 sm:$0xff]   ;;  %v8271_v57 = vld [vmem:[%s9331_s9 + $0x1124] ss:$16 sps:$4 sm:$0xff]  }
 0x16c   : > { %5652 = vmatpush1.bf16.msra.mxu0 %v8209_v58  ;;  %v8274_v58 = vld [vmem:[%s9331_s9 + $0x1324] ss:$16 sps:$4 sm:$0xff]  }
 0x16d   : > { %5693 = vmatpush1.bf16.msra.mxu1 %v8212_v59  ;;  %5653 = vmatprep.subr.bf16.mxu0 %v8217_v62  ;;  %v9807_v59 = vrot.slane %v1227_v53, %v9412_v50  ;;  %v8272_v62 = vld [vmem:[%s9331_s9 + $0x1320] ss:$16 sps:$4 sm:$0xff]  }
 0x16e   : > { %5694 = vmatprep.subr.bf16.mxu1 %v8220_v63  ;;  %v8277_v63 = vld [vmem:[%s9331_s9 + $0x1104] ss:$16 sps:$4 sm:$0xff]   ;;  %v8302_v53 = vld [vmem:[%s9331_s9 + $0x1680] ss:$16 sps:$4 sm:$0xff]  }
 0x170   : > { %5654 = vmatpush1.bf16.msra.mxu0 %v8215_v2  ;;  %v8280_v2 = vld [vmem:[%s9331_s9 + $0x1304] ss:$16 sps:$4 sm:$0xff]  }
 0x171   : > { %5695 = vmatpush1.bf16.msra.mxu1 %v8218_v3  ;;  %5655 = vmatprep.subr.bf16.mxu0 %v8223_v4  ;;  %v1243_v3 = vcombine.high %v9807_v59, %v9807_v59  ;;  %v9817_v4 = vrot.slane %v9713_v5, %v9412_v50 }
 0x172   : > { %5696 = vmatprep.subr.bf16.mxu1 %v8226_v6  ;;  %v8275_v6 = vld [vmem:[%s9331_s9 + $0x1100] ss:$16 sps:$4 sm:$0xff]  }
 0x173   : > { %v9830_v5 = vcombine.high %v9817_v4, %v9817_v4 }
 0x174   : > { %5656 = vmatpush1.bf16.msra.mxu0 %v8221_v8  ;;  %v8278_v8 = vld [vmem:[%s9331_s9 + $0x1300] ss:$16 sps:$4 sm:$0xff]  }
 0x175   : > { %5697 = vmatpush1.bf16.msra.mxu1 %v8224_v9  ;;  %5657 = vmatprep.subr.bf16.mxu0 %v8229_v10  ;;  %v8283_v9 = vld [vmem:[%s9331_s9 + $0x14e4] ss:$16 sps:$4 sm:$0xff]  }
 0x176   : > { %5698 = vmatprep.subr.bf16.mxu1 %v8232_v11  ;;  %v8286_v10 = vld [vmem:[%s9331_s9 + $0x16e4] ss:$16 sps:$4 sm:$0xff]   ;;  %v8281_v11 = vld [vmem:[%s9331_s9 + $0x14e0] ss:$16 sps:$4 sm:$0xff]  }
 0x178   : > { %5658 = vmatpush1.bf16.msra.mxu0 %v8227_v12  ;;  %v8284_v12 = vld [vmem:[%s9331_s9 + $0x16e0] ss:$16 sps:$4 sm:$0xff]  }
 0x179   : > { %5699 = vmatpush1.bf16.msra.mxu1 %v8230_v15  ;;  %5659 = vmatprep.subr.bf16.mxu0 %v8235_v16  ;;  %v9826_v15 = vrot.slane %v1243_v3, %v9412_v50  ;;  %v8289_v16 = vld [vmem:[%s9331_s9 + $0x14c4] ss:$16 sps:$4 sm:$0xff]  }
 0x17a   : > { %5700 = vmatprep.subr.bf16.mxu1 %v8238_v17  ;;  %v8292_v17 = vld [vmem:[%s9331_s9 + $0x16c4] ss:$16 sps:$4 sm:$0xff]  }
 0x17b   : > { %v8319_v3 = vld [vmem:[%s9331_s9 + $0x1424] ss:$16 sps:$4 sm:$0xff]  }
 0x17c   : > { %5660 = vmatpush2.bf16.msra.mxu0 %v8233_v22  ;;  %v8287_v22 = vld [vmem:[%s9331_s9 + $0x14c0] ss:$16 sps:$4 sm:$0xff]  }
 0x17d   : > { %5701 = vmatpush2.bf16.msra.mxu1 %v8236_v41  ;;  %5661 = vmatprep.subr.bf16.mxu0 %v8241_v23  ;;  %v8290_v41 = vld [vmem:[%s9331_s9 + $0x16c0] ss:$16 sps:$4 sm:$0xff]   ;;  %v9838_v23 = vcombine.high %v9826_v15, %v9826_v15 }
 0x17e   : > { %5702 = vmatprep.subr.bf16.mxu1 %v8244_v25 }
 0x180   : > { %5662 = vmatpush2.bf16.msra.mxu0 %v8239_v28 }
 0x181   : > { %5703 = vmatpush2.bf16.msra.mxu1 %v8242_v29  ;;  %5663 = vmatprep.subr.bf16.mxu0 %v8247_v30 }
 0x182   : > { %5704 = vmatprep.subr.bf16.mxu1 %v8250_v32 }
 0x184   : > { %5664 = vmatpush2.bf16.msra.mxu0 %v8245_v34  ;;  %v8295_v34 = vld [vmem:[%s9331_s9 + $0x14a4] ss:$16 sps:$4 sm:$0xff]  }
 0x185   : > { %5705 = vmatpush2.bf16.msra.mxu1 %v8248_v35  ;;  %5665 = vmatprep.subr.bf16.mxu0 %v8253_v37  ;;  %v8298_v35 = vld [vmem:[%s9331_s9 + $0x16a4] ss:$16 sps:$4 sm:$0xff]  }
 0x186   : > { %5706 = vmatprep.subr.bf16.mxu1 %v8256_v38 }
 0x188   : > { %5666 = vmatpush2.bf16.msra.mxu0 %v8251_v40  ;;  %v8293_v40 = vld [vmem:[%s9331_s9 + $0x14a0] ss:$16 sps:$4 sm:$0xff]  }
 0x189   : > { %5707 = vmatpush2.bf16.msra.mxu1 %v8254_v33  ;;  %5667 = vmatprep.subr.bf16.mxu0 %v8259_v45  ;;  %v8296_v33 = vld [vmem:[%s9331_s9 + $0x16a0] ss:$16 sps:$4 sm:$0xff]  }
 0x18a   : > { %5708 = vmatprep.subr.bf16.mxu1 %v8262_v46 }
 0x18c   : > { %5668 = vmatpush2.bf16.msra.mxu0 %v8257_v47 }
 0x18d   : > { %5709 = vmatpush2.bf16.msra.mxu1 %v8260_v48  ;;  %5669 = vmatprep.subr.bf16.mxu0 %v8265_v51  ;;  %v8304_v51 = vld [vmem:[%s9331_s9 + $0x1684] ss:$16 sps:$4 sm:$0xff]  }
 0x18e   : > { %5710 = vmatprep.subr.bf16.mxu1 %v8268_v52  ;;  %v8299_v52 = vld [vmem:[%s9331_s9 + $0x1480] ss:$16 sps:$4 sm:$0xff]  }
 0x190   : > { %5670 = vmatpush2.bf16.msra.mxu0 %v8263_v54  ;;  %v8307_v54 = vld [vmem:[%s9331_s9 + $0x1464] ss:$16 sps:$4 sm:$0xff]  }
 0x191   : > { %5711 = vmatpush2.bf16.msra.mxu1 %v8266_v36  ;;  %5671 = vmatprep.subr.bf16.mxu0 %v8271_v57  ;;  %v8310_v36 = vld [vmem:[%s9331_s9 + $0x1664] ss:$16 sps:$4 sm:$0xff]   ;;  %v8305_v57 = vld [vmem:[%s9331_s9 + $0x1460] ss:$16 sps:$4 sm:$0xff]  }
 0x192   : > { %5712 = vmatprep.subr.bf16.mxu1 %v8274_v58  ;;  %v8308_v58 = vld [vmem:[%s9331_s9 + $0x1660] ss:$16 sps:$4 sm:$0xff]  }
 0x194   : > { %5672 = vmatpush2.bf16.msra.mxu0 %v8269_v0  ;;  %v8313_v0 = vld [vmem:[%s9331_s9 + $0x1444] ss:$16 sps:$4 sm:$0xff]  }
 0x195   : > { %5713 = vmatpush2.bf16.msra.mxu1 %v8272_v62  ;;  %5673 = vmatprep.subr.bf16.mxu0 %v8277_v63  ;;  %v8316_v62 = vld [vmem:[%s9331_s9 + $0x1644] ss:$16 sps:$4 sm:$0xff]   ;;  %v8311_v63 = vld [vmem:[%s9331_s9 + $0x1440] ss:$16 sps:$4 sm:$0xff]  }
 0x196   : > { %5714 = vmatprep.subr.bf16.mxu1 %v8280_v2  ;;  %v8314_v2 = vld [vmem:[%s9331_s9 + $0x1640] ss:$16 sps:$4 sm:$0xff]  }
 0x198   : > { %5674 = vmatpush2.bf16.msra.mxu0 %v8275_v6  ;;  %v8322_v6 = vld [vmem:[%s9331_s9 + $0x1624] ss:$16 sps:$4 sm:$0xff]  }
 0x199   : > { %5715 = vmatpush2.bf16.msra.mxu1 %v8278_v8  ;;  %5725 = vmatprep.subr.bf16.mxu0 %v8283_v9  ;;  %v8317_v8 = vld [vmem:[%s9331_s9 + $0x1420] ss:$16 sps:$4 sm:$0xff]  }
 0x19a   : > { %5766 = vmatprep.subr.bf16.mxu1 %v8286_v10  ;;  %v8320_v9 = vld [vmem:[%s9331_s9 + $0x1620] ss:$16 sps:$4 sm:$0xff]   ;;  %v8325_v10 = vld [vmem:[%s9331_s9 + $0x1404] ss:$16 sps:$4 sm:$0xff]  }
 0x19b   : > { %v5431_v25 = vpop.f32.mrf.mxu0  ;;  %5676 = vmatmul.mubr.bf16.vlgmr.msra.gmra.mxu0 %v9817_v4 }
 0x19c   : > { %v5472_v28 = vpop.f32.mrf.mxu1  ;;  %5717 = vmatmul.mubr.bf16.vlgmr.msra.gmra.mxu1 %v9830_v5  ;;  %v5432_v29 = vadd.f32 %v5431_v25, %v9748_v7  ;;  %5726 = vmatpush1.bf16.msra.mxu0 %v8281_v11  ;;  %v8328_v11 = vld [vmem:[%s9331_s9 + $0x1604] ss:$16 sps:$4 sm:$0xff]   ;;  %v8332_v25 = vld [vmem:[%s9331_s9 + $0x17e0] ss:$16 sps:$4 sm:$0xff]  }
 0x19d   : > { %5767 = vmatpush1.bf16.msra.mxu1 %v8284_v12  ;;  %v5433_v30 = vpop.f32.mrf.mxu0  ;;  %5727 = vmatprep.subr.bf16.mxu0 %v8289_v16  ;;  %v8323_v12 = vld [vmem:[%s9331_s9 + $0x1400] ss:$16 sps:$4 sm:$0xff]  }
 0x19e   : > { %v5474_v32 = vpop.f32.mrf.mxu1  ;;  %5768 = vmatprep.subr.bf16.mxu1 %v8292_v17  ;;  %v9845_v37 = vadd.f32 %v5472_v28, %v5432_v29  ;;  %v5434_v38 = vadd.f32 %v5433_v30, %v9752_v39  ;;  %5757 = vmatprep.mubr.bf16.mxu0 %v9826_v15  ;;  %v8301_v39 = vld [vmem:[%s9331_s9 + $0x1484] ss:$16 sps:$4 sm:$0xff]   ;;  %v8326_v16 = vld [vmem:[%s9331_s9 + $0x1600] ss:$16 sps:$4 sm:$0xff]  }
 0x19f   : > { %5798 = vmatprep.mubr.bf16.mxu1 %v9838_v23  ;;  %v5435_v7 = vpop.f32.mrf.mxu0  ;;  %v8331_v17 = vld [vmem:[%s9331_s9 + $0x15e4] ss:$16 sps:$4 sm:$0xff]   ;;  %v8335_v30 = vld [vmem:[%s9331_s9 + $0x15c0] ss:$16 sps:$4 sm:$0xff]  }
 0x1a0   : > { %v5476_v45 = vpop.f32.mrf.mxu1  ;;  %v9852_v46 = vadd.f32 %v5474_v32, %v5434_v38  ;;  %5728 = vmatpush1.bf16.msra.mxu0 %v8287_v22  ;;  %v8334_v22 = vld [vmem:[%s9331_s9 + $0x17e4] ss:$16 sps:$4 sm:$0xff]   ;;  %v8338_v32 = vld [vmem:[%s9331_s9 + $0x17c0] ss:$16 sps:$4 sm:$0xff]  }
 0x1a1   : > { %5769 = vmatpush1.bf16.msra.mxu1 %v8290_v41  ;;  %v5436_v47 = vpop.f32.mrf.mxu0  ;;  %5729 = vmatprep.subr.bf16.mxu0 %v8295_v34  ;;  %v8329_v41 = vld [vmem:[%s9331_s9 + $0x15e0] ss:$16 sps:$4 sm:$0xff]   ;;  %v8337_v28 = vld [vmem:[%s9331_s9 + $0x15c4] ss:$16 sps:$4 sm:$0xff]  }
 0x1a2   : > { %v5477_v48 = vpop.f32.mrf.mxu1  ;;  %5770 = vmatprep.subr.bf16.mxu1 %v8298_v35  ;;  %v8340_v29 = vld [vmem:[%s9331_s9 + $0x17c4] ss:$16 sps:$4 sm:$0xff]   ;;  %v8341_v38 = vld [vmem:[%s9331_s9 + $0x15a0] ss:$16 sps:$4 sm:$0xff]  }
 0x1a3   : > { %v8343_v34 = vld [vmem:[%s9331_s9 + $0x15a4] ss:$16 sps:$4 sm:$0xff]   ;;  %v8347_v45 = vld [vmem:[%s9331_s9 + $0x1580] ss:$16 sps:$4 sm:$0xff]  }
 0x1a4   : > { %5730 = vmatpush1.bf16.msra.mxu0 %v8293_v40  ;;  %v8346_v35 = vld [vmem:[%s9331_s9 + $0x17a4] ss:$16 sps:$4 sm:$0xff]   ;;  %v8344_v40 = vld [vmem:[%s9331_s9 + $0x17a0] ss:$16 sps:$4 sm:$0xff]  }
 0x1a5   : > { %5771 = vmatpush1.bf16.msra.mxu1 %v8296_v33  ;;  %5731 = vmatprep.subr.bf16.mxu0 %v8301_v39  ;;  %v8349_v33 = vld [vmem:[%s9331_s9 + $0x1584] ss:$16 sps:$4 sm:$0xff]   ;;  %v8350_v47 = vld [vmem:[%s9331_s9 + $0x1780] ss:$16 sps:$4 sm:$0xff]  }
 0x1a6   : > { %5772 = vmatprep.subr.bf16.mxu1 %v8304_v51  ;;  %v8352_v7 = vld [vmem:[%s9331_s9 + $0x1784] ss:$16 sps:$4 sm:$0xff]   ;;  %v8353_v51 = vld [vmem:[%s9331_s9 + $0x1560] ss:$16 sps:$4 sm:$0xff]  }
 0x1a7   : > { %v8355_v48 = vld [vmem:[%s9331_s9 + $0x1564] ss:$16 sps:$4 sm:$0xff]  }
 0x1a8   : > { %5732 = vmatpush1.bf16.msra.mxu0 %v8299_v52  ;;  %v8358_v39 = vld [vmem:[%s9331_s9 + $0x1764] ss:$16 sps:$4 sm:$0xff]   ;;  %v8356_v52 = vld [vmem:[%s9331_s9 + $0x1760] ss:$16 sps:$4 sm:$0xff]  }
 0x1a9   : > { %5773 = vmatpush1.bf16.msra.mxu1 %v8302_v53  ;;  %5733 = vmatprep.subr.bf16.mxu0 %v8307_v54  ;;  %v8361_v53 = vld [vmem:[%s9331_s9 + $0x1544] ss:$16 sps:$4 sm:$0xff]  }
 0x1aa   : > { %5774 = vmatprep.subr.bf16.mxu1 %v8310_v36  ;;  %v8364_v54 = vld [vmem:[%s9331_s9 + $0x1744] ss:$16 sps:$4 sm:$0xff]   ;;  %v8359_v36 = vld [vmem:[%s9331_s9 + $0x1540] ss:$16 sps:$4 sm:$0xff]  }
 0x1ac   : > { %5734 = vmatpush1.bf16.msra.mxu0 %v8305_v57  ;;  %v8362_v57 = vld [vmem:[%s9331_s9 + $0x1740] ss:$16 sps:$4 sm:$0xff]  }
 0x1ad   : > { %5775 = vmatpush1.bf16.msra.mxu1 %v8308_v58  ;;  %5735 = vmatprep.subr.bf16.mxu0 %v8313_v0  ;;  %v8367_v58 = vld [vmem:[%s9331_s9 + $0x1524] ss:$16 sps:$4 sm:$0xff]  }
 0x1ae   : > { %5776 = vmatprep.subr.bf16.mxu1 %v8316_v62  ;;  %v8370_v0 = vld [vmem:[%s9331_s9 + $0x1724] ss:$16 sps:$4 sm:$0xff]   ;;  %v8365_v62 = vld [vmem:[%s9331_s9 + $0x1520] ss:$16 sps:$4 sm:$0xff]  }
 0x1b0   : > { %5736 = vmatpush1.bf16.msra.mxu0 %v8311_v63  ;;  %v8368_v63 = vld [vmem:[%s9331_s9 + $0x1720] ss:$16 sps:$4 sm:$0xff]  }
 0x1b1   : > { %5777 = vmatpush1.bf16.msra.mxu1 %v8314_v2  ;;  %5737 = vmatprep.subr.bf16.mxu0 %v8319_v3  ;;  %v8373_v2 = vld [vmem:[%s9331_s9 + $0x1504] ss:$16 sps:$4 sm:$0xff]  }
 0x1b2   : > { %5778 = vmatprep.subr.bf16.mxu1 %v8322_v6  ;;  %v8376_v3 = vld [vmem:[%s9331_s9 + $0x1704] ss:$16 sps:$4 sm:$0xff]   ;;  %v9906_v6 = vrot.slane %v9807_v59, %v9412_v50 }
 0x1b3   : > { %v8386_v59 = vld [vmem:[%s9331_s9 + $0x18c4] ss:$16 sps:$4 sm:$0xff]  }
 0x1b4   : > { %5738 = vmatpush1.bf16.msra.mxu0 %v8317_v8  ;;  %v8371_v8 = vld [vmem:[%s9331_s9 + $0x1500] ss:$16 sps:$4 sm:$0xff]  }
 0x1b5   : > { %5779 = vmatpush1.bf16.msra.mxu1 %v8320_v9  ;;  %5739 = vmatprep.subr.bf16.mxu0 %v8325_v10  ;;  %v8374_v9 = vld [vmem:[%s9331_s9 + $0x1700] ss:$16 sps:$4 sm:$0xff]   ;;  %v8380_v10 = vld [vmem:[%s9331_s9 + $0x18e4] ss:$16 sps:$4 sm:$0xff]  }
 0x1b6   : > { %5780 = vmatprep.subr.bf16.mxu1 %v8328_v11  ;;  %v8383_v11 = vld [vmem:[%s9331_s9 + $0xec] ss:$16 sps:$4 sm:$0xff]  }
 0x1b8   : > { %5740 = vmatpush1.bf16.msra.mxu0 %v8323_v12  ;;  %v8378_v12 = vld [vmem:[%s9331_s9 + $0x18e0] ss:$16 sps:$4 sm:$0xff]  }
 0x1b9   : > { %5781 = vmatpush1.bf16.msra.mxu1 %v8326_v16  ;;  %5741 = vmatprep.subr.bf16.mxu0 %v8331_v17  ;;  %v8381_v16 = vld [vmem:[%s9331_s9 + $0xe8] ss:$16 sps:$4 sm:$0xff]   ;;  %v9916_v17 = vcombine.high %v9906_v6, %v9906_v6 }
 0x1ba   : > { %5782 = vmatprep.subr.bf16.mxu1 %v8334_v22  ;;  %v8389_v22 = vld [vmem:[%s9331_s9 + $0xcc] ss:$16 sps:$4 sm:$0xff]  }
 0x1bc   : > { %5742 = vmatpush2.bf16.msra.mxu0 %v8329_v41  ;;  %v8384_v41 = vld [vmem:[%s9331_s9 + $0x18c0] ss:$16 sps:$4 sm:$0xff]  }
 0x1bd   : > { %5783 = vmatpush2.bf16.msra.mxu1 %v8332_v25  ;;  %5743 = vmatprep.subr.bf16.mxu0 %v8337_v28  ;;  %v8387_v25 = vld [vmem:[%s9331_s9 + $0xc8] ss:$16 sps:$4 sm:$0xff]  }
 0x1be   : > { %5784 = vmatprep.subr.bf16.mxu1 %v8340_v29 }
 0x1c0   : > { %5744 = vmatpush2.bf16.msra.mxu0 %v8335_v30 }
 0x1c1   : > { %5785 = vmatpush2.bf16.msra.mxu1 %v8338_v32  ;;  %5745 = vmatprep.subr.bf16.mxu0 %v8343_v34 }
 0x1c2   : > { %5786 = vmatprep.subr.bf16.mxu1 %v8346_v35  ;;  %v8392_v35 = vld [vmem:[%s9331_s9 + $0x18a4] ss:$16 sps:$4 sm:$0xff]  }
 0x1c4   : > { %5746 = vmatpush2.bf16.msra.mxu0 %v8341_v38  ;;  %v8395_v38 = vld [vmem:[%s9331_s9 + $0xac] ss:$16 sps:$4 sm:$0xff]  }
 0x1c5   : > { %5787 = vmatpush2.bf16.msra.mxu1 %v8344_v40  ;;  %5747 = vmatprep.subr.bf16.mxu0 %v8349_v33 }
 0x1c6   : > { %5788 = vmatprep.subr.bf16.mxu1 %v8352_v7  ;;  %v8390_v7 = vld [vmem:[%s9331_s9 + $0x18a0] ss:$16 sps:$4 sm:$0xff]  }
 0x1c8   : > { %5748 = vmatpush2.bf16.msra.mxu0 %v8347_v45  ;;  %v8393_v45 = vld [vmem:[%s9331_s9 + $0xa8] ss:$16 sps:$4 sm:$0xff]  }
 0x1c9   : > { %5789 = vmatpush2.bf16.msra.mxu1 %v8350_v47  ;;  %5749 = vmatprep.subr.bf16.mxu0 %v8355_v48  ;;  %v9160_v47 = vmov 0  }
 0x1ca   : > { %5790 = vmatprep.subr.bf16.mxu1 %v8358_v39 }
 0x1cc   : > { %5750 = vmatpush2.bf16.msra.mxu0 %v8353_v51 }
 0x1cd   : > { %5791 = vmatpush2.bf16.msra.mxu1 %v8356_v52  ;;  %5751 = vmatprep.subr.bf16.mxu0 %v8361_v53  ;;  %v8398_v52 = vld [vmem:[%s9331_s9 + $0x1884] ss:$16 sps:$4 sm:$0xff]   ;;  %v8401_v53 = vld [vmem:[%s9331_s9 + $0x8c] ss:$16 sps:$4 sm:$0xff]  }
 0x1ce   : > { %5792 = vmatprep.subr.bf16.mxu1 %v8364_v54  ;;  %v8399_v54 = vld [vmem:[%s9331_s9 + $0x88] ss:$16 sps:$4 sm:$0xff]  }
 0x1d0   : > { %5752 = vmatpush2.bf16.msra.mxu0 %v8359_v36  ;;  %v8404_v36 = vld [vmem:[%s9331_s9 + $0x1864] ss:$16 sps:$4 sm:$0xff]  }
 0x1d1   : > { %5793 = vmatpush2.bf16.msra.mxu1 %v8362_v57  ;;  %5753 = vmatprep.subr.bf16.mxu0 %v8367_v58  ;;  %v8407_v57 = vld [vmem:[%s9331_s9 + $0x6c] ss:$16 sps:$4 sm:$0xff]   ;;  %v8402_v58 = vld [vmem:[%s9331_s9 + $0x1860] ss:$16 sps:$4 sm:$0xff]  }
 0x1d2   : > { %5794 = vmatprep.subr.bf16.mxu1 %v8370_v0  ;;  %v8405_v0 = vld [vmem:[%s9331_s9 + $0x68] ss:$16 sps:$4 sm:$0xff]  }
 0x1d4   : > { %5754 = vmatpush2.bf16.msra.mxu0 %v8365_v62  ;;  %v8410_v62 = vld [vmem:[%s9331_s9 + $0x1844] ss:$16 sps:$4 sm:$0xff]  }
 0x1d5   : > { %5795 = vmatpush2.bf16.msra.mxu1 %v8368_v63  ;;  %5755 = vmatprep.subr.bf16.mxu0 %v8373_v2  ;;  %v8413_v63 = vld [vmem:[%s9331_s9 + $0x4c] ss:$16 sps:$4 sm:$0xff]   ;;  %v8408_v2 = vld [vmem:[%s9331_s9 + $0x1840] ss:$16 sps:$4 sm:$0xff]  }
 0x1d6   : > { %5796 = vmatprep.subr.bf16.mxu1 %v8376_v3  ;;  %v8411_v3 = vld [vmem:[%s9331_s9 + $0x48] ss:$16 sps:$4 sm:$0xff]  }
 0x1d8   : > { %5756 = vmatpush2.bf16.msra.mxu0 %v8371_v8  ;;  %v8416_v8 = vld [vmem:[%s9331_s9 + $0x1824] ss:$16 sps:$4 sm:$0xff]  }
 0x1d9   : > { %5797 = vmatpush2.bf16.msra.mxu1 %v8374_v9  ;;  %5807 = vmatprep.subr.bf16.mxu0 %v8380_v10  ;;  %v8419_v9 = vld [vmem:[%s9331_s9 + $0x2c] ss:$16 sps:$4 sm:$0xff]   ;;  %v8414_v10 = vld [vmem:[%s9331_s9 + $0x1820] ss:$16 sps:$4 sm:$0xff]  }
 0x1da   : > { %5848 = vmatprep.subr.bf16.mxu1 %v8383_v11  ;;  %v8417_v11 = vld [vmem:[%s9331_s9 + $0x28] ss:$16 sps:$4 sm:$0xff]  }
 0x1db   : > { %v5513_v28 = vpop.f32.mrf.mxu0  ;;  %5758 = vmatmul.mubr.bf16.vlgmr.msra.gmra.mxu0 %v9906_v6 }
 0x1dc   : > { %v5554_v29 = vpop.f32.mrf.mxu1  ;;  %5799 = vmatmul.mubr.bf16.vlgmr.msra.gmra.mxu1 %v9916_v17  ;;  %v5514_v30 = vadd.f32 %v5513_v28, %v9845_v37  ;;  %5808 = vmatpush1.bf16.msra.mxu0 %v8378_v12  ;;  %v8422_v12 = vld [vmem:[%s9331_s9 + $0x1804] ss:$16 sps:$4 sm:$0xff]   ;;  %v8431_v28 = vld [vmem:[%s9331_s9 + $0x2ec] ss:$16 sps:$4 sm:$0xff]  }
 0x1dd   : > { %5849 = vmatpush1.bf16.msra.mxu1 %v8381_v16  ;;  %v5515_v32 = vpop.f32.mrf.mxu0  ;;  %5809 = vmatprep.subr.bf16.mxu0 %v8386_v59  ;;  %v8425_v16 = vld [vmem:[%s9331_s9 + $0xc] ss:$16 sps:$4 sm:$0xff]   ;;  %v8420_v59 = vld [vmem:[%s9331_s9 + $0x1800] ss:$16 sps:$4 sm:$0xff]  }
 0x1de   : > { %v5556_v34 = vpop.f32.mrf.mxu1  ;;  %5850 = vmatprep.subr.bf16.mxu1 %v8389_v22  ;;  %v9927_v40 = vadd.f32 %v5554_v29, %v5514_v30  ;;  %v5516_v33 = vadd.f32 %v5515_v32, %v9852_v46  ;;  %5839 = vmatprep.mubr.bf16.mxu0 %v9160_v47  ;;  %v8423_v22 = vld [vmem:[%s9331_s9 + $0x8] ss:$16 sps:$4 sm:$0xff]  }
 0x1df   : > { %5880 = vmatprep.mubr.bf16.mxu1 %v9424_v61  ;;  %v5517_v37 = vpop.f32.mrf.mxu0  ;;  %v8396_v61 = vld [vmem:[%s9331_s9 + $0x1880] ss:$16 sps:$4 sm:$0xff]   ;;  %v8426_v29 = vld [vmem:[%s9331_s9 + $0x1e8] ss:$16 sps:$4 sm:$0xff]  }
 0x1e0   : > { %v5558_v48 = vpop.f32.mrf.mxu1  ;;  %v9934_v39 = vadd.f32 %v5556_v34, %v5516_v33  ;;  %5810 = vmatpush1.bf16.msra.mxu0 %v8384_v41  ;;  %v6814_v41 = vld.sshfl [vmem:[%s9351_s7 + $0x18] sm:$0x1 pattern:$0x75316420]  ;;  %v8429_v30 = vld [vmem:[%s9331_s9 + $0x2e8] ss:$16 sps:$4 sm:$0xff]  }
 0x1e1   : > { %5851 = vmatpush1.bf16.msra.mxu1 %v8387_v25  ;;  %v5518_v51 = vpop.f32.mrf.mxu0  ;;  %5811 = vmatprep.subr.bf16.mxu0 %v8392_v35  ;;  %v8428_v25 = vld [vmem:[%s9331_s9 + $0x1ec] ss:$16 sps:$4 sm:$0xff]   ;;  %v9962_v32 = vrot.slane %v6814_v41, %v9412_v50  ;;  %v8435_v33 = vld [vmem:[%s9331_s9 + $0x2c8] ss:$16 sps:$4 sm:$0xff]  }
 0x1e2   : > { %v5559_v46 = vpop.f32.mrf.mxu1  ;;  %5852 = vmatprep.subr.bf16.mxu1 %v8395_v38  ;;  %v8434_v34 = vld [vmem:[%s9331_s9 + $0x1cc] ss:$16 sps:$4 sm:$0xff]   ;;  %v8432_v38 = vld [vmem:[%s9331_s9 + $0x1c8] ss:$16 sps:$4 sm:$0xff]  }
 0x1e3   : > { %v8437_v35 = vld [vmem:[%s9331_s9 + $0x2cc] ss:$16 sps:$4 sm:$0xff]   ;;  %v8441_v37 = vld [vmem:[%s9331_s9 + $0x2a8] ss:$16 sps:$4 sm:$0xff]  }
 0x1e4   : > { %5812 = vmatpush1.bf16.msra.mxu0 %v8390_v7  ;;  %v8440_v50 = vld [vmem:[%s9331_s9 + $0x1ac] ss:$16 sps:$4 sm:$0xff]   ;;  %v8444_v46 = vld [vmem:[%s9331_s9 + $0x188] ss:$16 sps:$4 sm:$0xff]  }
 0x1e5   : > { %5853 = vmatpush1.bf16.msra.mxu1 %v8393_v45  ;;  %5813 = vmatprep.subr.bf16.mxu0 %v8398_v52  ;;  %v8443_v7 = vld [vmem:[%s9331_s9 + $0x2ac] ss:$16 sps:$4 sm:$0xff]   ;;  %v8438_v45 = vld [vmem:[%s9331_s9 + $0x1a8] ss:$16 sps:$4 sm:$0xff]  }
 0x1e6   : > { %5854 = vmatprep.subr.bf16.mxu1 %v8401_v53  ;;  %v8446_v48 = vld [vmem:[%s9331_s9 + $0x18c] ss:$16 sps:$4 sm:$0xff]   ;;  %v8447_v52 = vld [vmem:[%s9331_s9 + $0x288] ss:$16 sps:$4 sm:$0xff]  }
 0x1e7   : > { %v8449_v51 = vld [vmem:[%s9331_s9 + $0x28c] ss:$16 sps:$4 sm:$0xff]  }
 0x1e8   : > { %5814 = vmatpush1.bf16.msra.mxu0 %v8396_v61  ;;  %v8455_v53 = vld [vmem:[%s9331_s9 + $0x26c] ss:$16 sps:$4 sm:$0xff]   ;;  %v8450_v61 = vld [vmem:[%s9331_s9 + $0x168] ss:$16 sps:$4 sm:$0xff]  }
 0x1e9   : > { %5855 = vmatpush1.bf16.msra.mxu1 %v8399_v54  ;;  %5815 = vmatprep.subr.bf16.mxu0 %v8404_v36  ;;  %v8453_v54 = vld [vmem:[%s9331_s9 + $0x268] ss:$16 sps:$4 sm:$0xff]   ;;  %v8458_v36 = vld [vmem:[%s9331_s9 + $0x14c] ss:$16 sps:$4 sm:$0xff]  }
 0x1ea   : > { %5856 = vmatprep.subr.bf16.mxu1 %v8407_v57  ;;  %v8461_v57 = vld [vmem:[%s9331_s9 + $0x24c] ss:$16 sps:$4 sm:$0xff]  }
 0x1eb   : > { %v8482_v41 = vld [vmem:[%s9331_s9 + $0x3cc] ss:$16 sps:$4 sm:$0xff]  }
 0x1ec   : > { %5816 = vmatpush1.bf16.msra.mxu0 %v8402_v58  ;;  %v8456_v58 = vld [vmem:[%s9331_s9 + $0x148] ss:$16 sps:$4 sm:$0xff]  }
 0x1ed   : > { %5857 = vmatpush1.bf16.msra.mxu1 %v8405_v0  ;;  %5817 = vmatprep.subr.bf16.mxu0 %v8410_v62  ;;  %v8459_v0 = vld [vmem:[%s9331_s9 + $0x248] ss:$16 sps:$4 sm:$0xff]   ;;  %v8464_v62 = vld [vmem:[%s9331_s9 + $0x12c] ss:$16 sps:$4 sm:$0xff]  }
 0x1ee   : > { %5858 = vmatprep.subr.bf16.mxu1 %v8413_v63  ;;  %v8467_v63 = vld [vmem:[%s9331_s9 + $0x22c] ss:$16 sps:$4 sm:$0xff]  }
 0x1f0   : > { %5818 = vmatpush1.bf16.msra.mxu0 %v8408_v2  ;;  %v8462_v2 = vld [vmem:[%s9331_s9 + $0x128] ss:$16 sps:$4 sm:$0xff]  }
 0x1f1   : > { %5859 = vmatpush1.bf16.msra.mxu1 %v8411_v3  ;;  %5819 = vmatprep.subr.bf16.mxu0 %v8416_v8  ;;  %v8465_v3 = vld [vmem:[%s9331_s9 + $0x228] ss:$16 sps:$4 sm:$0xff]   ;;  %v8470_v8 = vld [vmem:[%s9331_s9 + $0x10c] ss:$16 sps:$4 sm:$0xff]  }
 0x1f2   : > { %5860 = vmatprep.subr.bf16.mxu1 %v8419_v9  ;;  %v8473_v9 = vld [vmem:[%s9331_s9 + $0x20c] ss:$16 sps:$4 sm:$0xff]  }
 0x1f4   : > { %5820 = vmatpush1.bf16.msra.mxu0 %v8414_v10  ;;  %v8468_v10 = vld [vmem:[%s9331_s9 + $0x108] ss:$16 sps:$4 sm:$0xff]  }
 0x1f5   : > { %5861 = vmatpush1.bf16.msra.mxu1 %v8417_v11  ;;  %5821 = vmatprep.subr.bf16.mxu0 %v8422_v12  ;;  %v8471_v11 = vld [vmem:[%s9331_s9 + $0x208] ss:$16 sps:$4 sm:$0xff]   ;;  %v8476_v12 = vld [vmem:[%s9331_s9 + $0x3ec] ss:$16 sps:$4 sm:$0xff]  }
 0x1f6   : > { %5862 = vmatprep.subr.bf16.mxu1 %v8425_v16  ;;  %v8479_v16 = vld [vmem:[%s9331_s9 + $0x4ec] ss:$16 sps:$4 sm:$0xff]  }
 0x1f8   : > { %5822 = vmatpush1.bf16.msra.mxu0 %v8420_v59  ;;  %v8474_v59 = vld [vmem:[%s9331_s9 + $0x3e8] ss:$16 sps:$4 sm:$0xff]  }
 0x1f9   : > { %5863 = vmatpush1.bf16.msra.mxu1 %v8423_v22  ;;  %5889 = vmatprep.subr.bf16.mxu0 %v8431_v28  ;;  %v8477_v22 = vld [vmem:[%s9331_s9 + $0x4e8] ss:$16 sps:$4 sm:$0xff]  }
 0x1fa   : > { %5864 = vmatprep.subr.bf16.mxu1 %v8428_v25  ;;  %v8485_v25 = vld [vmem:[%s9331_s9 + $0x4cc] ss:$16 sps:$4 sm:$0xff]   ;;  %v8480_v28 = vld [vmem:[%s9331_s9 + $0x3c8] ss:$16 sps:$4 sm:$0xff]  }
 0x1fb   : > { %5840 = vmatmul.mubr.bf16.vlgmr.msra.gmra.mxu0 %v9962_v32 }
 0x1fc   : > { %5890 = vmatpush1.bf16.msra.mxu0 %v8429_v30  ;;  %5921 = vmatprep.mubr.bf16.mxu0 %v9431_v1  ;;  %v8452_v1 = vld [vmem:[%s9331_s9 + $0x16c] ss:$16 sps:$4 sm:$0xff]  }
 0x1fd   : > { %5865 = vmatpush2.bf16.msra.mxu1 %v8426_v29  ;;  %5891 = vmatprep.subr.bf16.mxu0 %v8437_v35  ;;  %v8483_v29 = vld [vmem:[%s9331_s9 + $0x4c8] ss:$16 sps:$4 sm:$0xff]  }
 0x1fe   : > { %5866 = vmatprep.subr.bf16.mxu1 %v8434_v34 }
 0x200   : > { %5892 = vmatpush1.bf16.msra.mxu0 %v8435_v33 }
 0x201   : > { %5867 = vmatpush2.bf16.msra.mxu1 %v8432_v38  ;;  %5893 = vmatprep.subr.bf16.mxu0 %v8443_v7  ;;  %v8491_v7 = vld [vmem:[%s9331_s9 + $0x4ac] ss:$16 sps:$4 sm:$0xff]  }
 0x202   : > { %5868 = vmatprep.subr.bf16.mxu1 %v8440_v50  ;;  %v8488_v50 = vld [vmem:[%s9331_s9 + $0x3ac] ss:$16 sps:$4 sm:$0xff]  }
 0x204   : > { %5894 = vmatpush1.bf16.msra.mxu0 %v8441_v37 }
 0x205   : > { %5869 = vmatpush2.bf16.msra.mxu1 %v8438_v45  ;;  %5895 = vmatprep.subr.bf16.mxu0 %v8449_v51  ;;  %v8489_v51 = vld [vmem:[%s9331_s9 + $0x4a8] ss:$16 sps:$4 sm:$0xff]  }
 0x206   : > { %5870 = vmatprep.subr.bf16.mxu1 %v8446_v48  ;;  %v8486_v48 = vld [vmem:[%s9331_s9 + $0x3a8] ss:$16 sps:$4 sm:$0xff]  }
 0x208   : > { %5896 = vmatpush1.bf16.msra.mxu0 %v8447_v52 }
 0x209   : > { %5871 = vmatpush2.bf16.msra.mxu1 %v8444_v46  ;;  %5897 = vmatprep.subr.bf16.mxu0 %v8455_v53  ;;  %v8497_v53 = vld [vmem:[%s9331_s9 + $0x48c] ss:$16 sps:$4 sm:$0xff]  }
 0x20a   : > { %5872 = vmatprep.subr.bf16.mxu1 %v8452_v1 }
 0x20c   : > { %5898 = vmatpush1.bf16.msra.mxu0 %v8453_v54  ;;  %v8500_v54 = vld [vmem:[%s9331_s9 + $0x36c] ss:$16 sps:$4 sm:$0xff]  }
 0x20d   : > { %5873 = vmatpush2.bf16.msra.mxu1 %v8450_v61  ;;  %5899 = vmatprep.subr.bf16.mxu0 %v8461_v57  ;;  %v8495_v61 = vld [vmem:[%s9331_s9 + $0x488] ss:$16 sps:$4 sm:$0xff]  }
 0x20e   : > { %5874 = vmatprep.subr.bf16.mxu1 %v8458_v36  ;;  %v8503_v36 = vld [vmem:[%s9331_s9 + $0x46c] ss:$16 sps:$4 sm:$0xff]   ;;  %v8498_v57 = vld [vmem:[%s9331_s9 + $0x368] ss:$16 sps:$4 sm:$0xff]  }
 0x210   : > { %5900 = vmatpush1.bf16.msra.mxu0 %v8459_v0  ;;  %v8506_v0 = vld [vmem:[%s9331_s9 + $0x34c] ss:$16 sps:$4 sm:$0xff]  }
 0x211   : > { %5875 = vmatpush2.bf16.msra.mxu1 %v8456_v58  ;;  %5901 = vmatprep.subr.bf16.mxu0 %v8467_v63  ;;  %v8501_v58 = vld [vmem:[%s9331_s9 + $0x468] ss:$16 sps:$4 sm:$0xff]  }
 0x212   : > { %5876 = vmatprep.subr.bf16.mxu1 %v8464_v62  ;;  %v8509_v62 = vld [vmem:[%s9331_s9 + $0x44c] ss:$16 sps:$4 sm:$0xff]   ;;  %v8504_v63 = vld [vmem:[%s9331_s9 + $0x348] ss:$16 sps:$4 sm:$0xff]  }
 0x214   : > { %5902 = vmatpush1.bf16.msra.mxu0 %v8465_v3  ;;  %v8512_v3 = vld [vmem:[%s9331_s9 + $0x32c] ss:$16 sps:$4 sm:$0xff]  }
 0x215   : > { %5877 = vmatpush2.bf16.msra.mxu1 %v8462_v2  ;;  %5903 = vmatprep.subr.bf16.mxu0 %v8473_v9  ;;  %v8507_v2 = vld [vmem:[%s9331_s9 + $0x448] ss:$16 sps:$4 sm:$0xff]  }
 0x216   : > { %5878 = vmatprep.subr.bf16.mxu1 %v8470_v8  ;;  %v8515_v8 = vld [vmem:[%s9331_s9 + $0x42c] ss:$16 sps:$4 sm:$0xff]   ;;  %v8510_v9 = vld [vmem:[%s9331_s9 + $0x328] ss:$16 sps:$4 sm:$0xff]  }
 0x218   : > { %5904 = vmatpush1.bf16.msra.mxu0 %v8471_v11  ;;  %v8518_v11 = vld [vmem:[%s9331_s9 + $0x30c] ss:$16 sps:$4 sm:$0xff]  }
 0x219   : > { %5879 = vmatpush2.bf16.msra.mxu1 %v8468_v10  ;;  %5905 = vmatprep.subr.bf16.mxu0 %v8476_v12  ;;  %v8513_v10 = vld [vmem:[%s9331_s9 + $0x428] ss:$16 sps:$4 sm:$0xff]   ;;  %v8521_v12 = vld [vmem:[%s9331_s9 + $0x40c] ss:$16 sps:$4 sm:$0xff]  }
 0x21a   : > { %5930 = vmatprep.subr.bf16.mxu1 %v8479_v16  ;;  %v8516_v16 = vld [vmem:[%s9331_s9 + $0x308] ss:$16 sps:$4 sm:$0xff]  }
 0x21b   : > { %v5595_v30 = vpop.f32.mrf.mxu0 }
 0x21c   : > { %v5636_v34 = vpop.f32.mrf.mxu1  ;;  %5881 = vmatmul.mubr.bf16.vlgmr.msra.gmra.mxu1 %v9450_v14  ;;  %v5596_v35 = vadd.f32 %v5595_v30, %v9927_v40  ;;  %5906 = vmatpush2.bf16.msra.mxu0 %v8474_v59  ;;  %v8519_v59 = vld [vmem:[%s9331_s9 + $0x408] ss:$16 sps:$4 sm:$0xff]   ;;  %v8533_v30 = vld [vmem:[%s9331_s9 + $0x6cc] ss:$16 sps:$4 sm:$0xff]  }
 0x21d   : > { %5931 = vmatpush1.bf16.msra.mxu1 %v8477_v22  ;;  %v5597_v38 = vpop.f32.mrf.mxu0  ;;  %5907 = vmatprep.subr.bf16.mxu0 %v8482_v41  ;;  %v8524_v22 = vld [vmem:[%s9331_s9 + $0x5ec] ss:$16 sps:$4 sm:$0xff]  }
 0x21e   : > { %v5638_v33 = vpop.f32.mrf.mxu1  ;;  %5932 = vmatprep.subr.bf16.mxu1 %v8485_v25  ;;  %v10006_v45 = vadd.f32 %v5636_v34, %v5596_v35  ;;  %v5598_v37 = vadd.f32 %v5597_v38, %v9934_v39  ;;  %5962 = vmatprep.mubr.bf16.mxu1 %v9456_v18  ;;  %v8494_v39 = vld [vmem:[%s9331_s9 + $0x38c] ss:$16 sps:$4 sm:$0xff]   ;;  %v8492_v18 = vld [vmem:[%s9331_s9 + $0x388] ss:$16 sps:$4 sm:$0xff]  }
 0x21f   : > { %v5599_v14 = vpop.f32.mrf.mxu0  ;;  %v8527_v41 = vld [vmem:[%s9331_s9 + $0x6ec] ss:$16 sps:$4 sm:$0xff]   ;;  %v8522_v25 = vld [vmem:[%s9331_s9 + $0x5e8] ss:$16 sps:$4 sm:$0xff]  }
 0x220   : > { %v5640_v40 = vpop.f32.mrf.mxu1  ;;  %v10012_v46 = vadd.f32 %v5638_v33, %v5598_v37  ;;  %5908 = vmatpush2.bf16.msra.mxu0 %v8480_v28  ;;  %v8525_v28 = vld [vmem:[%s9331_s9 + $0x6e8] ss:$16 sps:$4 sm:$0xff]   ;;  %v8536_v38 = vld [vmem:[%s9331_s9 + $0x5ac] ss:$16 sps:$4 sm:$0xff]  }
 0x221   : > { %5933 = vmatpush1.bf16.msra.mxu1 %v8483_v29  ;;  %v5600_v52 = vpop.f32.mrf.mxu0  ;;  %5909 = vmatprep.subr.bf16.mxu0 %v8488_v50  ;;  %v8530_v29 = vld [vmem:[%s9331_s9 + $0x5cc] ss:$16 sps:$4 sm:$0xff]   ;;  %v8528_v34 = vld [vmem:[%s9331_s9 + $0x5c8] ss:$16 sps:$4 sm:$0xff]  }
 0x222   : > { %v5641_v1 = vpop.f32.mrf.mxu1  ;;  %5934 = vmatprep.subr.bf16.mxu1 %v8491_v7  ;;  %v8531_v35 = vld [vmem:[%s9331_s9 + $0x6c8] ss:$16 sps:$4 sm:$0xff]   ;;  %v8539_v33 = vld [vmem:[%s9331_s9 + $0x6ac] ss:$16 sps:$4 sm:$0xff]  }
 0x223   : > { %v8534_v50 = vld [vmem:[%s9331_s9 + $0x5a8] ss:$16 sps:$4 sm:$0xff]   ;;  %v8542_v7 = vld [vmem:[%s9331_s9 + $0x58c] ss:$16 sps:$4 sm:$0xff]  }
 0x224   : > { %5910 = vmatpush2.bf16.msra.mxu0 %v8486_v48  ;;  %v8545_v37 = vld [vmem:[%s9331_s9 + $0x68c] ss:$16 sps:$4 sm:$0xff]   ;;  %v8540_v48 = vld [vmem:[%s9331_s9 + $0x588] ss:$16 sps:$4 sm:$0xff]  }
 0x225   : > { %5935 = vmatpush1.bf16.msra.mxu1 %v8489_v51  ;;  %5911 = vmatprep.subr.bf16.mxu0 %v8494_v39  ;;  %v8543_v51 = vld [vmem:[%s9331_s9 + $0x688] ss:$16 sps:$4 sm:$0xff]   ;;  %v8551_v14 = vld [vmem:[%s9331_s9 + $0x66c] ss:$16 sps:$4 sm:$0xff]  }
 0x226   : > { %5936 = vmatprep.subr.bf16.mxu1 %v8497_v53  ;;  %v8546_v40 = vld [vmem:[%s9331_s9 + $0x568] ss:$16 sps:$4 sm:$0xff]   ;;  %v8554_v1 = vld [vmem:[%s9331_s9 + $0x54c] ss:$16 sps:$4 sm:$0xff]  }
 0x227   : > { %v8549_v52 = vld [vmem:[%s9331_s9 + $0x668] ss:$16 sps:$4 sm:$0xff]   ;;  %v8557_v39 = vld [vmem:[%s9331_s9 + $0x64c] ss:$16 sps:$4 sm:$0xff]  }
 0x228   : > { %5912 = vmatpush2.bf16.msra.mxu0 %v8492_v18  ;;  %v8552_v53 = vld [vmem:[%s9331_s9 + $0x548] ss:$16 sps:$4 sm:$0xff]  }
 0x229   : > { %5937 = vmatpush1.bf16.msra.mxu1 %v8495_v61  ;;  %5913 = vmatprep.subr.bf16.mxu0 %v8500_v54  ;;  %v8555_v18 = vld [vmem:[%s9331_s9 + $0x648] ss:$16 sps:$4 sm:$0xff]   ;;  %v8560_v61 = vld [vmem:[%s9331_s9 + $0x52c] ss:$16 sps:$4 sm:$0xff]  }
 0x22a   : > { %5938 = vmatprep.subr.bf16.mxu1 %v8503_v36  ;;  %v8563_v54 = vld [vmem:[%s9331_s9 + $0x62c] ss:$16 sps:$4 sm:$0xff]   ;;  %v8558_v36 = vld [vmem:[%s9331_s9 + $0x528] ss:$16 sps:$4 sm:$0xff]  }
 0x22c   : > { %5914 = vmatpush2.bf16.msra.mxu0 %v8498_v57  ;;  %v8561_v57 = vld [vmem:[%s9331_s9 + $0x628] ss:$16 sps:$4 sm:$0xff]  }
 0x22d   : > { %5939 = vmatpush1.bf16.msra.mxu1 %v8501_v58  ;;  %5915 = vmatprep.subr.bf16.mxu0 %v8506_v0  ;;  %v8566_v58 = vld [vmem:[%s9331_s9 + $0x50c] ss:$16 sps:$4 sm:$0xff]  }
 0x22e   : > { %5940 = vmatprep.subr.bf16.mxu1 %v8509_v62  ;;  %v8569_v0 = vld [vmem:[%s9331_s9 + $0x60c] ss:$16 sps:$4 sm:$0xff]   ;;  %v8564_v62 = vld [vmem:[%s9331_s9 + $0x508] ss:$16 sps:$4 sm:$0xff]  }
 0x230   : > { %5916 = vmatpush2.bf16.msra.mxu0 %v8504_v63  ;;  %v8567_v63 = vld [vmem:[%s9331_s9 + $0x608] ss:$16 sps:$4 sm:$0xff]  }
 0x231   : > { %5941 = vmatpush1.bf16.msra.mxu1 %v8507_v2  ;;  %5917 = vmatprep.subr.bf16.mxu0 %v8512_v3  ;;  %v8572_v2 = vld [vmem:[%s9331_s9 + $0x7ec] ss:$16 sps:$4 sm:$0xff]  }
 0x232   : > { %5942 = vmatprep.subr.bf16.mxu1 %v8515_v8  ;;  %v8575_v3 = vld [vmem:[%s9331_s9 + $0x8ec] ss:$16 sps:$4 sm:$0xff]   ;;  %v8570_v8 = vld [vmem:[%s9331_s9 + $0x7e8] ss:$16 sps:$4 sm:$0xff]  }
 0x234   : > { %5918 = vmatpush2.bf16.msra.mxu0 %v8510_v9  ;;  %v8573_v9 = vld [vmem:[%s9331_s9 + $0x8e8] ss:$16 sps:$4 sm:$0xff]  }
 0x235   : > { %5943 = vmatpush1.bf16.msra.mxu1 %v8513_v10  ;;  %5919 = vmatprep.subr.bf16.mxu0 %v8518_v11  ;;  %v8578_v10 = vld [vmem:[%s9331_s9 + $0x7cc] ss:$16 sps:$4 sm:$0xff]  }
 0x236   : > { %5944 = vmatprep.subr.bf16.mxu1 %v8521_v12  ;;  %v8581_v11 = vld [vmem:[%s9331_s9 + $0x8cc] ss:$16 sps:$4 sm:$0xff]  }
 0x238   : > { %5920 = vmatpush2.bf16.msra.mxu0 %v8516_v16 }
 0x239   : > { %5945 = vmatpush1.bf16.msra.mxu1 %v8519_v59  ;;  %5971 = vmatprep.subr.bf16.mxu0 %v8527_v41  ;;  %v8579_v41 = vld [vmem:[%s9331_s9 + $0x8c8] ss:$16 sps:$4 sm:$0xff]  }
 0x23a   : > { %5946 = vmatprep.subr.bf16.mxu1 %v8524_v22  ;;  %v8576_v22 = vld [vmem:[%s9331_s9 + $0x7c8] ss:$16 sps:$4 sm:$0xff]  }
 0x23b   : > { %5922 = vmatmul.mubr.bf16.vlgmr.msra.gmra.mxu0 %v9460_v19  ;;  %v8537_v19 = vld [vmem:[%s9331_s9 + $0x6a8] ss:$16 sps:$4 sm:$0xff]  }
 0x23c   : > { %5972 = vmatpush1.bf16.msra.mxu0 %v8525_v28  ;;  %6003 = vmatprep.mubr.bf16.mxu0 %v9468_v24  ;;  %v8548_v24 = vld [vmem:[%s9331_s9 + $0x56c] ss:$16 sps:$4 sm:$0xff]  }
 0x23d   : > { %5947 = vmatpush2.bf16.msra.mxu1 %v8522_v25  ;;  %5973 = vmatprep.subr.bf16.mxu0 %v8533_v30  ;;  %v8587_v30 = vld [vmem:[%s9331_s9 + $0x8ac] ss:$16 sps:$4 sm:$0xff]  }
 0x23e   : > { %5948 = vmatprep.subr.bf16.mxu1 %v8530_v29  ;;  %v8584_v29 = vld [vmem:[%s9331_s9 + $0x7ac] ss:$16 sps:$4 sm:$0xff]  }
 0x240   : > { %5974 = vmatpush1.bf16.msra.mxu0 %v8531_v35 }
 0x241   : > { %5949 = vmatpush2.bf16.msra.mxu1 %v8528_v34  ;;  %5975 = vmatprep.subr.bf16.mxu0 %v8539_v33  ;;  %v8582_v33 = vld [vmem:[%s9331_s9 + $0x7a8] ss:$16 sps:$4 sm:$0xff]  }
 0x242   : > { %5950 = vmatprep.subr.bf16.mxu1 %v8536_v38 }
 0x244   : > { %5976 = vmatpush1.bf16.msra.mxu0 %v8537_v19 }
 0x245   : > { %5951 = vmatpush2.bf16.msra.mxu1 %v8534_v50  ;;  %5977 = vmatprep.subr.bf16.mxu0 %v8545_v37  ;;  %v8585_v50 = vld [vmem:[%s9331_s9 + $0x8a8] ss:$16 sps:$4 sm:$0xff]  }
 0x246   : > { %5952 = vmatprep.subr.bf16.mxu1 %v8542_v7  ;;  %v8588_v37 = vld [vmem:[%s9331_s9 + $0x788] ss:$16 sps:$4 sm:$0xff]  }
 0x248   : > { %5978 = vmatpush1.bf16.msra.mxu0 %v8543_v51  ;;  %v8596_v51 = vld [vmem:[%s9331_s9 + $0x76c] ss:$16 sps:$4 sm:$0xff]  }
 0x249   : > { %5953 = vmatpush2.bf16.msra.mxu1 %v8540_v48  ;;  %5979 = vmatprep.subr.bf16.mxu0 %v8551_v14  ;;  %v8591_v48 = vld [vmem:[%s9331_s9 + $0x888] ss:$16 sps:$4 sm:$0xff]  }
 0x24a   : > { %5954 = vmatprep.subr.bf16.mxu1 %v8548_v24  ;;  %v8599_v24 = vld [vmem:[%s9331_s9 + $0x86c] ss:$16 sps:$4 sm:$0xff]   ;;  %v8594_v14 = vld [vmem:[%s9331_s9 + $0x768] ss:$16 sps:$4 sm:$0xff]  }
 0x24c   : > { %5980 = vmatpush1.bf16.msra.mxu0 %v8549_v52  ;;  %v8602_v52 = vld [vmem:[%s9331_s9 + $0x74c] ss:$16 sps:$4 sm:$0xff]  }
 0x24d   : > { %5955 = vmatpush2.bf16.msra.mxu1 %v8546_v40  ;;  %5981 = vmatprep.subr.bf16.mxu0 %v8557_v39  ;;  %v8597_v40 = vld [vmem:[%s9331_s9 + $0x868] ss:$16 sps:$4 sm:$0xff]  }
 0x24e   : > { %5956 = vmatprep.subr.bf16.mxu1 %v8554_v1  ;;  %v8605_v1 = vld [vmem:[%s9331_s9 + $0x84c] ss:$16 sps:$4 sm:$0xff]   ;;  %v8600_v39 = vld [vmem:[%s9331_s9 + $0x748] ss:$16 sps:$4 sm:$0xff]  }
 0x250   : > { %5982 = vmatpush1.bf16.msra.mxu0 %v8555_v18  ;;  %v8608_v18 = vld [vmem:[%s9331_s9 + $0x72c] ss:$16 sps:$4 sm:$0xff]  }
 0x251   : > { %5957 = vmatpush2.bf16.msra.mxu1 %v8552_v53  ;;  %5983 = vmatprep.subr.bf16.mxu0 %v8563_v54  ;;  %v8603_v53 = vld [vmem:[%s9331_s9 + $0x848] ss:$16 sps:$4 sm:$0xff]  }
 0x252   : > { %5958 = vmatprep.subr.bf16.mxu1 %v8560_v61  ;;  %v8611_v61 = vld [vmem:[%s9331_s9 + $0x82c] ss:$16 sps:$4 sm:$0xff]   ;;  %v8606_v54 = vld [vmem:[%s9331_s9 + $0x728] ss:$16 sps:$4 sm:$0xff]  }
 0x254   : > { %5984 = vmatpush1.bf16.msra.mxu0 %v8561_v57  ;;  %v8614_v57 = vld [vmem:[%s9331_s9 + $0x70c] ss:$16 sps:$4 sm:$0xff]  }
 0x255   : > { %5959 = vmatpush2.bf16.msra.mxu1 %v8558_v36  ;;  %5985 = vmatprep.subr.bf16.mxu0 %v8569_v0  ;;  %v8609_v36 = vld [vmem:[%s9331_s9 + $0x828] ss:$16 sps:$4 sm:$0xff]  }
 0x256   : > { %5960 = vmatprep.subr.bf16.mxu1 %v8566_v58  ;;  %v8617_v58 = vld [vmem:[%s9331_s9 + $0x80c] ss:$16 sps:$4 sm:$0xff]   ;;  %v8612_v0 = vld [vmem:[%s9331_s9 + $0x708] ss:$16 sps:$4 sm:$0xff]  }
 0x258   : > { %5986 = vmatpush1.bf16.msra.mxu0 %v8567_v63  ;;  %v8620_v63 = vld [vmem:[%s9331_s9 + $0x9ec] ss:$16 sps:$4 sm:$0xff]  }
 0x259   : > { %5961 = vmatpush2.bf16.msra.mxu1 %v8564_v62  ;;  %5987 = vmatprep.subr.bf16.mxu0 %v8572_v2  ;;  %v8615_v62 = vld [vmem:[%s9331_s9 + $0x808] ss:$16 sps:$4 sm:$0xff]   ;;  %v8623_v2 = vld [vmem:[%s9331_s9 + $0xaec] ss:$16 sps:$4 sm:$0xff]  }
 0x25a   : > { %6012 = vmatprep.subr.bf16.mxu1 %v8575_v3  ;;  %v8618_v3 = vld [vmem:[%s9331_s9 + $0x9e8] ss:$16 sps:$4 sm:$0xff]  }
 0x25b   : > { %v5677_v12 = vpop.f32.mrf.mxu0 }
 0x25c   : > { %v5718_v16 = vpop.f32.mrf.mxu1  ;;  %5963 = vmatmul.mubr.bf16.vlgmr.msra.gmra.mxu1 %v9533_v27  ;;  %v5678_v59 = vadd.f32 %v5677_v12, %v10006_v45  ;;  %5988 = vmatpush2.bf16.msra.mxu0 %v8570_v8  ;;  %v8621_v8 = vld [vmem:[%s9331_s9 + $0xae8] ss:$16 sps:$4 sm:$0xff]  }
 0x25d   : > { %6013 = vmatpush1.bf16.msra.mxu1 %v8573_v9  ;;  %v5679_v25 = vpop.f32.mrf.mxu0  ;;  %5989 = vmatprep.subr.bf16.mxu0 %v8578_v10  ;;  %v8626_v9 = vld [vmem:[%s9331_s9 + $0x9cc] ss:$16 sps:$4 sm:$0xff]   ;;  %v8627_v12 = vld [vmem:[%s9331_s9 + $0xac8] ss:$16 sps:$4 sm:$0xff]  }
 0x25e   : > { %v5720_v28 = vpop.f32.mrf.mxu1  ;;  %6014 = vmatprep.subr.bf16.mxu1 %v8581_v11  ;;  %v10080_v34 = vadd.f32 %v5718_v16, %v5678_v59  ;;  %v5680_v27 = vadd.f32 %v5679_v25, %v10012_v46  ;;  %6044 = vmatprep.mubr.bf16.mxu1 %v9562_v42  ;;  %v8590_v46 = vld [vmem:[%s9331_s9 + $0x78c] ss:$16 sps:$4 sm:$0xff]   ;;  %v8624_v11 = vld [vmem:[%s9331_s9 + $0x9c8] ss:$16 sps:$4 sm:$0xff]  }
 0x25f   : > { %v5681_v45 = vpop.f32.mrf.mxu0  ;;  %v8593_v42 = vld [vmem:[%s9331_s9 + $0x88c] ss:$16 sps:$4 sm:$0xff]  }
 0x260   : > { %v5722_v35 = vpop.f32.mrf.mxu1  ;;  %v10084_v38 = vadd.f32 %v5720_v28, %v5680_v27  ;;  %5990 = vmatpush2.bf16.msra.mxu0 %v8576_v22  ;;  %v8629_v10 = vld [vmem:[%s9331_s9 + $0xacc] ss:$16 sps:$4 sm:$0xff]   ;;  %v8630_v22 = vld [vmem:[%s9331_s9 + $0x9a8] ss:$16 sps:$4 sm:$0xff]  }
 0x261   : > { %6015 = vmatpush1.bf16.msra.mxu1 %v8579_v41  ;;  %v5682_v19 = vpop.f32.mrf.mxu0  ;;  %5991 = vmatprep.subr.bf16.mxu0 %v8584_v29  ;;  %v8632_v16 = vld [vmem:[%s9331_s9 + $0x9ac] ss:$16 sps:$4 sm:$0xff]   ;;  %v8636_v28 = vld [vmem:[%s9331_s9 + $0x988] ss:$16 sps:$4 sm:$0xff]  }
 0x262   : > { %v5723_v7 = vpop.f32.mrf.mxu1  ;;  %6016 = vmatprep.subr.bf16.mxu1 %v8587_v30  ;;  %v8635_v59 = vld [vmem:[%s9331_s9 + $0xaac] ss:$16 sps:$4 sm:$0xff]   ;;  %v8639_v29 = vld [vmem:[%s9331_s9 + $0xa88] ss:$16 sps:$4 sm:$0xff]  }
 0x263   : > { %v8638_v41 = vld [vmem:[%s9331_s9 + $0x98c] ss:$16 sps:$4 sm:$0xff]   ;;  %v8642_v27 = vld [vmem:[%s9331_s9 + $0x968] ss:$16 sps:$4 sm:$0xff]  }
 0x264   : > { %5992 = vmatpush2.bf16.msra.mxu0 %v8582_v33  ;;  %v8641_v25 = vld [vmem:[%s9331_s9 + $0xa8c] ss:$16 sps:$4 sm:$0xff]   ;;  %v8645_v45 = vld [vmem:[%s9331_s9 + $0xa68] ss:$16 sps:$4 sm:$0xff]  }
 0x265   : > { %6017 = vmatpush1.bf16.msra.mxu1 %v8585_v50  ;;  %5993 = vmatprep.subr.bf16.mxu0 %v8590_v46  ;;  %v8647_v30 = vld [vmem:[%s9331_s9 + $0xa6c] ss:$16 sps:$4 sm:$0xff]   ;;  %v8648_v50 = vld [vmem:[%s9331_s9 + $0x948] ss:$16 sps:$4 sm:$0xff]  }
 0x266   : > { %6018 = vmatprep.subr.bf16.mxu1 %v8593_v42  ;;  %v8650_v35 = vld [vmem:[%s9331_s9 + $0x94c] ss:$16 sps:$4 sm:$0xff]   ;;  %v8651_v19 = vld [vmem:[%s9331_s9 + $0xa48] ss:$16 sps:$4 sm:$0xff]  }
 0x267   : > { %v8653_v33 = vld [vmem:[%s9331_s9 + $0xa4c] ss:$16 sps:$4 sm:$0xff]   ;;  %v8654_v42 = vld [vmem:[%s9331_s9 + $0x928] ss:$16 sps:$4 sm:$0xff]  }
 0x268   : > { %5994 = vmatpush2.bf16.msra.mxu0 %v8588_v37  ;;  %v8656_v7 = vld [vmem:[%s9331_s9 + $0x92c] ss:$16 sps:$4 sm:$0xff]   ;;  %v8657_v37 = vld [vmem:[%s9331_s9 + $0xa28] ss:$16 sps:$4 sm:$0xff]  }
 0x269   : > { %6019 = vmatpush1.bf16.msra.mxu1 %v8591_v48  ;;  %5995 = vmatprep.subr.bf16.mxu0 %v8596_v51  ;;  %v8659_v46 = vld [vmem:[%s9331_s9 + $0xa2c] ss:$16 sps:$4 sm:$0xff]  }
 0x26a   : > { %6020 = vmatprep.subr.bf16.mxu1 %v8599_v24  ;;  %v8662_v48 = vld [vmem:[%s9331_s9 + $0x90c] ss:$16 sps:$4 sm:$0xff]   ;;  %v8660_v24 = vld [vmem:[%s9331_s9 + $0x908] ss:$16 sps:$4 sm:$0xff]  }
 0x26b   : > { %v8665_v51 = vld [vmem:[%s9331_s9 + $0xa0c] ss:$16 sps:$4 sm:$0xff]  }
 0x26c   : > { %5996 = vmatpush2.bf16.msra.mxu0 %v8594_v14  ;;  %v8663_v14 = vld [vmem:[%s9331_s9 + $0xa08] ss:$16 sps:$4 sm:$0xff]  }
 0x26d   : > { %6021 = vmatpush1.bf16.msra.mxu1 %v8597_v40  ;;  %5997 = vmatprep.subr.bf16.mxu0 %v8602_v52  ;;  %v8668_v40 = vld [vmem:[%s9331_s9 + $0xbec] ss:$16 sps:$4 sm:$0xff]  }
 0x26e   : > { %6022 = vmatprep.subr.bf16.mxu1 %v8605_v1  ;;  %v8671_v52 = vld [vmem:[%s9331_s9 + $0xcec] ss:$16 sps:$4 sm:$0xff]   ;;  %v8666_v1 = vld [vmem:[%s9331_s9 + $0xbe8] ss:$16 sps:$4 sm:$0xff]  }
 0x270   : > { %5998 = vmatpush2.bf16.msra.mxu0 %v8600_v39  ;;  %v8669_v39 = vld [vmem:[%s9331_s9 + $0xce8] ss:$16 sps:$4 sm:$0xff]  }
 0x271   : > { %6023 = vmatpush1.bf16.msra.mxu1 %v8603_v53  ;;  %5999 = vmatprep.subr.bf16.mxu0 %v8608_v18  ;;  %v8674_v53 = vld [vmem:[%s9331_s9 + $0xbcc] ss:$16 sps:$4 sm:$0xff]  }
 0x272   : > { %6024 = vmatprep.subr.bf16.mxu1 %v8611_v61  ;;  %v8677_v18 = vld [vmem:[%s9331_s9 + $0xccc] ss:$16 sps:$4 sm:$0xff]  }
 0x274   : > { %6000 = vmatpush2.bf16.msra.mxu0 %v8606_v54 }
 0x275   : > { %6025 = vmatpush1.bf16.msra.mxu1 %v8609_v36  ;;  %6001 = vmatprep.subr.bf16.mxu0 %v8614_v57  ;;  %v8672_v57 = vld [vmem:[%s9331_s9 + $0xbc8] ss:$16 sps:$4 sm:$0xff]  }
 0x276   : > { %6026 = vmatprep.subr.bf16.mxu1 %v8617_v58  ;;  %v8675_v58 = vld [vmem:[%s9331_s9 + $0xcc8] ss:$16 sps:$4 sm:$0xff]  }
 0x278   : > { %6002 = vmatpush2.bf16.msra.mxu0 %v8612_v0 }
 0x279   : > { %6027 = vmatpush1.bf16.msra.mxu1 %v8615_v62  ;;  %6053 = vmatprep.subr.bf16.mxu0 %v8623_v2  ;;  %v8683_v2 = vld [vmem:[%s9331_s9 + $0xcac] ss:$16 sps:$4 sm:$0xff]  }
 0x27a   : > { %6028 = vmatprep.subr.bf16.mxu1 %v8620_v63  ;;  %v8680_v63 = vld [vmem:[%s9331_s9 + $0xbac] ss:$16 sps:$4 sm:$0xff]  }
 0x27b   : > { %6004 = vmatmul.mubr.bf16.vlgmr.msra.gmra.mxu0 %v9540_v31  ;;  %v8633_v31 = vld [vmem:[%s9331_s9 + $0xaa8] ss:$16 sps:$4 sm:$0xff]  }
 0x27c   : > { %6054 = vmatpush1.bf16.msra.mxu0 %v8621_v8  ;;  %6085 = vmatprep.mubr.bf16.mxu0 %v9567_v43  ;;  %v8644_v43 = vld [vmem:[%s9331_s9 + $0x96c] ss:$16 sps:$4 sm:$0xff]  }
 0x27d   : > { %6029 = vmatpush2.bf16.msra.mxu1 %v8618_v3  ;;  %6055 = vmatprep.subr.bf16.mxu0 %v8629_v10  ;;  %v8678_v10 = vld [vmem:[%s9331_s9 + $0xba8] ss:$16 sps:$4 sm:$0xff]  }
 0x27e   : > { %6030 = vmatprep.subr.bf16.mxu1 %v8626_v9 }
 0x280   : > { %6056 = vmatpush1.bf16.msra.mxu0 %v8627_v12 }
 0x281   : > { %6031 = vmatpush2.bf16.msra.mxu1 %v8624_v11  ;;  %6057 = vmatprep.subr.bf16.mxu0 %v8635_v59  ;;  %v8681_v11 = vld [vmem:[%s9331_s9 + $0xca8] ss:$16 sps:$4 sm:$0xff]  }
 0x282   : > { %6032 = vmatprep.subr.bf16.mxu1 %v8632_v16  ;;  %v8684_v59 = vld [vmem:[%s9331_s9 + $0xb88] ss:$16 sps:$4 sm:$0xff]  }
 0x284   : > { %6058 = vmatpush1.bf16.msra.mxu0 %v8633_v31  ;;  %v8692_v31 = vld [vmem:[%s9331_s9 + $0xb6c] ss:$16 sps:$4 sm:$0xff]  }
 0x285   : > { %6033 = vmatpush2.bf16.msra.mxu1 %v8630_v22  ;;  %6059 = vmatprep.subr.bf16.mxu0 %v8641_v25  ;;  %v8687_v22 = vld [vmem:[%s9331_s9 + $0xc88] ss:$16 sps:$4 sm:$0xff]  }
 0x286   : > { %6034 = vmatprep.subr.bf16.mxu1 %v8638_v41  ;;  %v8695_v41 = vld [vmem:[%s9331_s9 + $0xc6c] ss:$16 sps:$4 sm:$0xff]   ;;  %v8690_v25 = vld [vmem:[%s9331_s9 + $0xb68] ss:$16 sps:$4 sm:$0xff]  }
 0x288   : > { %6060 = vmatpush1.bf16.msra.mxu0 %v8639_v29  ;;  %v8698_v29 = vld [vmem:[%s9331_s9 + $0xb4c] ss:$16 sps:$4 sm:$0xff]  }
 0x289   : > { %6035 = vmatpush2.bf16.msra.mxu1 %v8636_v28  ;;  %6061 = vmatprep.subr.bf16.mxu0 %v8647_v30  ;;  %v8693_v28 = vld [vmem:[%s9331_s9 + $0xc68] ss:$16 sps:$4 sm:$0xff]  }
 0x28a   : > { %6036 = vmatprep.subr.bf16.mxu1 %v8644_v43  ;;  %v8701_v43 = vld [vmem:[%s9331_s9 + $0xc4c] ss:$16 sps:$4 sm:$0xff]   ;;  %v8696_v30 = vld [vmem:[%s9331_s9 + $0xb48] ss:$16 sps:$4 sm:$0xff]  }
 0x28c   : > { %6062 = vmatpush1.bf16.msra.mxu0 %v8645_v45  ;;  %v8704_v45 = vld [vmem:[%s9331_s9 + $0xb2c] ss:$16 sps:$4 sm:$0xff]  }
 0x28d   : > { %6037 = vmatpush2.bf16.msra.mxu1 %v8642_v27  ;;  %6063 = vmatprep.subr.bf16.mxu0 %v8653_v33  ;;  %v8699_v27 = vld [vmem:[%s9331_s9 + $0xc48] ss:$16 sps:$4 sm:$0xff]  }
 0x28e   : > { %6038 = vmatprep.subr.bf16.mxu1 %v8650_v35  ;;  %v8707_v35 = vld [vmem:[%s9331_s9 + $0xc2c] ss:$16 sps:$4 sm:$0xff]   ;;  %v8702_v33 = vld [vmem:[%s9331_s9 + $0xb28] ss:$16 sps:$4 sm:$0xff]  }
 0x290   : > { %6064 = vmatpush1.bf16.msra.mxu0 %v8651_v19  ;;  %v8710_v19 = vld [vmem:[%s9331_s9 + $0xb0c] ss:$16 sps:$4 sm:$0xff]  }
 0x291   : > { %6039 = vmatpush2.bf16.msra.mxu1 %v8648_v50  ;;  %6065 = vmatprep.subr.bf16.mxu0 %v8659_v46  ;;  %v8705_v50 = vld [vmem:[%s9331_s9 + $0xc28] ss:$16 sps:$4 sm:$0xff]  }
 0x292   : > { %6040 = vmatprep.subr.bf16.mxu1 %v8656_v7  ;;  %v8713_v7 = vld [vmem:[%s9331_s9 + $0xc0c] ss:$16 sps:$4 sm:$0xff]   ;;  %v8708_v46 = vld [vmem:[%s9331_s9 + $0xb08] ss:$16 sps:$4 sm:$0xff]  }
 0x294   : > { %6066 = vmatpush1.bf16.msra.mxu0 %v8657_v37  ;;  %v8716_v37 = vld [vmem:[%s9331_s9 + $0xdec] ss:$16 sps:$4 sm:$0xff]  }
 0x295   : > { %6041 = vmatpush2.bf16.msra.mxu1 %v8654_v42  ;;  %6067 = vmatprep.subr.bf16.mxu0 %v8665_v51  ;;  %v8711_v42 = vld [vmem:[%s9331_s9 + $0xc08] ss:$16 sps:$4 sm:$0xff]  }
 0x296   : > { %6042 = vmatprep.subr.bf16.mxu1 %v8662_v48  ;;  %v8719_v48 = vld [vmem:[%s9331_s9 + $0xeec] ss:$16 sps:$4 sm:$0xff]   ;;  %v8714_v51 = vld [vmem:[%s9331_s9 + $0xde8] ss:$16 sps:$4 sm:$0xff]  }
 0x298   : > { %6068 = vmatpush1.bf16.msra.mxu0 %v8663_v14  ;;  %v8722_v14 = vld [vmem:[%s9331_s9 + $0xdcc] ss:$16 sps:$4 sm:$0xff]  }
 0x299   : > { %6043 = vmatpush2.bf16.msra.mxu1 %v8660_v24  ;;  %6069 = vmatprep.subr.bf16.mxu0 %v8668_v40  ;;  %v8717_v24 = vld [vmem:[%s9331_s9 + $0xee8] ss:$16 sps:$4 sm:$0xff]   ;;  %v8725_v40 = vld [vmem:[%s9331_s9 + $0xecc] ss:$16 sps:$4 sm:$0xff]  }
 0x29a   : > { %6094 = vmatprep.subr.bf16.mxu1 %v8671_v52 }
 0x29b   : > { %v5759_v61 = vpop.f32.mrf.mxu0 }
 0x29c   : > { %v5800_v54 = vpop.f32.mrf.mxu1  ;;  %6045 = vmatmul.mubr.bf16.vlgmr.msra.gmra.mxu1 %v9631_v49  ;;  %v5760_v36 = vadd.f32 %v5759_v61, %v10080_v34  ;;  %6070 = vmatpush2.bf16.msra.mxu0 %v8666_v1  ;;  %v8728_v61 = vld [vmem:[%s9331_s9 + $0xdac] ss:$16 sps:$4 sm:$0xff]  }
 0x29d   : > { %6095 = vmatpush1.bf16.msra.mxu1 %v8669_v39  ;;  %v5761_v0 = vpop.f32.mrf.mxu0  ;;  %6071 = vmatprep.subr.bf16.mxu0 %v8674_v53  ;;  %v8720_v39 = vld [vmem:[%s9331_s9 + $0xdc8] ss:$16 sps:$4 sm:$0xff]  }
 0x29e   : > { %v5802_v62 = vpop.f32.mrf.mxu1  ;;  %6096 = vmatprep.subr.bf16.mxu1 %v8677_v18  ;;  %v10154_v3 = vadd.f32 %v5800_v54, %v5760_v36  ;;  %v5762_v49 = vadd.f32 %v5761_v0, %v10084_v38  ;;  %6126 = vmatprep.mubr.bf16.mxu1 %v9638_v55  ;;  %v8686_v38 = vld [vmem:[%s9331_s9 + $0xb8c] ss:$16 sps:$4 sm:$0xff]   ;;  %v8723_v53 = vld [vmem:[%s9331_s9 + $0xec8] ss:$16 sps:$4 sm:$0xff]  }
 0x29f   : > { %v5763_v34 = vpop.f32.mrf.mxu0  ;;  %v8689_v55 = vld [vmem:[%s9331_s9 + $0xc8c] ss:$16 sps:$4 sm:$0xff]   ;;  %v8729_v0 = vld [vmem:[%s9331_s9 + $0xea8] ss:$16 sps:$4 sm:$0xff]  }
 0x2a0   : > { %v5804_v8 = vpop.f32.mrf.mxu1  ;;  %v10158_v9 = vadd.f32 %v5802_v62, %v5762_v49  ;;  %6072 = vmatpush2.bf16.msra.mxu0 %v8672_v57  ;;  %v8731_v54 = vld [vmem:[%s9331_s9 + $0xeac] ss:$16 sps:$4 sm:$0xff]  }
 0x2a1   : > { %6097 = vmatpush1.bf16.msra.mxu1 %v8675_v58  ;;  %v5764_v12 = vpop.f32.mrf.mxu0  ;;  %6073 = vmatprep.subr.bf16.mxu0 %v8680_v63  ;;  %v8726_v58 = vld [vmem:[%s9331_s9 + $0xda8] ss:$16 sps:$4 sm:$0xff]   ;;  %v8734_v63 = vld [vmem:[%s9331_s9 + $0xd8c] ss:$16 sps:$4 sm:$0xff]  }
 0x2a2   : > { %v5805_v16 = vpop.f32.mrf.mxu1  ;;  %6098 = vmatprep.subr.bf16.mxu1 %v8683_v2  ;;  %v8737_v2 = vld [vmem:[%s9331_s9 + $0xe8c] ss:$16 sps:$4 sm:$0xff]   ;;  %v8738_v8 = vld [vmem:[%s9331_s9 + $0xd68] ss:$16 sps:$4 sm:$0xff]  }
 0x2a3   : > { %v8740_v49 = vld [vmem:[%s9331_s9 + $0xd6c] ss:$16 sps:$4 sm:$0xff]   ;;  %v8744_v12 = vld [vmem:[%s9331_s9 + $0xd48] ss:$16 sps:$4 sm:$0xff]  }
 0x2a4   : > { %6074 = vmatpush2.bf16.msra.mxu0 %v8678_v10  ;;  %v8743_v34 = vld [vmem:[%s9331_s9 + $0xe6c] ss:$16 sps:$4 sm:$0xff]   ;;  %v8747_v16 = vld [vmem:[%s9331_s9 + $0xe48] ss:$16 sps:$4 sm:$0xff]  }
 0x2a5   : > { %6099 = vmatpush1.bf16.msra.mxu1 %v8681_v11  ;;  %6075 = vmatprep.subr.bf16.mxu0 %v8686_v38  ;;  %v8746_v10 = vld [vmem:[%s9331_s9 + $0xd4c] ss:$16 sps:$4 sm:$0xff]  }
 0x2a6   : > { %6100 = vmatprep.subr.bf16.mxu1 %v8689_v55  ;;  %v8749_v11 = vld [vmem:[%s9331_s9 + $0xe4c] ss:$16 sps:$4 sm:$0xff]  }
 0x2a7   : > { %v8752_v38 = vld [vmem:[%s9331_s9 + $0xd2c] ss:$16 sps:$4 sm:$0xff]  }
 0x2a8   : > { %6076 = vmatpush2.bf16.msra.mxu0 %v8684_v59  ;;  %v8755_v55 = vld [vmem:[%s9331_s9 + $0xe2c] ss:$16 sps:$4 sm:$0xff]   ;;  %v8750_v59 = vld [vmem:[%s9331_s9 + $0xd28] ss:$16 sps:$4 sm:$0xff]  }
 0x2a9   : > { %6101 = vmatpush1.bf16.msra.mxu1 %v8687_v22  ;;  %6077 = vmatprep.subr.bf16.mxu0 %v8692_v31  ;;  %v8753_v22 = vld [vmem:[%s9331_s9 + $0xe28] ss:$16 sps:$4 sm:$0xff]   ;;  %v8758_v31 = vld [vmem:[%s9331_s9 + $0xd0c] ss:$16 sps:$4 sm:$0xff]  }
 0x2aa   : > { %6102 = vmatprep.subr.bf16.mxu1 %v8695_v41  ;;  %v8761_v41 = vld [vmem:[%s9331_s9 + $0xe0c] ss:$16 sps:$4 sm:$0xff]  }
 0x2ac   : > { %6078 = vmatpush2.bf16.msra.mxu0 %v8690_v25  ;;  %v8756_v25 = vld [vmem:[%s9331_s9 + $0xd08] ss:$16 sps:$4 sm:$0xff]  }
 0x2ad   : > { %6103 = vmatpush1.bf16.msra.mxu1 %v8693_v28  ;;  %6079 = vmatprep.subr.bf16.mxu0 %v8698_v29  ;;  %v8759_v28 = vld [vmem:[%s9331_s9 + $0xe08] ss:$16 sps:$4 sm:$0xff]   ;;  %v8764_v29 = vld [vmem:[%s9331_s9 + $0xfec] ss:$16 sps:$4 sm:$0xff]  }
 0x2ae   : > { %6104 = vmatprep.subr.bf16.mxu1 %v8701_v43  ;;  %v8767_v43 = vld [vmem:[%s9331_s9 + $0x10ec] ss:$16 sps:$4 sm:$0xff]  }
 0x2b0   : > { %6080 = vmatpush2.bf16.msra.mxu0 %v8696_v30  ;;  %v8762_v30 = vld [vmem:[%s9331_s9 + $0xfe8] ss:$16 sps:$4 sm:$0xff]  }
 0x2b1   : > { %6105 = vmatpush1.bf16.msra.mxu1 %v8699_v27  ;;  %6081 = vmatprep.subr.bf16.mxu0 %v8704_v45  ;;  %v8765_v27 = vld [vmem:[%s9331_s9 + $0x10e8] ss:$16 sps:$4 sm:$0xff]   ;;  %v8770_v45 = vld [vmem:[%s9331_s9 + $0xfcc] ss:$16 sps:$4 sm:$0xff]  }
 0x2b2   : > { %6106 = vmatprep.subr.bf16.mxu1 %v8707_v35  ;;  %v8773_v35 = vld [vmem:[%s9331_s9 + $0x10cc] ss:$16 sps:$4 sm:$0xff]  }
 0x2b4   : > { %6082 = vmatpush2.bf16.msra.mxu0 %v8702_v33 }
 0x2b5   : > { %6107 = vmatpush1.bf16.msra.mxu1 %v8705_v50  ;;  %6083 = vmatprep.subr.bf16.mxu0 %v8710_v19  ;;  %v8768_v50 = vld [vmem:[%s9331_s9 + $0xfc8] ss:$16 sps:$4 sm:$0xff]  }
 0x2b6   : > { %6108 = vmatprep.subr.bf16.mxu1 %v8713_v7  ;;  %v8771_v19 = vld [vmem:[%s9331_s9 + $0x10c8] ss:$16 sps:$4 sm:$0xff]  }
 0x2b8   : > { %6084 = vmatpush2.bf16.msra.mxu0 %v8708_v46  ;;  %v8776_v46 = vld [vmem:[%s9331_s9 + $0xfac] ss:$16 sps:$4 sm:$0xff]  }
 0x2b9   : > { %6109 = vmatpush1.bf16.msra.mxu1 %v8711_v42  ;;  %6135 = vmatprep.subr.bf16.mxu0 %v8719_v48  ;;  %v8779_v42 = vld [vmem:[%s9331_s9 + $0x10ac] ss:$16 sps:$4 sm:$0xff]   ;;  %v8777_v48 = vld [vmem:[%s9331_s9 + $0x10a8] ss:$16 sps:$4 sm:$0xff]  }
 0x2ba   : > { %6110 = vmatprep.subr.bf16.mxu1 %v8716_v37 }
 0x2bb   : > { %v5841_v52 = vpop.f32.mrf.mxu0  ;;  %6086 = vmatmul.mubr.bf16.vlgmr.msra.gmra.mxu0 %v9642_v56 }
 0x2bc   : > { %v10190_v1 = vadd.f32 %v5841_v52, %v10154_v3  ;;  %6136 = vmatpush1.bf16.msra.mxu0 %v8717_v24  ;;  %6167 = vmatprep.mubr.bf16.mxu0 %v9650_v60  ;;  %v8732_v60 = vld [vmem:[%s9331_s9 + $0xd88] ss:$16 sps:$4 sm:$0xff]   ;;  %v8782_v24 = vld [vmem:[%s9331_s9 + $0xf8c] ss:$16 sps:$4 sm:$0xff]  }
 0x2bd   : > { %6111 = vmatpush2.bf16.msra.mxu1 %v8714_v51  ;;  %v5843_v18 = vpop.f32.mrf.mxu0  ;;  %6137 = vmatprep.subr.bf16.mxu0 %v8725_v40  ;;  %v8735_v3 = vld [vmem:[%s9331_s9 + $0xe88] ss:$16 sps:$4 sm:$0xff]   ;;  %v8788_v52 = vld [vmem:[%s9331_s9 + $0xf6c] ss:$16 sps:$4 sm:$0xff]  }
 0x2be   : > { %6112 = vmatprep.subr.bf16.mxu1 %v8722_v14  ;;  %v10197_v36 = vadd.f32 %v5843_v18, %v10158_v9  ;;  %v8741_v9 = vld [vmem:[%s9331_s9 + $0xe68] ss:$16 sps:$4 sm:$0xff]   ;;  %v8785_v14 = vld [vmem:[%s9331_s9 + $0x108c] ss:$16 sps:$4 sm:$0xff]  }
 0x2bf   : > { %v5845_v56 = vpop.f32.mrf.mxu0  ;;  %v8780_v40 = vld [vmem:[%s9331_s9 + $0xf88] ss:$16 sps:$4 sm:$0xff]  }
 0x2c0   : > { %v6385_v57 = vcombine.low %v10190_v1, %v10197_v36  ;;  %6138 = vmatpush1.bf16.msra.mxu0 %v8723_v53  ;;  %v8786_v53 = vld [vmem:[%s9331_s9 + $0xf68] ss:$16 sps:$4 sm:$0xff]  }
 0x2c1   : > { %6113 = vmatpush2.bf16.msra.mxu1 %v8720_v39  ;;  %v5846_v62 = vpop.f32.mrf.mxu0  ;;  %6139 = vmatprep.subr.bf16.mxu0 %v8731_v54  ;;  %v8791_v39 = vld [vmem:[%s9331_s9 + $0x106c] ss:$16 sps:$4 sm:$0xff]   ;;  %v8789_v18 = vld [vmem:[%s9331_s9 + $0x1068] ss:$16 sps:$4 sm:$0xff]  }
 0x2c2   : > { %6114 = vmatprep.subr.bf16.mxu1 %v8728_v61  ;;  %v8794_v61 = vld [vmem:[%s9331_s9 + $0xf4c] ss:$16 sps:$4 sm:$0xff]   ;;  %v8792_v56 = vld [vmem:[%s9331_s9 + $0xf48] ss:$16 sps:$4 sm:$0xff]  }
 0x2c3   : > { %v8797_v54 = vld [vmem:[%s9331_s9 + $0x104c] ss:$16 sps:$4 sm:$0xff]  }
 0x2c4   : > { %6140 = vmatpush1.bf16.msra.mxu0 %v8729_v0  ;;  %v8800_v0 = vld [vmem:[%s9331_s9 + $0xf2c] ss:$16 sps:$4 sm:$0xff]  }
 0x2c5   : > { %6115 = vmatpush2.bf16.msra.mxu1 %v8726_v58  ;;  %6141 = vmatprep.subr.bf16.mxu0 %v8737_v2  ;;  %v8795_v58 = vld [vmem:[%s9331_s9 + $0x1048] ss:$16 sps:$4 sm:$0xff]   ;;  %v8803_v62 = vld [vmem:[%s9331_s9 + $0x102c] ss:$16 sps:$4 sm:$0xff]  }
 0x2c6   : > { %6116 = vmatprep.subr.bf16.mxu1 %v8734_v63  ;;  %v8798_v63 = vld [vmem:[%s9331_s9 + $0xf28] ss:$16 sps:$4 sm:$0xff]  }
 0x2c7   : > { %v8801_v2 = vld [vmem:[%s9331_s9 + $0x1028] ss:$16 sps:$4 sm:$0xff]  }
 0x2c8   : > { %6142 = vmatpush1.bf16.msra.mxu0 %v8735_v3  ;;  %v8809_v3 = vld [vmem:[%s9331_s9 + $0x100c] ss:$16 sps:$4 sm:$0xff]  }
 0x2c9   : > { %6117 = vmatpush2.bf16.msra.mxu1 %v8732_v60  ;;  %6143 = vmatprep.subr.bf16.mxu0 %v8743_v34  ;;  %v8806_v60 = vld [vmem:[%s9331_s9 + $0xf0c] ss:$16 sps:$4 sm:$0xff]   ;;  %v8807_v34 = vld [vmem:[%s9331_s9 + $0x1008] ss:$16 sps:$4 sm:$0xff]  }
 0x2ca   : > { %6118 = vmatprep.subr.bf16.mxu1 %v8740_v49  ;;  %v8804_v49 = vld [vmem:[%s9331_s9 + $0xf08] ss:$16 sps:$4 sm:$0xff]  }
 0x2cc   : > { %6144 = vmatpush1.bf16.msra.mxu0 %v8741_v9  ;;  %v8815_v9 = vld [vmem:[%s9331_s9 + $0x12ec] ss:$16 sps:$4 sm:$0xff]  }
 0x2cd   : > { %6119 = vmatpush2.bf16.msra.mxu1 %v8738_v8  ;;  %6145 = vmatprep.subr.bf16.mxu0 %v8749_v11  ;;  %v8812_v8 = vld [vmem:[%s9331_s9 + $0x11ec] ss:$16 sps:$4 sm:$0xff]   ;;  %v8813_v11 = vld [vmem:[%s9331_s9 + $0x12e8] ss:$16 sps:$4 sm:$0xff]  }
 0x2ce   : > { %6120 = vmatprep.subr.bf16.mxu1 %v8746_v10  ;;  %v8810_v10 = vld [vmem:[%s9331_s9 + $0x11e8] ss:$16 sps:$4 sm:$0xff]  }
 0x2d0   : > { %6146 = vmatpush1.bf16.msra.mxu0 %v8747_v16  ;;  %v8821_v16 = vld [vmem:[%s9331_s9 + $0x12cc] ss:$16 sps:$4 sm:$0xff]  }
 0x2d1   : > { %6121 = vmatpush2.bf16.msra.mxu1 %v8744_v12  ;;  %6147 = vmatprep.subr.bf16.mxu0 %v8755_v55  ;;  %v8818_v12 = vld [vmem:[%s9331_s9 + $0x11cc] ss:$16 sps:$4 sm:$0xff]  }
 0x2d2   : > { %6122 = vmatprep.subr.bf16.mxu1 %v8752_v38 }
 0x2d4   : > { %6148 = vmatpush1.bf16.msra.mxu0 %v8753_v22  ;;  %v8819_v22 = vld [vmem:[%s9331_s9 + $0x12c8] ss:$16 sps:$4 sm:$0xff]  }
 0x2d5   : > { %6123 = vmatpush2.bf16.msra.mxu1 %v8750_v59  ;;  %6149 = vmatprep.subr.bf16.mxu0 %v8761_v41  ;;  %v8816_v59 = vld [vmem:[%s9331_s9 + $0x11c8] ss:$16 sps:$4 sm:$0xff]   ;;  %v8824_v41 = vld [vmem:[%s9331_s9 + $0x11ac] ss:$16 sps:$4 sm:$0xff]  }
 0x2d6   : > { %6124 = vmatprep.subr.bf16.mxu1 %v8758_v31 }
 0x2d8   : > { %6150 = vmatpush1.bf16.msra.mxu0 %v8759_v28 }
 0x2d9   : > { %6125 = vmatpush2.bf16.msra.mxu1 %v8756_v25  ;;  %6151 = vmatprep.subr.bf16.mxu0 %v8764_v29  ;;  %v8827_v25 = vld [vmem:[%s9331_s9 + $0x12ac] ss:$16 sps:$4 sm:$0xff]   ;;  %v8822_v29 = vld [vmem:[%s9331_s9 + $0x11a8] ss:$16 sps:$4 sm:$0xff]  }
 0x2da   : > { %6176 = vmatprep.subr.bf16.mxu1 %v8767_v43  ;;  %v8825_v43 = vld [vmem:[%s9331_s9 + $0x12a8] ss:$16 sps:$4 sm:$0xff]  }
 0x2dc   : > { %v10230_v33 = vpop.f32.mrf.mxu1  ;;  %6127 = vmatmul.mubr.bf16.vlgmr.msra.gmra.mxu1 %v9724_v13  ;;  %6152 = vmatpush2.bf16.msra.mxu0 %v8762_v30  ;;  %v8774_v13 = vld [vmem:[%s9331_s9 + $0xfa8] ss:$16 sps:$4 sm:$0xff]  }
 0x2dd   : > { %6177 = vmatpush1.bf16.msra.mxu1 %v8765_v27  ;;  %6153 = vmatprep.subr.bf16.mxu0 %v8770_v45  ;;  %v8830_v27 = vld [vmem:[%s9331_s9 + $0x118c] ss:$16 sps:$4 sm:$0xff]  }
 0x2de   : > { %v10235_v7 = vpop.f32.mrf.mxu1  ;;  %6178 = vmatprep.subr.bf16.mxu1 %v8773_v35  ;;  %6208 = vmatprep.mubr.bf16.mxu1 %v9730_v20  ;;  %v8783_v20 = vld [vmem:[%s9331_s9 + $0x1088] ss:$16 sps:$4 sm:$0xff]   ;;  %v8833_v45 = vld [vmem:[%s9331_s9 + $0x128c] ss:$16 sps:$4 sm:$0xff]  }
 0x2df   : > { %v8828_v35 = vld [vmem:[%s9331_s9 + $0x1188] ss:$16 sps:$4 sm:$0xff]  }
 0x2e0   : > { %v5886_v37 = vpop.f32.mrf.mxu1  ;;  %6154 = vmatpush2.bf16.msra.mxu0 %v8768_v50  ;;  %v8839_v50 = vld [vmem:[%s9331_s9 + $0x126c] ss:$16 sps:$4 sm:$0xff]  }
 0x2e1   : > { %6179 = vmatpush1.bf16.msra.mxu1 %v8771_v19  ;;  %6155 = vmatprep.subr.bf16.mxu0 %v8776_v46  ;;  %v8834_v19 = vld [vmem:[%s9331_s9 + $0x1168] ss:$16 sps:$4 sm:$0xff]   ;;  %v8842_v46 = vld [vmem:[%s9331_s9 + $0x114c] ss:$16 sps:$4 sm:$0xff]  }
 0x2e2   : > { %v5887_v51 = vpop.f32.mrf.mxu1  ;;  %6180 = vmatprep.subr.bf16.mxu1 %v8779_v42  ;;  %v8845_v42 = vld [vmem:[%s9331_s9 + $0x124c] ss:$16 sps:$4 sm:$0xff]   ;;  %v8840_v37 = vld [vmem:[%s9331_s9 + $0x1148] ss:$16 sps:$4 sm:$0xff]  }
 0x2e3   : > { %v8851_v51 = vld [vmem:[%s9331_s9 + $0x122c] ss:$16 sps:$4 sm:$0xff]  }
 0x2e4   : > { %6156 = vmatpush2.bf16.msra.mxu0 %v8774_v13  ;;  %v8843_v13 = vld [vmem:[%s9331_s9 + $0x1248] ss:$16 sps:$4 sm:$0xff]  }
 0x2e5   : > { %6181 = vmatpush1.bf16.msra.mxu1 %v8777_v48  ;;  %6157 = vmatprep.subr.bf16.mxu0 %v8782_v24  ;;  %v8848_v48 = vld [vmem:[%s9331_s9 + $0x112c] ss:$16 sps:$4 sm:$0xff]   ;;  %v8846_v24 = vld [vmem:[%s9331_s9 + $0x1128] ss:$16 sps:$4 sm:$0xff]  }
 0x2e6   : > { %6182 = vmatprep.subr.bf16.mxu1 %v8785_v14  ;;  %v8849_v14 = vld [vmem:[%s9331_s9 + $0x1228] ss:$16 sps:$4 sm:$0xff]  }
 0x2e8   : > { %6158 = vmatpush2.bf16.msra.mxu0 %v8780_v40  ;;  %v8854_v40 = vld [vmem:[%s9331_s9 + $0x110c] ss:$16 sps:$4 sm:$0xff]  }
 0x2e9   : > { %6183 = vmatpush1.bf16.msra.mxu1 %v8783_v20  ;;  %6159 = vmatprep.subr.bf16.mxu0 %v8788_v52  ;;  %v8857_v20 = vld [vmem:[%s9331_s9 + $0x120c] ss:$16 sps:$4 sm:$0xff]   ;;  %v8852_v52 = vld [vmem:[%s9331_s9 + $0x1108] ss:$16 sps:$4 sm:$0xff]  }
 0x2ea   : > { %6184 = vmatprep.subr.bf16.mxu1 %v8791_v39  ;;  %v8855_v39 = vld [vmem:[%s9331_s9 + $0x1208] ss:$16 sps:$4 sm:$0xff]  }
 0x2ec   : > { %6160 = vmatpush2.bf16.msra.mxu0 %v8786_v53  ;;  %v8860_v53 = vld [vmem:[%s9331_s9 + $0x13ec] ss:$16 sps:$4 sm:$0xff]  }
 0x2ed   : > { %6185 = vmatpush1.bf16.msra.mxu1 %v8789_v18  ;;  %6161 = vmatprep.subr.bf16.mxu0 %v8794_v61  ;;  %v8863_v18 = vld [vmem:[%s9331_s9 + $0x14ec] ss:$16 sps:$4 sm:$0xff]   ;;  %v8858_v61 = vld [vmem:[%s9331_s9 + $0x13e8] ss:$16 sps:$4 sm:$0xff]  }
 0x2ee   : > { %6186 = vmatprep.subr.bf16.mxu1 %v8797_v54  ;;  %v8861_v54 = vld [vmem:[%s9331_s9 + $0x14e8] ss:$16 sps:$4 sm:$0xff]  }
 0x2f0   : > { %6162 = vmatpush2.bf16.msra.mxu0 %v8792_v56  ;;  %v8866_v56 = vld [vmem:[%s9331_s9 + $0x13cc] ss:$16 sps:$4 sm:$0xff]  }
 0x2f1   : > { %6187 = vmatpush1.bf16.msra.mxu1 %v8795_v58  ;;  %6163 = vmatprep.subr.bf16.mxu0 %v8800_v0  ;;  %v8869_v58 = vld [vmem:[%s9331_s9 + $0x14cc] ss:$16 sps:$4 sm:$0xff]  }
 0x2f2   : > { %6188 = vmatprep.subr.bf16.mxu1 %v8803_v62 }
 0x2f4   : > { %6164 = vmatpush2.bf16.msra.mxu0 %v8798_v63  ;;  %v8864_v63 = vld [vmem:[%s9331_s9 + $0x13c8] ss:$16 sps:$4 sm:$0xff]  }
 0x2f5   : > { %6189 = vmatpush1.bf16.msra.mxu1 %v8801_v2  ;;  %6165 = vmatprep.subr.bf16.mxu0 %v8806_v60  ;;  %v8867_v2 = vld [vmem:[%s9331_s9 + $0x14c8] ss:$16 sps:$4 sm:$0xff]  }
 0x2f6   : > { %6190 = vmatprep.subr.bf16.mxu1 %v8809_v3  ;;  %v8872_v3 = vld [vmem:[%s9331_s9 + $0x13ac] ss:$16 sps:$4 sm:$0xff]  }
 0x2f8   : > { %6166 = vmatpush2.bf16.msra.mxu0 %v8804_v49  ;;  %v8875_v49 = vld [vmem:[%s9331_s9 + $0x14ac] ss:$16 sps:$4 sm:$0xff]  }
 0x2f9   : > { %6191 = vmatpush1.bf16.msra.mxu1 %v8807_v34  ;;  %6217 = vmatprep.subr.bf16.mxu0 %v8815_v9  ;;  %v8873_v9 = vld [vmem:[%s9331_s9 + $0x14a8] ss:$16 sps:$4 sm:$0xff]  }
 0x2fa   : > { %6192 = vmatprep.subr.bf16.mxu1 %v8812_v8  ;;  %v8870_v8 = vld [vmem:[%s9331_s9 + $0x13a8] ss:$16 sps:$4 sm:$0xff]  }
 0x2fb   : > { %v5923_v38 = vpop.f32.mrf.mxu0  ;;  %6168 = vmatmul.mubr.bf16.vlgmr.msra.gmra.mxu0 %v9734_v21 }
 0x2fc   : > { %v10270_v55 = vadd.f32 %v5923_v38, %v10230_v33  ;;  %6218 = vmatpush1.bf16.msra.mxu0 %v8813_v11  ;;  %6249 = vmatprep.mubr.bf16.mxu0 %v9742_v26  ;;  %v8831_v26 = vld [vmem:[%s9331_s9 + $0x1288] ss:$16 sps:$4 sm:$0xff]   ;;  %v8836_v33 = vld [vmem:[%s9331_s9 + $0x116c] ss:$16 sps:$4 sm:$0xff]  }
 0x2fd   : > { %6193 = vmatpush2.bf16.msra.mxu1 %v8810_v10  ;;  %v5925_v31 = vpop.f32.mrf.mxu0  ;;  %6219 = vmatprep.subr.bf16.mxu0 %v8821_v16  ;;  %v8878_v11 = vld [vmem:[%s9331_s9 + $0x138c] ss:$16 sps:$4 sm:$0xff]   ;;  %v8876_v16 = vld [vmem:[%s9331_s9 + $0x1388] ss:$16 sps:$4 sm:$0xff]  }
 0x2fe   : > { %6194 = vmatprep.subr.bf16.mxu1 %v8818_v12  ;;  %v10277_v21 = vadd.f32 %v5925_v31, %v10235_v7  ;;  %v8837_v7 = vld [vmem:[%s9331_s9 + $0x1268] ss:$16 sps:$4 sm:$0xff]   ;;  %v8881_v12 = vld [vmem:[%s9331_s9 + $0x148c] ss:$16 sps:$4 sm:$0xff]  }
 0x2ff   : > { %v5927_v28 = vpop.f32.mrf.mxu0  ;;  %v8884_v38 = vld [vmem:[%s9331_s9 + $0x136c] ss:$16 sps:$4 sm:$0xff]  }
 0x300   : > { %6220 = vmatpush1.bf16.msra.mxu0 %v8819_v22  ;;  %v8885_v22 = vld [vmem:[%s9331_s9 + $0x1468] ss:$16 sps:$4 sm:$0xff]   ;;  %v8890_v31 = vld [vmem:[%s9331_s9 + $0x134c] ss:$16 sps:$4 sm:$0xff]  }
 0x301   : > { %6195 = vmatpush2.bf16.msra.mxu1 %v8816_v59  ;;  %v5928_v30 = vpop.f32.mrf.mxu0  ;;  %6221 = vmatprep.subr.bf16.mxu0 %v8827_v25  ;;  %v8882_v59 = vld [vmem:[%s9331_s9 + $0x1368] ss:$16 sps:$4 sm:$0xff]   ;;  %v8896_v28 = vld [vmem:[%s9331_s9 + $0x132c] ss:$16 sps:$4 sm:$0xff]  }
 0x302   : > { %6196 = vmatprep.subr.bf16.mxu1 %v8824_v41  ;;  %v8893_v41 = vld [vmem:[%s9331_s9 + $0x144c] ss:$16 sps:$4 sm:$0xff]   ;;  %v8888_v25 = vld [vmem:[%s9331_s9 + $0x1348] ss:$16 sps:$4 sm:$0xff]  }
 0x303   : > { %v8897_v30 = vld [vmem:[%s9331_s9 + $0x1428] ss:$16 sps:$4 sm:$0xff]  }
 0x304   : > { %6222 = vmatpush1.bf16.msra.mxu0 %v8825_v43  ;;  %v8894_v43 = vld [vmem:[%s9331_s9 + $0x1328] ss:$16 sps:$4 sm:$0xff]  }
 0x305   : > { %6197 = vmatpush2.bf16.msra.mxu1 %v8822_v29  ;;  %6223 = vmatprep.subr.bf16.mxu0 %v8833_v45  ;;  %v8899_v29 = vld [vmem:[%s9331_s9 + $0x142c] ss:$16 sps:$4 sm:$0xff]  }
 0x306   : > { %6198 = vmatprep.subr.bf16.mxu1 %v8830_v27  ;;  %v8902_v27 = vld [vmem:[%s9331_s9 + $0x130c] ss:$16 sps:$4 sm:$0xff]  }
 0x307   : > { %v8905_v45 = vld [vmem:[%s9331_s9 + $0x140c] ss:$16 sps:$4 sm:$0xff]  }
 0x308   : > { %6224 = vmatpush1.bf16.msra.mxu0 %v8831_v26  ;;  %v8903_v26 = vld [vmem:[%s9331_s9 + $0x1408] ss:$16 sps:$4 sm:$0xff]  }
 0x309   : > { %6199 = vmatpush2.bf16.msra.mxu1 %v8828_v35  ;;  %6225 = vmatprep.subr.bf16.mxu0 %v8839_v50  ;;  %v8900_v35 = vld [vmem:[%s9331_s9 + $0x1308] ss:$16 sps:$4 sm:$0xff]   ;;  %v8911_v50 = vld [vmem:[%s9331_s9 + $0x16ec] ss:$16 sps:$4 sm:$0xff]  }
 0x30a   : > { %6200 = vmatprep.subr.bf16.mxu1 %v8836_v33  ;;  %v8908_v33 = vld [vmem:[%s9331_s9 + $0x15ec] ss:$16 sps:$4 sm:$0xff]  }
 0x30c   : > { %6226 = vmatpush1.bf16.msra.mxu0 %v8837_v7  ;;  %v8909_v7 = vld [vmem:[%s9331_s9 + $0x16e8] ss:$16 sps:$4 sm:$0xff]  }
 0x30d   : > { %6201 = vmatpush2.bf16.msra.mxu1 %v8834_v19  ;;  %6227 = vmatprep.subr.bf16.mxu0 %v8845_v42  ;;  %v8906_v19 = vld [vmem:[%s9331_s9 + $0x15e8] ss:$16 sps:$4 sm:$0xff]   ;;  %v8917_v42 = vld [vmem:[%s9331_s9 + $0x16cc] ss:$16 sps:$4 sm:$0xff]  }
 0x30e   : > { %6202 = vmatprep.subr.bf16.mxu1 %v8842_v46  ;;  %v8914_v46 = vld [vmem:[%s9331_s9 + $0x15cc] ss:$16 sps:$4 sm:$0xff]  }
 0x310   : > { %6228 = vmatpush1.bf16.msra.mxu0 %v8843_v13 }
 0x311   : > { %6203 = vmatpush2.bf16.msra.mxu1 %v8840_v37  ;;  %6229 = vmatprep.subr.bf16.mxu0 %v8851_v51  ;;  %v8915_v51 = vld [vmem:[%s9331_s9 + $0x16c8] ss:$16 sps:$4 sm:$0xff]  }
 0x312   : > { %6204 = vmatprep.subr.bf16.mxu1 %v8848_v48  ;;  %v8912_v48 = vld [vmem:[%s9331_s9 + $0x15c8] ss:$16 sps:$4 sm:$0xff]  }
 0x314   : > { %6230 = vmatpush1.bf16.msra.mxu0 %v8849_v14  ;;  %v8920_v14 = vld [vmem:[%s9331_s9 + $0x15ac] ss:$16 sps:$4 sm:$0xff]  }
 0x315   : > { %6205 = vmatpush2.bf16.msra.mxu1 %v8846_v24  ;;  %6231 = vmatprep.subr.bf16.mxu0 %v8857_v20 }
 0x316   : > { %6206 = vmatprep.subr.bf16.mxu1 %v8854_v40  ;;  %v8923_v40 = vld [vmem:[%s9331_s9 + $0x16ac] ss:$16 sps:$4 sm:$0xff]  }
 0x318   : > { %6232 = vmatpush1.bf16.msra.mxu0 %v8855_v39  ;;  %v8921_v39 = vld [vmem:[%s9331_s9 + $0x16a8] ss:$16 sps:$4 sm:$0xff]  }
 0x319   : > { %6207 = vmatpush2.bf16.msra.mxu1 %v8852_v52  ;;  %6233 = vmatprep.subr.bf16.mxu0 %v8860_v53  ;;  %v8918_v52 = vld [vmem:[%s9331_s9 + $0x15a8] ss:$16 sps:$4 sm:$0xff]  }
 0x31a   : > { %6258 = vmatprep.subr.bf16.mxu1 %v8863_v18  ;;  %v8926_v18 = vld [vmem:[%s9331_s9 + $0x158c] ss:$16 sps:$4 sm:$0xff]  }
 0x31c   : > { %v5964_v0 = vpop.f32.mrf.mxu1  ;;  %6209 = vmatmul.mubr.bf16.vlgmr.msra.gmra.mxu1 %v9817_v4  ;;  %6234 = vmatpush2.bf16.msra.mxu0 %v8858_v61  ;;  %v8929_v61 = vld [vmem:[%s9331_s9 + $0x168c] ss:$16 sps:$4 sm:$0xff]  }
 0x31d   : > { %v10310_v62 = vadd.f32 %v5964_v0, %v10270_v55  ;;  %6259 = vmatpush1.bf16.msra.mxu1 %v8861_v54  ;;  %6235 = vmatprep.subr.bf16.mxu0 %v8866_v56  ;;  %v8887_v55 = vld [vmem:[%s9331_s9 + $0x146c] ss:$16 sps:$4 sm:$0xff]   ;;  %v8924_v54 = vld [vmem:[%s9331_s9 + $0x1588] ss:$16 sps:$4 sm:$0xff]  }
 0x31e   : > { %v5966_v60 = vpop.f32.mrf.mxu1  ;;  %6260 = vmatprep.subr.bf16.mxu1 %v8869_v58  ;;  %6290 = vmatprep.mubr.bf16.mxu1 %v9826_v15  ;;  %v8879_v15 = vld [vmem:[%s9331_s9 + $0x1488] ss:$16 sps:$4 sm:$0xff]   ;;  %v8932_v56 = vld [vmem:[%s9331_s9 + $0x156c] ss:$16 sps:$4 sm:$0xff]  }
 0x31f   : > { %v10317_v4 = vadd.f32 %v5966_v60, %v10277_v21  ;;  %v8891_v21 = vld [vmem:[%s9331_s9 + $0x1448] ss:$16 sps:$4 sm:$0xff]   ;;  %v8935_v58 = vld [vmem:[%s9331_s9 + $0x166c] ss:$16 sps:$4 sm:$0xff]  }
 0x320   : > { %v5968_v34 = vpop.f32.mrf.mxu1  ;;  %6236 = vmatpush2.bf16.msra.mxu0 %v8864_v63  ;;  %v8930_v0 = vld [vmem:[%s9331_s9 + $0x1568] ss:$16 sps:$4 sm:$0xff]   ;;  %v8938_v63 = vld [vmem:[%s9331_s9 + $0x154c] ss:$16 sps:$4 sm:$0xff]  }
 0x321   : > { %6261 = vmatpush1.bf16.msra.mxu1 %v8867_v2  ;;  %6237 = vmatprep.subr.bf16.mxu0 %v8872_v3  ;;  %v8941_v2 = vld [vmem:[%s9331_s9 + $0x164c] ss:$16 sps:$4 sm:$0xff]   ;;  %v8936_v60 = vld [vmem:[%s9331_s9 + $0x1548] ss:$16 sps:$4 sm:$0xff]  }
 0x322   : > { %v5969_v10 = vpop.f32.mrf.mxu1  ;;  %6262 = vmatprep.subr.bf16.mxu1 %v8875_v49  ;;  %v8939_v3 = vld [vmem:[%s9331_s9 + $0x1648] ss:$16 sps:$4 sm:$0xff]   ;;  %v8944_v49 = vld [vmem:[%s9331_s9 + $0x152c] ss:$16 sps:$4 sm:$0xff]  }
 0x323   : > { %v8942_v34 = vld [vmem:[%s9331_s9 + $0x1528] ss:$16 sps:$4 sm:$0xff]   ;;  %v8953_v10 = vld [vmem:[%s9331_s9 + $0x160c] ss:$16 sps:$4 sm:$0xff]  }
 0x324   : > { %6238 = vmatpush2.bf16.msra.mxu0 %v8870_v8  ;;  %v8945_v8 = vld [vmem:[%s9331_s9 + $0x1628] ss:$16 sps:$4 sm:$0xff]  }
 0x325   : > { %6263 = vmatpush1.bf16.msra.mxu1 %v8873_v9  ;;  %6239 = vmatprep.subr.bf16.mxu0 %v8878_v11  ;;  %v8950_v9 = vld [vmem:[%s9331_s9 + $0x150c] ss:$16 sps:$4 sm:$0xff]   ;;  %v8948_v11 = vld [vmem:[%s9331_s9 + $0x1508] ss:$16 sps:$4 sm:$0xff]  }
 0x326   : > { %6264 = vmatprep.subr.bf16.mxu1 %v8881_v12  ;;  %v8951_v12 = vld [vmem:[%s9331_s9 + $0x1608] ss:$16 sps:$4 sm:$0xff]  }
 0x328   : > { %6240 = vmatpush2.bf16.msra.mxu0 %v8876_v16  ;;  %v8956_v16 = vld [vmem:[%s9331_s9 + $0x17ec] ss:$16 sps:$4 sm:$0xff]  }
 0x329   : > { %6265 = vmatpush1.bf16.msra.mxu1 %v8879_v15  ;;  %6241 = vmatprep.subr.bf16.mxu0 %v8884_v38  ;;  %v8959_v15 = vld [vmem:[%s9331_s9 + $0x18ec] ss:$16 sps:$4 sm:$0xff]   ;;  %v8954_v38 = vld [vmem:[%s9331_s9 + $0x17e8] ss:$16 sps:$4 sm:$0xff]  }
 0x32a   : > { %6266 = vmatprep.subr.bf16.mxu1 %v8887_v55  ;;  %v8957_v55 = vld [vmem:[%s9331_s9 + $0x18e8] ss:$16 sps:$4 sm:$0xff]  }
 0x32c   : > { %6242 = vmatpush2.bf16.msra.mxu0 %v8882_v59  ;;  %v8962_v59 = vld [vmem:[%s9331_s9 + $0x17cc] ss:$16 sps:$4 sm:$0xff]  }
 0x32d   : > { %6267 = vmatpush1.bf16.msra.mxu1 %v8885_v22  ;;  %6243 = vmatprep.subr.bf16.mxu0 %v8890_v31  ;;  %v8965_v22 = vld [vmem:[%s9331_s9 + $0x18cc] ss:$16 sps:$4 sm:$0xff]  }
 0x32e   : > { %6268 = vmatprep.subr.bf16.mxu1 %v8893_v41 }
 0x330   : > { %6244 = vmatpush2.bf16.msra.mxu0 %v8888_v25  ;;  %v8960_v25 = vld [vmem:[%s9331_s9 + $0x17c8] ss:$16 sps:$4 sm:$0xff]  }
 0x331   : > { %6269 = vmatpush1.bf16.msra.mxu1 %v8891_v21  ;;  %6245 = vmatprep.subr.bf16.mxu0 %v8896_v28  ;;  %v8963_v21 = vld [vmem:[%s9331_s9 + $0x18c8] ss:$16 sps:$4 sm:$0xff]  }
 0x332   : > { %6270 = vmatprep.subr.bf16.mxu1 %v8899_v29  ;;  %v8968_v29 = vld [vmem:[%s9331_s9 + $0x17ac] ss:$16 sps:$4 sm:$0xff]  }
 0x334   : > { %6246 = vmatpush2.bf16.msra.mxu0 %v8894_v43  ;;  %v8971_v43 = vld [vmem:[%s9331_s9 + $0x18ac] ss:$16 sps:$4 sm:$0xff]  }
 0x335   : > { %6271 = vmatpush1.bf16.msra.mxu1 %v8897_v30  ;;  %6247 = vmatprep.subr.bf16.mxu0 %v8902_v27  ;;  %v8966_v27 = vld [vmem:[%s9331_s9 + $0x17a8] ss:$16 sps:$4 sm:$0xff]  }
 0x336   : > { %6272 = vmatprep.subr.bf16.mxu1 %v8905_v45  ;;  %v8969_v45 = vld [vmem:[%s9331_s9 + $0x18a8] ss:$16 sps:$4 sm:$0xff]  }
 0x338   : > { %6248 = vmatpush2.bf16.msra.mxu0 %v8900_v35 }
 0x339   : > { %6273 = vmatpush1.bf16.msra.mxu1 %v8903_v26  ;;  %6299 = vmatprep.subr.bf16.mxu0 %v8911_v50  ;;  %v8974_v26 = vld [vmem:[%s9331_s9 + $0x178c] ss:$16 sps:$4 sm:$0xff]   ;;  %v8972_v50 = vld [vmem:[%s9331_s9 + $0x1788] ss:$16 sps:$4 sm:$0xff]  }
 0x33a   : > { %6274 = vmatprep.subr.bf16.mxu1 %v8908_v33  ;;  %v8977_v33 = vld [vmem:[%s9331_s9 + $0x188c] ss:$16 sps:$4 sm:$0xff]  }
 0x33b   : > { %v6005_v37 = vpop.f32.mrf.mxu0  ;;  %6250 = vmatmul.mubr.bf16.vlgmr.msra.gmra.mxu0 %v9830_v5 }
 0x33c   : > { %v10350_v13 = vadd.f32 %v6005_v37, %v10310_v62  ;;  %6300 = vmatpush1.bf16.msra.mxu0 %v8909_v7  ;;  %6331 = vmatprep.mubr.bf16.mxu0 %v9838_v23  ;;  %v8927_v23 = vld [vmem:[%s9331_s9 + $0x1688] ss:$16 sps:$4 sm:$0xff]   ;;  %v8983_v7 = vld [vmem:[%s9331_s9 + $0x186c] ss:$16 sps:$4 sm:$0xff]  }
 0x33d   : > { %6275 = vmatpush2.bf16.msra.mxu1 %v8906_v19  ;;  %v6007_v24 = vpop.f32.mrf.mxu0  ;;  %6301 = vmatprep.subr.bf16.mxu0 %v8917_v42  ;;  %v8933_v62 = vld [vmem:[%s9331_s9 + $0x1668] ss:$16 sps:$4 sm:$0xff]   ;;  %v8980_v19 = vld [vmem:[%s9331_s9 + $0x176c] ss:$16 sps:$4 sm:$0xff]  }
 0x33e   : > { %6276 = vmatprep.subr.bf16.mxu1 %v8914_v46  ;;  %v10357_v5 = vadd.f32 %v6007_v24, %v10317_v4  ;;  %v8947_v4 = vld [vmem:[%s9331_s9 + $0x162c] ss:$16 sps:$4 sm:$0xff]   ;;  %v8978_v46 = vld [vmem:[%s9331_s9 + $0x1768] ss:$16 sps:$4 sm:$0xff]  }
 0x33f   : > { %v6009_v20 = vpop.f32.mrf.mxu0  ;;  %v8981_v42 = vld [vmem:[%s9331_s9 + $0x1868] ss:$16 sps:$4 sm:$0xff]   ;;  %v8986_v37 = vld [vmem:[%s9331_s9 + $0x174c] ss:$16 sps:$4 sm:$0xff]  }
 0x340   : > { %6302 = vmatpush1.bf16.msra.mxu0 %v8915_v51  ;;  %v8987_v51 = vld [vmem:[%s9331_s9 + $0x1848] ss:$16 sps:$4 sm:$0xff]   ;;  %v8992_v24 = vld [vmem:[%s9331_s9 + $0x172c] ss:$16 sps:$4 sm:$0xff]  }
 0x341   : > { %6277 = vmatpush2.bf16.msra.mxu1 %v8912_v48  ;;  %v6010_v53 = vpop.f32.mrf.mxu0  ;;  %6303 = vmatprep.subr.bf16.mxu0 %v8923_v40  ;;  %v8984_v48 = vld [vmem:[%s9331_s9 + $0x1748] ss:$16 sps:$4 sm:$0xff]   ;;  %v8998_v20 = vld [vmem:[%s9331_s9 + $0x170c] ss:$16 sps:$4 sm:$0xff]  }
 0x342   : > { %6278 = vmatprep.subr.bf16.mxu1 %v8920_v14  ;;  %v8995_v14 = vld [vmem:[%s9331_s9 + $0x182c] ss:$16 sps:$4 sm:$0xff]   ;;  %v8990_v40 = vld [vmem:[%s9331_s9 + $0x1728] ss:$16 sps:$4 sm:$0xff]  }
 0x343   : > { %v8999_v53 = vld [vmem:[%s9331_s9 + $0x1808] ss:$16 sps:$4 sm:$0xff]  }
 0x344   : > { %6304 = vmatpush1.bf16.msra.mxu0 %v8921_v39  ;;  %v8996_v39 = vld [vmem:[%s9331_s9 + $0x1708] ss:$16 sps:$4 sm:$0xff]  }
 0x345   : > { %6279 = vmatpush2.bf16.msra.mxu1 %v8918_v52  ;;  %6305 = vmatprep.subr.bf16.mxu0 %v8929_v61  ;;  %v9001_v52 = vld [vmem:[%s9331_s9 + $0x180c] ss:$16 sps:$4 sm:$0xff]  }
 0x346   : > { %6280 = vmatprep.subr.bf16.mxu1 %v8926_v18 }
 0x348   : > { %6306 = vmatpush1.bf16.msra.mxu0 %v8927_v23 }
 0x349   : > { %6281 = vmatpush2.bf16.msra.mxu1 %v8924_v54  ;;  %6307 = vmatprep.subr.bf16.mxu0 %v8935_v58 }
 0x34a   : > { %6282 = vmatprep.subr.bf16.mxu1 %v8932_v56 }
 0x34c   : > { %6308 = vmatpush1.bf16.msra.mxu0 %v8933_v62 }
 0x34d   : > { %6283 = vmatpush2.bf16.msra.mxu1 %v8930_v0  ;;  %6309 = vmatprep.subr.bf16.mxu0 %v8941_v2 }
 0x34e   : > { %6284 = vmatprep.subr.bf16.mxu1 %v8938_v63 }
 0x350   : > { %6310 = vmatpush1.bf16.msra.mxu0 %v8939_v3 }
 0x351   : > { %6285 = vmatpush2.bf16.msra.mxu1 %v8936_v60  ;;  %6311 = vmatprep.subr.bf16.mxu0 %v8947_v4 }
 0x352   : > { %6286 = vmatprep.subr.bf16.mxu1 %v8944_v49 }
 0x354   : > { %6312 = vmatpush1.bf16.msra.mxu0 %v8945_v8 }
 0x355   : > { %6287 = vmatpush2.bf16.msra.mxu1 %v8942_v34  ;;  %6313 = vmatprep.subr.bf16.mxu0 %v8953_v10 }
 0x356   : > { %6288 = vmatprep.subr.bf16.mxu1 %v8950_v9 }
 0x358   : > { %6314 = vmatpush1.bf16.msra.mxu0 %v8951_v12 }
 0x359   : > { %6289 = vmatpush2.bf16.msra.mxu1 %v8948_v11  ;;  %6315 = vmatprep.subr.bf16.mxu0 %v8956_v16 }
 0x35a   : > { %6340 = vmatprep.subr.bf16.mxu1 %v8959_v15 }
 0x35c   : > { %v6046_v31 = vpop.f32.mrf.mxu1  ;;  %6291 = vmatmul.mubr.bf16.vlgmr.msra.gmra.mxu1 %v9906_v6  ;;  %6316 = vmatpush2.bf16.msra.mxu0 %v8954_v38 }
 0x35d   : > { %v10390_v41 = vadd.f32 %v6046_v31, %v10350_v13  ;;  %6341 = vmatpush1.bf16.msra.mxu1 %v8957_v55  ;;  %6317 = vmatprep.subr.bf16.mxu0 %v8962_v59  ;;  %v8989_v13 = vld [vmem:[%s9331_s9 + $0x184c] ss:$16 sps:$4 sm:$0xff]  }
 0x35e   : > { %v6048_v28 = vpop.f32.mrf.mxu1  ;;  %6342 = vmatprep.subr.bf16.mxu1 %v8965_v22  ;;  %6372 = vmatprep.mubr.bf16.mxu1 %v9160_v47  ;;  %v8975_v47 = vld [vmem:[%s9331_s9 + $0x1888] ss:$16 sps:$4 sm:$0xff]  }
 0x35f   : > { %v6049_v6 = vadd.f32 %v6048_v28, %v10357_v5  ;;  %v8993_v5 = vld [vmem:[%s9331_s9 + $0x1828] ss:$16 sps:$4 sm:$0xff]   ;;  %v9161_v28 = vmov 1983009808  }
 0x360   : > { %v6050_v30 = vpop.f32.mrf.mxu1  ;;  %6318 = vmatpush2.bf16.msra.mxu0 %v8960_v25 }
 0x361   : > { %6343 = vmatpush1.bf16.msra.mxu1 %v8963_v21  ;;  %6319 = vmatprep.subr.bf16.mxu0 %v8968_v29  ;;  %v6388_v29 = vunpack.c.l.s4 %v9161_v28 }
 0x362   : > { %v6051_v35 = vpop.f32.mrf.mxu1  ;;  %6344 = vmatprep.subr.bf16.mxu1 %v8971_v43 }
 0x363   : > { %v6389_v35 = vunpack.c.0.s8 %v6388_v29 }
 0x364   : > { %6320 = vmatpush2.bf16.msra.mxu0 %v8966_v27 }
 0x365   : > { %6345 = vmatpush1.bf16.msra.mxu1 %v8969_v45  ;;  %6321 = vmatprep.subr.bf16.mxu0 %v8974_v26 }
 0x366   : > { %6346 = vmatprep.subr.bf16.mxu1 %v8977_v33 }
 0x368   : > { %6322 = vmatpush2.bf16.msra.mxu0 %v8972_v50 }
 0x369   : > { %6347 = vmatpush1.bf16.msra.mxu1 %v8975_v47  ;;  %6323 = vmatprep.subr.bf16.mxu0 %v8980_v19 }
 0x36a   : > { %6348 = vmatprep.subr.bf16.mxu1 %v8983_v7 }
 0x36c   : > { %6324 = vmatpush2.bf16.msra.mxu0 %v8978_v46 }
 0x36d   : > { %6349 = vmatpush1.bf16.msra.mxu1 %v8981_v42  ;;  %6325 = vmatprep.subr.bf16.mxu0 %v8986_v37  ;;  %v10424_v42 = vsub.s32 %v6389_v35, %v9404_v44 }
 0x36e   : > { %6350 = vmatprep.subr.bf16.mxu1 %v8989_v13 }
 0x370   : > { %6326 = vmatpush2.bf16.msra.mxu0 %v8984_v48 }
 0x371   : > { %6351 = vmatpush1.bf16.msra.mxu1 %v8987_v51  ;;  %6327 = vmatprep.subr.bf16.mxu0 %v8992_v24 }
 0x372   : > { %6352 = vmatprep.subr.bf16.mxu1 %v8995_v14  ;;  %v6393_v14 = vrot.slane %v6385_v57, %v10424_v42 }
 0x374   : > { %6328 = vmatpush2.bf16.msra.mxu0 %v8990_v40 }
 0x375   : > { %6353 = vmatpush1.bf16.msra.mxu1 %v8993_v5  ;;  %6329 = vmatprep.subr.bf16.mxu0 %v8998_v20  ;;  %v320_v5 = vld [vmem:[#allocation2] sm:$0xff] }
 0x376   : > { %6354 = vmatprep.subr.bf16.mxu1 %v9001_v52 }
 0x378   : > { %6330 = vmatpush2.bf16.msra.mxu0 %v8996_v39 }
 0x379   : > { %6355 = vmatpush1.bf16.msra.mxu1 %v8999_v53 }
 0x37b   : > { %v6087_v18 = vpop.f32.mrf.mxu0  ;;  %6332 = vmatmul.mubr.bf16.vlgmr.msra.gmra.mxu0 %v9916_v17 }
 0x37c   : > { %6373 = vmatmul.mubr.bf16.vlgmr.msra.gmra.mxu1 %v9962_v32  ;;  %v6088_v61 = vadd.f32 %v6087_v18, %v10390_v41 }
 0x37d   : > { %v6089_v54 = vpop.f32.mrf.mxu0 }
 0x37e   : > { %v6090_v23 = vadd.f32 %v6089_v54, %v6049_v6 }
 0x37f   : > { %v6091_v56 = vpop.f32.mrf.mxu0 }
 0x381   : > { %v6092_v58 = vpop.f32.mrf.mxu0 }
 0x39c   : > { %v6128_v0 = vpop.f32.mrf.mxu1 }
 0x39d   : > { %v6129_v62 = vadd.f32 %v6128_v0, %v6088_v61 }
 0x39e   : > { %v6130_v63 = vpop.f32.mrf.mxu1 }
 0x39f   : > { %v6131_v2 = vadd.f32 %v6130_v63, %v6090_v23 }
 0x3a0   : > { %v6132_v60 = vpop.f32.mrf.mxu1 }
 0x3a2   : > { %v6133_v3 = vpop.f32.mrf.mxu1 }
 0x3bb   : > { %v6169_v49 = vpop.f32.mrf.mxu0 }
 0x3bc   : > { %v6170_v4 = vadd.f32 %v6169_v49, %v6129_v62 }
 0x3bd   : > { %v6171_v34 = vpop.f32.mrf.mxu0 }
 0x3be   : > { %v6172_v8 = vadd.f32 %v6171_v34, %v6131_v2 }
 0x3bf   : > { %v6173_v9 = vpop.f32.mrf.mxu0 }
 0x3c1   : > { %v6174_v17 = vpop.f32.mrf.mxu0 }
 0x3dc   : > { %v6210_v10 = vpop.f32.mrf.mxu1 }
 0x3dd   : > { %v6211_v32 = vadd.f32 %v6210_v10, %v6170_v4 }
 0x3de   : > { %v6212_v11 = vpop.f32.mrf.mxu1 }
 0x3df   : > { %v6213_v12 = vadd.f32 %v6212_v11, %v6172_v8 }
 0x3e0   : > { %v6214_v16 = vpop.f32.mrf.mxu1 }
 0x3e2   : > { %v6215_v15 = vpop.f32.mrf.mxu1 }
 0x3fb   : > { %v6251_v38 = vpop.f32.mrf.mxu0 }
 0x3fc   : > { %v6252_v43 = vadd.f32 %v6251_v38, %v6211_v32 }
 0x3fd   : > { %v6253_v55 = vpop.f32.mrf.mxu0 }
 0x3fe   : > { %v6254_v6 = vadd.f32 %v6253_v55, %v6213_v12 }
 0x3ff   : > { %v6255_v59 = vpop.f32.mrf.mxu0 }
 0x401   : > { %v6256_v22 = vpop.f32.mrf.mxu0 }
 0x41c   : > { %v6292_v31 = vpop.f32.mrf.mxu1 }
 0x41d   : > { %v6293_v30 = vadd.f32 %v6292_v31, %v6252_v43 }
 0x41e   : > { %v6294_v41 = vpop.f32.mrf.mxu1 }
 0x41f   : > { %v6295_v26 = vadd.f32 %v6294_v41, %v6254_v6 }
 0x420   : > { %v6296_v25 = vpop.f32.mrf.mxu1 }
 0x422   : > { %v6297_v21 = vpop.f32.mrf.mxu1 }
 0x43b   : > { %v6333_v27 = vpop.f32.mrf.mxu0 }
 0x43c   : > { %v6374_v45 = vpop.f32.mrf.mxu1  ;;  %v6334_v33 = vadd.f32 %v6333_v27, %v6293_v30 }
 0x43d   : > { %v6335_v50 = vpop.f32.mrf.mxu0 }
 0x43e   : > { %v6376_v47 = vpop.f32.mrf.mxu1  ;;  %v6336_v19 = vadd.f32 %v6335_v50, %v6295_v26  ;;  %v6375_v37 = vadd.f32 %v6374_v45, %v6334_v33 }
 0x43f   : > { %v6337_v7 = vpop.f32.mrf.mxu0 }
 0x440   : > { %v6378_v46 = vpop.f32.mrf.mxu1  ;;  %v6377_v13 = vadd.f32 %v6376_v47, %v6336_v19 }
 0x441   : > { %v6338_v48 = vpop.f32.mrf.mxu0 }
 0x442   : > { %v6379_v51 = vpop.f32.mrf.mxu1  ;;  %v6386_v24 = vcombine.low %v6375_v37, %v6377_v13 }
 0x444   : > { %v6400_v40 = vrot.slane %v6386_v24, %v10424_v42 }
 0x446   : > { %v6401_v20 = vcombine.low %v6393_v14, %v6400_v40  ;;  %6408 = sbr.rel (%p7615_p1) target bundleno = 1336 (0x538), region = 52 }
 0x448   : > { %v6403_v52 = vadd.f32 %v6401_v20, %v320_v5 }
 0x44a   : > { %6404 = vst [vmem:[#allocation2] sm:$0xff] %v6403_v52 }
 0x44b   : > { %v6479_v1 = vld [vmem:[%s9356_s0 + $0xf8] sm:$0xff]  ;;  %v6478_v53 = vld [vmem:[%s9356_s0 + $0xf0] sm:$0xff]  ;;  %v6477_v23 = vld [vmem:[%s9356_s0 + $0xe8] sm:$0xff]  ;;  %v6414_v27 = vsub.s32 0, %v9404_v44  ;;  %v6418_v45 = vsub.s32 1, %v9404_v44  ;;  %v6422_v35 = vsub.s32 2, %v9404_v44 }
 0x44c   : > { %v6511_v36 = vld [vmem:[%s9356_s0 + $0x1f8] sm:$0xff]  ;;  %7620 = vmatprep.subr.mxu0 %v6479_v1  ;;  %v6510_v18 = vld [vmem:[%s9356_s0 + $0x1f0] sm:$0xff]  ;;  %v6509_v56 = vld [vmem:[%s9356_s0 + $0x1e8] sm:$0xff]  ;;  %v6426_v50 = vsub.s32 3, %v9404_v44  ;;  %vm6674_vm0 = vcmask 25600  }
 0x44d   : > { %v6463_v57 = vld [vmem:[%s9356_s0 + $0x78] sm:$0xff]  ;;  %7655 = vmatprep.subr.mxu1 %v6511_v36  ;;  %v6462_v61 = vld [vmem:[%s9356_s0 + $0x70] sm:$0xff]  ;;  %v6461_v58 = vld [vmem:[%s9356_s0 + $0x68] sm:$0xff] }
 0x44e   : > { %v6495_v39 = vld [vmem:[%s9356_s0 + $0x178] sm:$0xff]  ;;  %7621 = vmatpush3.msra.mxu0 %v6463_v57  ;;  %v6494_v54 = vld [vmem:[%s9356_s0 + $0x170] sm:$0xff]  ;;  %v6493_v0 = vld [vmem:[%s9356_s0 + $0x168] sm:$0xff] }
 0x44f   : > { %7656 = vmatpush3.msra.mxu1 %v6495_v39  ;;  %7622 = vmatprep.subr.mxu0 %v6478_v53  ;;  %v6476_v62 = vld [vmem:[%s9356_s0 + $0xe0] sm:$0xff]  ;;  %v6475_v3 = vld [vmem:[%s9356_s0 + $0xd8] sm:$0xff]  ;;  %v6474_v8 = vld [vmem:[%s9356_s0 + $0xd0] sm:$0xff] }
 0x450   : > { %7657 = vmatprep.subr.mxu1 %v6510_v18  ;;  %7623 = vmatpush3.msra.mxu0 %v6462_v61  ;;  %v6508_v63 = vld [vmem:[%s9356_s0 + $0x1e0] sm:$0xff]  ;;  %v6507_v49 = vld [vmem:[%s9356_s0 + $0x1d8] sm:$0xff]  ;;  %v6506_v9 = vld [vmem:[%s9356_s0 + $0x1d0] sm:$0xff] }
 0x451   : > { %7658 = vmatpush3.msra.mxu1 %v6494_v54  ;;  %7624 = vmatprep.subr.mxu0 %v6477_v23  ;;  %v6460_v2 = vld [vmem:[%s9356_s0 + $0x60] sm:$0xff]  ;;  %v6459_v4 = vld [vmem:[%s9356_s0 + $0x58] sm:$0xff]  ;;  %v6458_v17 = vld [vmem:[%s9356_s0 + $0x50] sm:$0xff] }
 0x452   : > { %7659 = vmatprep.subr.mxu1 %v6509_v56  ;;  %v6492_v60 = vld [vmem:[%s9356_s0 + $0x160] sm:$0xff]  ;;  %7625 = vmatpush3.msra.mxu0 %v6461_v58  ;;  %v6491_v34 = vld [vmem:[%s9356_s0 + $0x158] sm:$0xff]  ;;  %v6490_v10 = vld [vmem:[%s9356_s0 + $0x150] sm:$0xff] }
 0x453   : > { %7660 = vmatpush3.msra.mxu1 %v6493_v0  ;;  %7626 = vmatprep.subr.mxu0 %v6476_v62  ;;  %v6473_v32 = vld [vmem:[%s9356_s0 + $0xc8] sm:$0xff]  ;;  %v6472_v15 = vld [vmem:[%s9356_s0 + $0xc0] sm:$0xff]  ;;  %v6471_v22 = vld [vmem:[%s9356_s0 + $0xb8] sm:$0xff] }
 0x454   : > { %7661 = vmatprep.subr.mxu1 %v6508_v63  ;;  %7627 = vmatpush3.msra.mxu0 %v6460_v2  ;;  %v6505_v11 = vld [vmem:[%s9356_s0 + $0x1c8] sm:$0xff]  ;;  %v6504_v38 = vld [vmem:[%s9356_s0 + $0x1c0] sm:$0xff]  ;;  %v6503_v31 = vld [vmem:[%s9356_s0 + $0x1b8] sm:$0xff] }
 0x455   : > { %7662 = vmatpush3.msra.mxu1 %v6492_v60  ;;  %7628 = vmatprep.subr.mxu0 %v6475_v3  ;;  %v6457_v12 = vld [vmem:[%s9356_s0 + $0x48] sm:$0xff]  ;;  %v6456_v55 = vld [vmem:[%s9356_s0 + $0x40] sm:$0xff]  ;;  %v6455_v41 = vld [vmem:[%s9356_s0 + $0x38] sm:$0xff] }
 0x456   : > { %7663 = vmatprep.subr.mxu1 %v6507_v49  ;;  %7629 = vmatpush3.msra.mxu0 %v6459_v4  ;;  %v6489_v16 = vld [vmem:[%s9356_s0 + $0x148] sm:$0xff]  ;;  %v6488_v59 = vld [vmem:[%s9356_s0 + $0x140] sm:$0xff]  ;;  %v6487_v25 = vld [vmem:[%s9356_s0 + $0x138] sm:$0xff] }
 0x457   : > { %7664 = vmatpush3.msra.mxu1 %v6491_v34  ;;  %7630 = vmatprep.subr.mxu0 %v6474_v8  ;;  %v6470_v21 = vld [vmem:[%s9356_s0 + $0xb0] sm:$0xff]  ;;  %v6469_v6 = vld [vmem:[%s9356_s0 + $0xa8] sm:$0xff]  ;;  %v6468_v47 = vld [vmem:[%s9356_s0 + $0xa0] sm:$0xff] }
 0x458   : > { %7665 = vmatprep.subr.mxu1 %v6506_v9  ;;  %7631 = vmatpush3.msra.mxu0 %v6458_v17  ;;  %v6502_v28 = vld [vmem:[%s9356_s0 + $0x1b0] sm:$0xff]  ;;  %v6501_v30 = vld [vmem:[%s9356_s0 + $0x1a8] sm:$0xff]  ;;  %v6500_v19 = vld [vmem:[%s9356_s0 + $0x1a0] sm:$0xff] }
 0x459   : > { %7666 = vmatpush3.msra.mxu1 %v6490_v10  ;;  %7632 = vmatprep.subr.mxu0 %v6473_v32  ;;  %v6454_v29 = vld [vmem:[%s9356_s0 + $0x30] sm:$0xff]  ;;  %v6453_v26 = vld [vmem:[%s9356_s0 + $0x28] sm:$0xff]  ;;  %v6452_v7 = vld [vmem:[%s9356_s0 + $0x20] sm:$0xff] }
 0x45a   : > { %7667 = vmatprep.subr.mxu1 %v6505_v11  ;;  %7633 = vmatpush3.msra.mxu0 %v6457_v12  ;;  %v6486_v43 = vld [vmem:[%s9356_s0 + $0x130] sm:$0xff]  ;;  %v6485_v33 = vld [vmem:[%s9356_s0 + $0x128] sm:$0xff]  ;;  %v6484_v46 = vld [vmem:[%s9356_s0 + $0x120] sm:$0xff] }
 0x45b   : > { %7668 = vmatpush3.msra.mxu1 %v6489_v16  ;;  %7634 = vmatprep.subr.mxu0 %v6472_v15  ;;  %v6410_v37 = vld [vmem:[%s259_s12] sm:$0xf]  ;;  %v6467_v13 = vld [vmem:[%s9356_s0 + $0x98] sm:$0xff]  ;;  %v6466_v20 = vld [vmem:[%s9356_s0 + $0x90] sm:$0xff] }
 0x45c   : > { %7669 = vmatprep.subr.mxu1 %v6504_v38  ;;  %7635 = vmatpush3.msra.mxu0 %v6456_v55  ;;  %v6499_v48 = vld [vmem:[%s9356_s0 + $0x198] sm:$0xff]  ;;  %v6415_v44 = vrot.slane %v6410_v37, %v6414_v27  ;;  %v6419_v51 = vrot.slane %v6410_v37, %v6418_v45  ;;  %v6423_v24 = vrot.slane %v6410_v37, %v6422_v35  ;;  %v6498_v52 = vld [vmem:[%s9356_s0 + $0x190] sm:$0xff]  ;;  %v6465_v53 = vld [vmem:[%s9356_s0 + $0x88] sm:$0xff] }
 0x45d   : > { %7670 = vmatpush3.msra.mxu1 %v6488_v59  ;;  %7636 = vmatprep.subr.mxu0 %v6471_v22  ;;  %v6451_v14 = vld [vmem:[%s9356_s0 + $0x18] sm:$0xff]  ;;  %v6427_v5 = vrot.slane %v6410_v37, %v6426_v50  ;;  %v6450_v36 = vld [vmem:[%s9356_s0 + $0x10] sm:$0xff]  ;;  %v6497_v18 = vld [vmem:[%s9356_s0 + $0x188] sm:$0xff] }
 0x45e   : > { %7671 = vmatprep.subr.mxu1 %v6503_v31  ;;  %7637 = vmatpush3.msra.mxu0 %v6455_v41  ;;  %v6483_v40 = vld [vmem:[%s9356_s0 + $0x118] sm:$0xff]  ;;  %v6428_v1 = vcombine.low %v6415_v44, %v6419_v51  ;;  %v6482_v57 = vld [vmem:[%s9356_s0 + $0x110] sm:$0xff]  ;;  %v6449_v54 = vld [vmem:[%s9356_s0 + $0x8] sm:$0xff] }
 0x45f   : > { %7672 = vmatpush3.msra.mxu1 %v6487_v25  ;;  %7638 = vmatprep.subr.mxu0 %v6470_v21  ;;  %v6429_v39 = vcombine.low %v6423_v24, %v6427_v5  ;;  %v6481_v23 = vld [vmem:[%s9356_s0 + $0x108] sm:$0xff]  ;;  %v6464_v58 = vld [vmem:[%s9356_s0 + $0x80] sm:$0xff] }
 0x460   : > { %7673 = vmatprep.subr.mxu1 %v6502_v28  ;;  %7639 = vmatpush3.msra.mxu0 %v6454_v29  ;;  %v6436_v61 = vrot.slane %v6428_v1, %v10424_v42  ;;  %v6496_v0 = vld [vmem:[%s9356_s0 + $0x180] sm:$0xff] }
 0x461   : > { %7674 = vmatpush3.msra.mxu1 %v6486_v43  ;;  %7640 = vmatprep.subr.mxu0 %v6469_v6  ;;  %v6443_v56 = vrot.slane %v6429_v39, %v10424_v42  ;;  %v6409_v62 = vld [vmem:[#allocation2] sm:$0xff] }
 0x462   : > { %7675 = vmatprep.subr.mxu1 %v6501_v30  ;;  %7641 = vmatpush3.msra.mxu0 %v6453_v26  ;;  %v6448_v63 = vld [vmem:[%s9356_s0] sm:$0xff] }
 0x463   : > { %7676 = vmatpush3.msra.mxu1 %v6485_v33  ;;  %7642 = vmatprep.subr.mxu0 %v6468_v47  ;;  %v6444_v2 = vcombine.low %v6436_v61, %v6443_v56  ;;  %v6480_v60 = vld [vmem:[%s9356_s0 + $0x100] sm:$0xff] }
 0x464   : > { %7677 = vmatprep.subr.mxu1 %v6500_v19  ;;  %7643 = vmatpush3.msra.mxu0 %v6452_v7 }
 0x465   : > { %7678 = vmatpush3.msra.mxu1 %v6484_v46  ;;  %7644 = vmatprep.subr.mxu0 %v6467_v13  ;;  %v6446_v3 = vadd.f32 %v6444_v2, %v6409_v62 }
 0x466   : > { %7679 = vmatprep.subr.mxu1 %v6499_v48  ;;  %7645 = vmatpush3.msra.mxu0 %v6451_v14 }
 0x467   : > { %7680 = vmatpush3.msra.mxu1 %v6483_v40  ;;  %7646 = vmatprep.subr.mxu0 %v6466_v20  ;;  %v6447_v49 = vmax.f32 %v6446_v3, 0.0 }
 0x468   : > { %7681 = vmatprep.subr.mxu1 %v6498_v52  ;;  %7647 = vmatpush3.msra.mxu0 %v6450_v36 }
 0x469   : > { %7682 = vmatpush3.msra.mxu1 %v6482_v57  ;;  %7648 = vmatprep.subr.mxu0 %v6465_v53  ;;  %v6520_v4 = vrot.slane %v6447_v49, %v10424_v42  ;;  %v6513_v34 = vcombine.high %v6447_v49, %v6447_v49 }
 0x46a   : > { %7683 = vmatprep.subr.mxu1 %v6497_v18  ;;  %7649 = vmatpush3.msra.mxu0 %v6449_v54 }
 0x46b   : > { %7684 = vmatpush3.msra.mxu1 %v6481_v23  ;;  %7650 = vmatprep.subr.mxu0 %v6464_v58  ;;  %v6528_v8 = vcombine.high %v6520_v4, %v6520_v4  ;;  %v6527_v9 = vrot.slane %v6513_v34, %v10424_v42 }
 0x46c   : > { %7685 = vmatprep.subr.mxu1 %v6496_v0  ;;  %7651 = vmatpush3.msra.mxu0 %v6448_v63 }
 0x46d   : > { %7686 = vmatpush3.msra.mxu1 %v6480_v60  ;;  %6598 = vmatprep.mubr.f32.mxu0 %v6528_v8  ;;  %v6529_v17 = vcombine.high %v6527_v9, %v6527_v9 }
 0x46e   : > { %6599 = vmatmul.mubr.f32.vlgmr.msra.gmra.mxu0 %v6520_v4 }
 0x46f   : > { %6668 = vmatprep.mubr.f32.mxu1 %v6529_v17 }
 0x470   : > { %6669 = vmatmul.mubr.f32.vlgmr.msra.gmra.mxu1 %v6527_v9 }
 0x52e   : > { %v7652_v10 = vpop.f32.mrf.mxu0 }
 0x530   : > { %v7687_v32 = vpop.f32.mrf.mxu1  ;;  %v7653_v11 = vpop.f32.mrf.mxu0 }
 0x531   : > { %v7654_v12 = vadd.f32 %v7653_v11, %v7652_v10 }
 0x532   : > { %v7688_v16 = vpop.f32.mrf.mxu1 }
 0x533   : > { %v7689_v15 = vadd.f32 %v7688_v16, %v7687_v32 }
 0x535   : > { %v6671_v38 = vadd.f32 %v7689_v15, %v7654_v12 }
 0x537   : > { %6675 = vst.msk [vmem:[%s9362_s3] sm:$0x3] %vm6674_vm0, %v6671_v38 }
 0x538 PF: > { %s20_s25 = sadd.s32 1, %s9152_s25   ;;  %s10562_s21 = sld [smem:[#allocation9_spill]] }
 0x539   : > { %p17_p5 = scmp.ge.s32.totalorder %s20_s25, 6   ;;  %s10563_s23 = sld [smem:[#allocation10_spill]] }
 0x53a   : > { %s10564_s9 = sld [smem:[#allocation11_spill]]  ;;  %s10565_s15 = smov %s9116_s16 }
 0x53b   : > { %s10566_s16 = smov %s9120_s17  ;;  %s10567_s17 = smov %s9305_s30 }
 0x53c   : > { %s10568_s18 = smov %s9128_s19  ;;  %s10569_s19 = smov %s9132_s20 }
 0x53d   : > { %s10570_s20 = smov %s9275_s11  ;;  %s10571_s22 = smov %s9148_s24 }
 0x53e   :  { %19 = sbr.rel (!%p17_p5) target bundleno = 13 (0xd), region = 103 }
 0x540   : > { %s10572_s24 = smov %s10564_s9 }
 0x543   :  { %6695 = vsyncpa [#allocation4], 1 }
 0x544   :  { %6697 = vsyncpa [#allocation4 + $0x1], 1 }
 0x545   :  { %6698 = vsyncpa [#allocation6], 1 }
 0x546   :  { %6700 = vsyncpa [#allocation6 + $0x1], 1 }

</bundles_post_ra>
